<compile_context>
chip_gen: v6e
topology: v6e:2x2x1
jax: 0.10.0
libtpu: 0.0.40
codegen_flags: <defaults>
</compile_context>

<pallas_src>
import functools

import jax
import jax.numpy as jnp
from jax import lax
from jax.experimental import pallas as pl
from jax.experimental.pallas import tpu as pltpu

BN_EPS = 1e-5
FILTERS = (64, 128, 256, 512, 512)
VMEM_LIMIT = 48 * 1024 * 1024   # under v7x 64 MiB physical; v5e/v6e have 128 MiB
_ROW_CAP = 4096                 # target matmul-M rows per conv grid step
_STAT_CHUNK = 1024              # rows per in-kernel BN-stat chunk
_STEM_CHUNK = 512               # rows per stem matmul chunk
_BN_ELEM_CAP = 1 << 20          # elements per BN pass-2 block


def _round_up(x, m):
    return ((x + m - 1) // m) * m


def _pad_c(c):
    return max(128, _round_up(c, 128))


def _largest_divisor(n, pred):
    for t in range(n, 0, -1):
        if n % t == 0 and pred(t):
            return t
    return 1


# ---------------------------------------------------------------------------
# Pass 1 (generic layer): Conv3d(k=3, s=1, p=1) over TD output D-planes as 27
# shifted MXU matmuls, resident weights, fused halo strip + BN partial stats.
# ---------------------------------------------------------------------------
def _conv_taps_kernel(x_ref, w_ref, y_ref, psum_ref, pssq_ref, acc_ref, *,
                      TD, Pp, H, W):
    # x_ref   : (1, 1, Pbuf, Cin)   bf16  TD+2 halo'd input planes, flattened
    # w_ref   : (3, 9, Cin, Cout)   bf16  all 27 taps, constant block (resident)
    # y_ref   : (1, 1, TD*H*W, C)   bf16  interior-only conv output
    # psum/pssq: (1, 1, 1, C)       f32   per-step interior sum / sum-of-squares
    # acc_ref : (TD*Pp, C)          f32   VMEM accumulator (incl. garbage rows)
    Wp = W + 2
    HW = H * W
    M = TD * Pp
    Cout = y_ref.shape[-1]

    first = True
    for kd in range(3):
        for kh in range(3):
            for kw in range(3):
                start = kd * Pp + kh * Wp + kw           # static offset
                contrib = jnp.dot(x_ref[0, 0, start:start + M, :],
                                  w_ref[kd, kh * 3 + kw],
                                  preferred_element_type=jnp.float32)
                if first:
                    acc_ref[...] = contrib
                    first = False
                else:
                    acc_ref[...] += contrib

    # Fused halo strip: interior rows -> lane-dense bf16 output.
    for td in range(TD):
        for h in range(H):
            src = td * Pp + h * Wp
            dst = (td * H + h) * W
            y_ref[0, 0, dst:dst + W, :] = acc_ref[src:src + W, :].astype(y_ref.dtype)

    # BN partial statistics over the interior rows just written.
    rows = TD * HW
    s = jnp.zeros((1, Cout), jnp.float32)
    ss = jnp.zeros((1, Cout), jnp.float32)
    for r0 in range(0, rows, _STAT_CHUNK):
        rs = min(_STAT_CHUNK, rows - r0)
        v = y_ref[0, 0, r0:r0 + rs, :].astype(jnp.float32)
        s = s + jnp.sum(v, axis=0, keepdims=True)
        ss = ss + jnp.sum(v * v, axis=0, keepdims=True)
    psum_ref[0, 0] = s
    pssq_ref[0, 0] = ss


# ---------------------------------------------------------------------------
# Pass 1 (stem layer, small Cin): im2col-in-K conv as one matmul per row chunk.
# ---------------------------------------------------------------------------
def _stem_conv_kernel(x_ref, w_ref, y_ref, psum_ref, pssq_ref):
    # x_ref: (1, 1, R, Kp) bf16   w_ref: (Kp, Cout) bf16 (constant block)
    R = x_ref.shape[2]
    Cout = y_ref.shape[-1]
    w = w_ref[...]
    s = jnp.zeros((1, Cout), jnp.float32)
    ss = jnp.zeros((1, Cout), jnp.float32)
    for r0 in range(0, R, _STEM_CHUNK):
        rs = min(_STEM_CHUNK, R - r0)
        acc = jnp.dot(x_ref[0, 0, r0:r0 + rs, :], w,
                      preferred_element_type=jnp.float32)
        y_ref[0, 0, r0:r0 + rs, :] = acc.astype(y_ref.dtype)
        s = s + jnp.sum(acc, axis=0, keepdims=True)
        ss = ss + jnp.sum(acc * acc, axis=0, keepdims=True)
    psum_ref[0, 0] = s
    pssq_ref[0, 0] = ss


# ---------------------------------------------------------------------------
# Pass 2: fused BatchNorm (precomputed scale/shift) + ReLU, big dense blocks.
# ---------------------------------------------------------------------------
def _bn_relu_kernel(y_ref, scale_ref, shift_ref, o_ref):
    v = y_ref[...].astype(jnp.float32)                       # (1, R2, C)
    o_ref[...] = jnp.maximum(v * scale_ref[...] + shift_ref[...],
                             0.0).astype(o_ref.dtype)


# ---------------------------------------------------------------------------
# Fused Linear (+bias, optional ReLU), K-tiled accumulation.
# ---------------------------------------------------------------------------
def _linear_kernel(x_ref, w_ref, b_ref, o_ref, acc_ref, *, relu):
    k = pl.program_id(0)

    @pl.when(k == 0)
    def _init():
        acc_ref[...] = jnp.zeros_like(acc_ref)

    acc_ref[...] += jnp.dot(x_ref[...], w_ref[...],
                            preferred_element_type=jnp.float32)

    @pl.when(k == pl.num_programs(0) - 1)
    def _finalize():
        r = acc_ref[...] + b_ref[...]
        if relu:
            r = jnp.maximum(r, 0.0)
        o_ref[...] = r


# ---------------------------------------------------------------------------
# Layer wrappers
# ---------------------------------------------------------------------------
def _conv_taps(a, w_taps):
    """Generic conv layer pass 1. a: (N,D,H,W,Cin_pad) bf16."""
    N, D, H, W, Ca = a.shape
    Cin, Cout = w_taps.shape[2], w_taps.shape[3]
    if Ca < Cin:
        a = jnp.pad(a, ((0, 0),) * 4 + ((0, Cin - Ca),))
    Wp = W + 2
    Pp = (H + 2) * Wp
    HW = H * W
    TD = _largest_divisor(D, lambda t: t * Pp <= max(Pp, _ROW_CAP))
    G = D // TD
    M = TD * Pp
    Pbuf = _round_up((TD + 2) * Pp + 2 * Wp + 2, 8)

    # Staging: spatial halo pad, flatten planes, overlapping TD+2-plane groups.
    xpad = jnp.pad(a, ((0, 0), (1, 1), (1, 1), (1, 1), (0, 0)))
    xpad = xpad.reshape(N, D + 2, Pp, Cin)
    xg = jnp.stack([xpad[:, g * TD:g * TD + TD + 2] for g in range(G)], axis=1)
    xg = xg.reshape(N, G, (TD + 2) * Pp, Cin)
    xg = jnp.pad(xg, ((0, 0), (0, 0), (0, Pbuf - (TD + 2) * Pp), (0, 0)))

    y, psum, pssq = pl.pallas_call(
        functools.partial(_conv_taps_kernel, TD=TD, Pp=Pp, H=H, W=W),
        grid=(N, G),
        in_specs=[
            pl.BlockSpec((1, 1, Pbuf, Cin), lambda n, g: (n, g, 0, 0)),
            pl.BlockSpec((3, 9, Cin, Cout), lambda n, g: (0, 0, 0, 0)),
        ],
        out_specs=[
            pl.BlockSpec((1, 1, TD * HW, Cout), lambda n, g: (n, g, 0, 0)),
            pl.BlockSpec((1, 1, 1, Cout), lambda n, g: (n, g, 0, 0)),
            pl.BlockSpec((1, 1, 1, Cout), lambda n, g: (n, g, 0, 0)),
        ],
        out_shape=[
            jax.ShapeDtypeStruct((N, G, TD * HW, Cout), jnp.bfloat16),
            jax.ShapeDtypeStruct((N, G, 1, Cout), jnp.float32),
            jax.ShapeDtypeStruct((N, G, 1, Cout), jnp.float32),
        ],
        scratch_shapes=[pltpu.VMEM((M, Cout), jnp.float32)],
        compiler_params=pltpu.CompilerParams(
            dimension_semantics=("parallel", "parallel"),
            vmem_limit_bytes=VMEM_LIMIT),
    )(xg, w_taps)
    return y.reshape(N, D * HW, Cout), psum, pssq


def _stem_conv(a, w_col):
    """First conv (Cin small): im2col along K.  a: (N,D,H,W,Cin) bf16."""
    N, D, H, W, Cin = a.shape
    HW = H * W
    Kp, Cout = w_col.shape
    xp = jnp.pad(a, ((0, 0), (1, 1), (1, 1), (1, 1), (0, 0)))
    patches = []
    for kd in range(3):
        for kh in range(3):
            for kw in range(3):
                patches.append(xp[:, kd:kd + D, kh:kh + H, kw:kw + W, :])
    xcol = jnp.concatenate(patches, axis=-1)                   # (N,D,H,W,27*Cin)
    xcol = jnp.pad(xcol, ((0, 0),) * 4 + ((0, Kp - 27 * Cin),))
    td = _largest_divisor(D, lambda t: t * HW <= max(HW, _ROW_CAP))
    T = D // td
    R = td * HW
    xcol = xcol.reshape(N, T, R, Kp).astype(jnp.bfloat16)

    y, psum, pssq = pl.pallas_call(
        _stem_conv_kernel,
        grid=(N, T),
        in_specs=[
            pl.BlockSpec((1, 1, R, Kp), lambda n, t: (n, t, 0, 0)),
            pl.BlockSpec((Kp, Cout), lambda n, t: (0, 0)),
        ],
        out_specs=[
            pl.BlockSpec((1, 1, R, Cout), lambda n, t: (n, t, 0, 0)),
            pl.BlockSpec((1, 1, 1, Cout), lambda n, t: (n, t, 0, 0)),
            pl.BlockSpec((1, 1, 1, Cout), lambda n, t: (n, t, 0, 0)),
        ],
        out_shape=[
            jax.ShapeDtypeStruct((N, T, R, Cout), jnp.bfloat16),
            jax.ShapeDtypeStruct((N, T, 1, Cout), jnp.float32),
            jax.ShapeDtypeStruct((N, T, 1, Cout), jnp.float32),
        ],
        compiler_params=pltpu.CompilerParams(
            dimension_semantics=("parallel", "parallel"),
            vmem_limit_bytes=VMEM_LIMIT),
    )(xcol, w_col)
    return y.reshape(N, D * HW, Cout), psum, pssq


def _apply_bn_relu(y_flat, psum, pssq, count, gamma, beta, HW):
    """Global (train-mode) BN stats + fused scale/shift + ReLU pass."""
    N, R, C = y_flat.shape
    tsum = jnp.sum(psum, axis=(0, 1, 2))
    tssq = jnp.sum(pssq, axis=(0, 1, 2))
    mean = tsum / count
    var = jnp.maximum(tssq / count - mean * mean, 0.0)   # biased var (PyTorch fwd)
    inv = lax.rsqrt(var + BN_EPS)
    g = gamma.reshape(-1)
    scale = (g * inv).reshape(1, C)
    shift = (beta.reshape(-1) - mean * g * inv).reshape(1, C)

    D = R // HW
    cap_rows = max(HW, _BN_ELEM_CAP // C)
    td2 = None
    for t in range(D, 0, -1):
        if D % t:
            continue
        rows = t * HW
        if rows <= cap_rows and (rows % 8 == 0 or rows == R):
            td2 = t
            break
    if td2 is None:
        td2 = D
    T2 = D // td2
    R2 = td2 * HW

    out = pl.pallas_call(
        _bn_relu_kernel,
        grid=(N, T2),
        in_specs=[
            pl.BlockSpec((1, R2, C), lambda n, t: (n, t, 0)),
            pl.BlockSpec((1, C), lambda n, t: (0, 0)),
            pl.BlockSpec((1, C), lambda n, t: (0, 0)),
        ],
        out_specs=pl.BlockSpec((1, R2, C), lambda n, t: (n, t, 0)),
        out_shape=jax.ShapeDtypeStruct((N, R, C), jnp.bfloat16),
        compiler_params=pltpu.CompilerParams(
            dimension_semantics=("parallel", "parallel"),
            vmem_limit_bytes=VMEM_LIMIT),
    )(y_flat, scale, shift)
    return out


def conv_bn_relu_layer(a, layer):
    """One Conv3d(3,1,1) + BatchNorm3d(train batch stats) + ReLU layer.
    Conv bias omitted: it cancels exactly under train-mode BN mean subtraction
    (and VGG_GA._initialize_weights sets it to 0 anyway)."""
    kind, w, gamma, beta = layer
    N, D, H, W, _ = a.shape
    HW = H * W
    if kind == "stem":
        y_flat, psum, pssq = _stem_conv(a, w)
    else:
        y_flat, psum, pssq = _conv_taps(a, w)
    Cout = y_flat.shape[-1]
    out = _apply_bn_relu(y_flat, psum, pssq, float(N * D * HW), gamma, beta, HW)
    return out.reshape(N, D, H, W, Cout)


def linear_pallas(x, w, b, relu):
    """y = relu?(x @ w + b).  x: (M, K), w: (K, Nout) bf16, b: (1, Nout) f32."""
    M, K = x.shape
    Nout = w.shape[1]
    assert K % 128 == 0, K
    Mp = _round_up(max(M, 16), 16)      # bf16 sublane packing
    xp = jnp.pad(x.astype(jnp.bfloat16), ((0, Mp - M), (0, 0)))

    max_tk = 4096
    if K <= max_tk:
        tk = K
    else:
        d = K // 128
        tk = 128
        for cand in range(max_tk // 128, 0, -1):
            if d % cand == 0:
                tk = cand * 128
                break
    kt = K // tk

    out = pl.pallas_call(
        functools.partial(_linear_kernel, relu=relu),
        grid=(kt,),
        in_specs=[
            pl.BlockSpec((Mp, tk), lambda k: (0, k)),
            pl.BlockSpec((tk, Nout), lambda k: (k, 0)),
            pl.BlockSpec((1, Nout), lambda k: (0, 0)),
        ],
        out_specs=pl.BlockSpec((Mp, Nout), lambda k: (0, 0)),
        out_shape=jax.ShapeDtypeStruct((Mp, Nout), jnp.float32),
        scratch_shapes=[pltpu.VMEM((Mp, Nout), jnp.float32)],
        compiler_params=pltpu.CompilerParams(
            dimension_semantics=("arbitrary",),
            vmem_limit_bytes=VMEM_LIMIT),
    )(xp, w, b)
    return out[:M]


# ---------------------------------------------------------------------------
# XLA glue (single-pass, memory-bound ops)
# ---------------------------------------------------------------------------
def max_pool3d_2(x):
    N, D, H, W, C = x.shape
    x = x[:, :(D // 2) * 2, :(H // 2) * 2, :(W // 2) * 2, :]
    x = x.reshape(N, D // 2, 2, H // 2, 2, W // 2, 2, C)
    return x.max(axis=(2, 4, 6))


def _adaptive_avg_pool_axis(x, axis, out_size):
    n = x.shape[axis]
    pieces = []
    for i in range(out_size):
        s = (i * n) // out_size
        e = -(-((i + 1) * n) // out_size)   # ceil
        seg = lax.slice_in_dim(x, s, e, axis=axis)
        pieces.append(jnp.mean(seg, axis=axis, keepdims=True))
    return jnp.concatenate(pieces, axis=axis)


def adaptive_avg_pool3d(x, out_size=7):
    for ax in (1, 2, 3):
        x = _adaptive_avg_pool_axis(x, ax, out_size)
    return x


# ---------------------------------------------------------------------------
# Parameters (follow VGG_GA._initialize_weights: kaiming fan_out / BN(1,0) /
# Linear N(0, 0.01), zero biases).  Conv bias omitted (cancels in train-mode BN).
# ---------------------------------------------------------------------------
def init_vgg_params(key, in_channels=3, nb_convs=(1, 1, 1, 1, 1), num_classes=2):
    conv_blocks = []
    cin = in_channels
    first = True
    for b, cout in enumerate(FILTERS):
        layers = []
        for _ in range(nb_convs[b]):
            key, kw_ = jax.random.split(key)
            fan_out = cout * 27
            w = jax.random.normal(kw_, (3, 3, 3, cin, cout), jnp.float32)
            w = w * ((2.0 / fan_out) ** 0.5)
            cout_p = _pad_c(cout)
            gamma = jnp.pad(jnp.ones((cout,), jnp.float32),
                            (0, cout_p - cout)).reshape(1, cout_p)
            beta = jnp.zeros((1, cout_p), jnp.float32)
            if first and 27 * cin <= 128:
                wcol = w.reshape(27 * cin, cout)
                wcol = jnp.pad(wcol, ((0, 128 - 27 * cin),
                                      (0, cout_p - cout))).astype(jnp.bfloat16)
                layers.append(("stem", wcol, gamma, beta))
            else:
                cin_p = _pad_c(cin)
                wt = w.reshape(3, 9, cin, cout)
                wt = jnp.pad(wt, ((0, 0), (0, 0), (0, cin_p - cin),
                                  (0, cout_p - cout))).astype(jnp.bfloat16)
                layers.append(("taps", wt, gamma, beta))
            first = False
            cin = cout
        conv_blocks.append(layers)

    feat = FILTERS[4] * 7 * 7 * 7
    dims = [(feat, 128, True), (128, 128, True), (128, num_classes, False)]
    fcs = []
    for (kin, kout, relu) in dims:
        key, kw_ = jax.random.split(key)
        kout_p = _pad_c(kout)
        w = jax.random.normal(kw_, (kin, kout), jnp.float32) * 0.01
        w = jnp.pad(w, ((0, 0), (0, kout_p - kout))).astype(jnp.bfloat16)
        b = jnp.zeros((1, kout_p), jnp.float32)
        fcs.append((w, b, relu, kout))
    return conv_blocks, fcs


# ---------------------------------------------------------------------------
# Full VGG_GA forward (with_grid_attention=False path)
# ---------------------------------------------------------------------------
def vgg_ga_forward(x, params, dropout_key, num_classes=2):
    """x: (N, C_in, D, H, W) float32 (PyTorch NCDHW layout)."""
    conv_blocks, fcs = params
    N = x.shape[0]

    a = jnp.transpose(x, (0, 2, 3, 4, 1)).astype(jnp.bfloat16)   # NDHWC, bf16

    for b, layers in enumerate(conv_blocks):
        for layer in layers:
            a = conv_bn_relu_layer(a, layer)
        if b < 4:                                              # maxpool after conv1..4
            a = max_pool3d_2(a)

    pooled = adaptive_avg_pool3d(a.astype(jnp.float32), 7)     # (N,7,7,7,Cpad)
    pooled = pooled[..., :FILTERS[4]]
    feat = jnp.transpose(pooled, (0, 4, 1, 2, 3)).reshape(N, -1)  # torch flatten order

    h = feat
    for i, (w, bvec, relu, kout) in enumerate(fcs):
        h = linear_pallas(h, w, bvec, relu)[:, :kout]
        if i < 2:                                              # Dropout(0.5), train-mode
            dropout_key, sub = jax.random.split(dropout_key)
            keep = jax.random.bernoulli(sub, 0.5, h.shape)
            h = jnp.where(keep, h * 2.0, 0.0)

    logits = h[:, :num_classes]
    if num_classes == 1:                                       # torch .squeeze(dim=1)
        logits = logits[:, 0]
    return logits


if __name__ == "__main__":
    key = jax.random.PRNGKey(0)
    k_x, k_p, k_drop = jax.random.split(key, 3)

    N, C_IN, S = 2, 3, 16
    NB_CONVS = (1, 1, 1, 1, 1)
    NUM_CLASSES = 2

    x = jax.random.normal(k_x, (N, C_IN, S, S, S), jnp.float32)
    params = init_vgg_params(k_p, in_channels=C_IN, nb_convs=NB_CONVS,
                             num_classes=NUM_CLASSES)

    logits = vgg_ga_forward(x, params, k_drop, num_classes=NUM_CLASSES)
    logits = jax.block_until_ready(logits)

    assert logits.shape == (N, NUM_CLASSES), logits.shape
    assert bool(jnp.all(jnp.isfinite(logits)))
    print("KERNEL_OK")
</pallas_src>

<mosaic_0001>
module attributes {stable_mosaic.version = 11 : i64} {
  func.func @_stem_conv_kernel(%arg0: i32, %arg1: i32, %arg2: memref<1x1x4096x128xbf16, #tpu.memory_space<vmem>>, %arg3: memref<128x128xbf16, #tpu.memory_space<vmem>>, %arg4: memref<1x1x4096x128xbf16, #tpu.memory_space<vmem>>, %arg5: memref<1x1x1x128xf32, #tpu.memory_space<vmem>>, %arg6: memref<1x1x1x128xf32, #tpu.memory_space<vmem>>) attributes {dimension_semantics = [#tpu.dimension_semantics<parallel>, #tpu.dimension_semantics<parallel>], iteration_bounds = array<i64: 2, 1>, scalar_prefetch = 0 : i64, scratch_operands = 0 : i64, tpu.core_type = #tpu.core_type<tc>, window_params = [{transform_indices = @transform_0, window_bounds = array<i64: 1, 1, 4096, 128>}, {pipeline_mode = #tpu.pipeline_mode<synchronous>, transform_indices = @transform_1, window_bounds = array<i64: 128, 128>}, {transform_indices = @transform_2, window_bounds = array<i64: 1, 1, 4096, 128>}, {transform_indices = @transform_3, window_bounds = array<i64: 1, 1, 1, 128>}, {transform_indices = @transform_4, window_bounds = array<i64: 1, 1, 1, 128>}]} {
    %c0 = arith.constant 0 : index
    %c0_0 = arith.constant 0 : index
    %0 = vector.load %arg3[%c0, %c0_0] : memref<128x128xbf16, #tpu.memory_space<vmem>>, vector<128x128xbf16>
    %cst = arith.constant 0.000000e+00 : f32
    %1 = vector.broadcast %cst : f32 to vector<1x128xf32>
    %cst_1 = arith.constant 0.000000e+00 : f32
    %2 = vector.broadcast %cst_1 : f32 to vector<1x128xf32>
    %c0_2 = arith.constant 0 : index
    %c0_3 = arith.constant 0 : index
    %c0_4 = arith.constant 0 : index
    %c0_5 = arith.constant 0 : index
    %3 = vector.load %arg2[%c0_2, %c0_3, %c0_4, %c0_5] : memref<1x1x4096x128xbf16, #tpu.memory_space<vmem>>, vector<1x1x512x128xbf16>
    %4 = vector.shape_cast %3 : vector<1x1x512x128xbf16> to vector<512x128xbf16>
    %cst_6 = arith.constant dense<0.000000e+00> : vector<512x128xf32>
    %5 = tpu.matmul %4, %0, %cst_6 {dimension_numbers = #tpu.dot_dimension_numbers<[1], [0], [0], [1], [0, 0, 1, 1], [], []>} : vector<512x128xbf16>, vector<128x128xbf16>, vector<512x128xf32> -> vector<512x128xf32>
    %6 = arith.truncf %5 : vector<512x128xf32> to vector<512x128xbf16>
    %c0_7 = arith.constant 0 : index
    %c0_8 = arith.constant 0 : index
    %c0_9 = arith.constant 0 : index
    %c0_10 = arith.constant 0 : index
    %7 = vector.load %arg4[%c0_7, %c0_8, %c0_9, %c0_10] : memref<1x1x4096x128xbf16, #tpu.memory_space<vmem>>, vector<1x1x512x128xbf16>
    %8 = vector.shape_cast %7 : vector<1x1x512x128xbf16> to vector<512x128xbf16>
    %9 = vector.shape_cast %6 : vector<512x128xbf16> to vector<1x1x512x128xbf16>
    tpu.vector_store %arg4[%c0_7, %c0_8, %c0_9, %c0_10], %9 {strides = array<i32>} : memref<1x1x4096x128xbf16, #tpu.memory_space<vmem>>, vector<1x1x512x128xbf16>,
    %cst_11 = arith.constant dense<0.000000e+00> : vector<128xf32>
    %10 = vector.multi_reduction <add>, %5, %cst_11 [0] : vector<512x128xf32> to vector<128xf32>
    %11 = vector.shape_cast %10 : vector<128xf32> to vector<1x128xf32>
    %12 = arith.addf %1, %11 : vector<1x128xf32>
    %13 = arith.mulf %5, %5 : vector<512x128xf32>
    %cst_12 = arith.constant dense<0.000000e+00> : vector<128xf32>
    %14 = vector.multi_reduction <add>, %13, %cst_12 [0] : vector<512x128xf32> to vector<128xf32>
    %15 = vector.shape_cast %14 : vector<128xf32> to vector<1x128xf32>
    %16 = arith.addf %2, %15 : vector<1x128xf32>
    %c0_13 = arith.constant 0 : index
    %c0_14 = arith.constant 0 : index
    %c512 = arith.constant 512 : index
    %c0_15 = arith.constant 0 : index
    %17 = vector.load %arg2[%c0_13, %c0_14, %c512, %c0_15] : memref<1x1x4096x128xbf16, #tpu.memory_space<vmem>>, vector<1x1x512x128xbf16>
    %18 = vector.shape_cast %17 : vector<1x1x512x128xbf16> to vector<512x128xbf16>
    %cst_16 = arith.constant dense<0.000000e+00> : vector<512x128xf32>
    %19 = tpu.matmul %18, %0, %cst_16 {dimension_numbers = #tpu.dot_dimension_numbers<[1], [0], [0], [1], [0, 0, 1, 1], [], []>} : vector<512x128xbf16>, vector<128x128xbf16>, vector<512x128xf32> -> vector<512x128xf32>
    %20 = arith.truncf %19 : vector<512x128xf32> to vector<512x128xbf16>
    %c0_17 = arith.constant 0 : index
    %c0_18 = arith.constant 0 : index
    %c512_19 = arith.constant 512 : index
    %c0_20 = arith.constant 0 : index
    %21 = vector.load %arg4[%c0_17, %c0_18, %c512_19, %c0_20] : memref<1x1x4096x128xbf16, #tpu.memory_space<vmem>>, vector<1x1x512x128xbf16>
    %22 = vector.shape_cast %21 : vector<1x1x512x128xbf16> to vector<512x128xbf16>
    %23 = vector.shape_cast %20 : vector<512x128xbf16> to vector<1x1x512x128xbf16>
    tpu.vector_store %arg4[%c0_17, %c0_18, %c512_19, %c0_20], %23 {strides = array<i32>} : memref<1x1x4096x128xbf16, #tpu.memory_space<vmem>>, vector<1x1x512x128xbf16>,
    %cst_21 = arith.constant dense<0.000000e+00> : vector<128xf32>
    %24 = vector.multi_reduction <add>, %19, %cst_21 [0] : vector<512x128xf32> to vector<128xf32>
    %25 = vector.shape_cast %24 : vector<128xf32> to vector<1x128xf32>
    %26 = arith.addf %12, %25 : vector<1x128xf32>
    %27 = arith.mulf %19, %19 : vector<512x128xf32>
    %cst_22 = arith.constant dense<0.000000e+00> : vector<128xf32>
    %28 = vector.multi_reduction <add>, %27, %cst_22 [0] : vector<512x128xf32> to vector<128xf32>
    %29 = vector.shape_cast %28 : vector<128xf32> to vector<1x128xf32>
    %30 = arith.addf %16, %29 : vector<1x128xf32>
    %c0_23 = arith.constant 0 : index
    %c0_24 = arith.constant 0 : index
    %c1024 = arith.constant 1024 : index
    %c0_25 = arith.constant 0 : index
    %31 = vector.load %arg2[%c0_23, %c0_24, %c1024, %c0_25] : memref<1x1x4096x128xbf16, #tpu.memory_space<vmem>>, vector<1x1x512x128xbf16>
    %32 = vector.shape_cast %31 : vector<1x1x512x128xbf16> to vector<512x128xbf16>
    %cst_26 = arith.constant dense<0.000000e+00> : vector<512x128xf32>
    %33 = tpu.matmul %32, %0, %cst_26 {dimension_numbers = #tpu.dot_dimension_numbers<[1], [0], [0], [1], [0, 0, 1, 1], [], []>} : vector<512x128xbf16>, vector<128x128xbf16>, vector<512x128xf32> -> vector<512x128xf32>
    %34 = arith.truncf %33 : vector<512x128xf32> to vector<512x128xbf16>
    %c0_27 = arith.constant 0 : index
    %c0_28 = arith.constant 0 : index
    %c1024_29 = arith.constant 1024 : index
    %c0_30 = arith.constant 0 : index
    %35 = vector.load %arg4[%c0_27, %c0_28, %c1024_29, %c0_30] : memref<1x1x4096x128xbf16, #tpu.memory_space<vmem>>, vector<1x1x512x128xbf16>
    %36 = vector.shape_cast %35 : vector<1x1x512x128xbf16> to vector<512x128xbf16>
    %37 = vector.shape_cast %34 : vector<512x128xbf16> to vector<1x1x512x128xbf16>
    tpu.vector_store %arg4[%c0_27, %c0_28, %c1024_29, %c0_30], %37 {strides = array<i32>} : memref<1x1x4096x128xbf16, #tpu.memory_space<vmem>>, vector<1x1x512x128xbf16>,
    %cst_31 = arith.constant dense<0.000000e+00> : vector<128xf32>
    %38 = vector.multi_reduction <add>, %33, %cst_31 [0] : vector<512x128xf32> to vector<128xf32>
    %39 = vector.shape_cast %38 : vector<128xf32> to vector<1x128xf32>
    %40 = arith.addf %26, %39 : vector<1x128xf32>
    %41 = arith.mulf %33, %33 : vector<512x128xf32>
    %cst_32 = arith.constant dense<0.000000e+00> : vector<128xf32>
    %42 = vector.multi_reduction <add>, %41, %cst_32 [0] : vector<512x128xf32> to vector<128xf32>
    %43 = vector.shape_cast %42 : vector<128xf32> to vector<1x128xf32>
    %44 = arith.addf %30, %43 : vector<1x128xf32>
    %c0_33 = arith.constant 0 : index
    %c0_34 = arith.constant 0 : index
    %c1536 = arith.constant 1536 : index
    %c0_35 = arith.constant 0 : index
    %45 = vector.load %arg2[%c0_33, %c0_34, %c1536, %c0_35] : memref<1x1x4096x128xbf16, #tpu.memory_space<vmem>>, vector<1x1x512x128xbf16>
    %46 = vector.shape_cast %45 : vector<1x1x512x128xbf16> to vector<512x128xbf16>
    %cst_36 = arith.constant dense<0.000000e+00> : vector<512x128xf32>
    %47 = tpu.matmul %46, %0, %cst_36 {dimension_numbers = #tpu.dot_dimension_numbers<[1], [0], [0], [1], [0, 0, 1, 1], [], []>} : vector<512x128xbf16>, vector<128x128xbf16>, vector<512x128xf32> -> vector<512x128xf32>
    %48 = arith.truncf %47 : vector<512x128xf32> to vector<512x128xbf16>
    %c0_37 = arith.constant 0 : index
    %c0_38 = arith.constant 0 : index
    %c1536_39 = arith.constant 1536 : index
    %c0_40 = arith.constant 0 : index
    %49 = vector.load %arg4[%c0_37, %c0_38, %c1536_39, %c0_40] : memref<1x1x4096x128xbf16, #tpu.memory_space<vmem>>, vector<1x1x512x128xbf16>
    %50 = vector.shape_cast %49 : vector<1x1x512x128xbf16> to vector<512x128xbf16>
    %51 = vector.shape_cast %48 : vector<512x128xbf16> to vector<1x1x512x128xbf16>
    tpu.vector_store %arg4[%c0_37, %c0_38, %c1536_39, %c0_40], %51 {strides = array<i32>} : memref<1x1x4096x128xbf16, #tpu.memory_space<vmem>>, vector<1x1x512x128xbf16>,
    %cst_41 = arith.constant dense<0.000000e+00> : vector<128xf32>
    %52 = vector.multi_reduction <add>, %47, %cst_41 [0] : vector<512x128xf32> to vector<128xf32>
    %53 = vector.shape_cast %52 : vector<128xf32> to vector<1x128xf32>
    %54 = arith.addf %40, %53 : vector<1x128xf32>
    %55 = arith.mulf %47, %47 : vector<512x128xf32>
    %cst_42 = arith.constant dense<0.000000e+00> : vector<128xf32>
    %56 = vector.multi_reduction <add>, %55, %cst_42 [0] : vector<512x128xf32> to vector<128xf32>
    %57 = vector.shape_cast %56 : vector<128xf32> to vector<1x128xf32>
    %58 = arith.addf %44, %57 : vector<1x128xf32>
    %c0_43 = arith.constant 0 : index
    %c0_44 = arith.constant 0 : index
    %c2048 = arith.constant 2048 : index
    %c0_45 = arith.constant 0 : index
    %59 = vector.load %arg2[%c0_43, %c0_44, %c2048, %c0_45] : memref<1x1x4096x128xbf16, #tpu.memory_space<vmem>>, vector<1x1x512x128xbf16>
    %60 = vector.shape_cast %59 : vector<1x1x512x128xbf16> to vector<512x128xbf16>
    %cst_46 = arith.constant dense<0.000000e+00> : vector<512x128xf32>
    %61 = tpu.matmul %60, %0, %cst_46 {dimension_numbers = #tpu.dot_dimension_numbers<[1], [0], [0], [1], [0, 0, 1, 1], [], []>} : vector<512x128xbf16>, vector<128x128xbf16>, vector<512x128xf32> -> vector<512x128xf32>
    %62 = arith.truncf %61 : vector<512x128xf32> to vector<512x128xbf16>
    %c0_47 = arith.constant 0 : index
    %c0_48 = arith.constant 0 : index
    %c2048_49 = arith.constant 2048 : index
    %c0_50 = arith.constant 0 : index
    %63 = vector.load %arg4[%c0_47, %c0_48, %c2048_49, %c0_50] : memref<1x1x4096x128xbf16, #tpu.memory_space<vmem>>, vector<1x1x512x128xbf16>
    %64 = vector.shape_cast %63 : vector<1x1x512x128xbf16> to vector<512x128xbf16>
    %65 = vector.shape_cast %62 : vector<512x128xbf16> to vector<1x1x512x128xbf16>
    tpu.vector_store %arg4[%c0_47, %c0_48, %c2048_49, %c0_50], %65 {strides = array<i32>} : memref<1x1x4096x128xbf16, #tpu.memory_space<vmem>>, vector<1x1x512x128xbf16>,
    %cst_51 = arith.constant dense<0.000000e+00> : vector<128xf32>
    %66 = vector.multi_reduction <add>, %61, %cst_51 [0] : vector<512x128xf32> to vector<128xf32>
    %67 = vector.shape_cast %66 : vector<128xf32> to vector<1x128xf32>
    %68 = arith.addf %54, %67 : vector<1x128xf32>
    %69 = arith.mulf %61, %61 : vector<512x128xf32>
    %cst_52 = arith.constant dense<0.000000e+00> : vector<128xf32>
    %70 = vector.multi_reduction <add>, %69, %cst_52 [0] : vector<512x128xf32> to vector<128xf32>
    %71 = vector.shape_cast %70 : vector<128xf32> to vector<1x128xf32>
    %72 = arith.addf %58, %71 : vector<1x128xf32>
    %c0_53 = arith.constant 0 : index
    %c0_54 = arith.constant 0 : index
    %c2560 = arith.constant 2560 : index
    %c0_55 = arith.constant 0 : index
    %73 = vector.load %arg2[%c0_53, %c0_54, %c2560, %c0_55] : memref<1x1x4096x128xbf16, #tpu.memory_space<vmem>>, vector<1x1x512x128xbf16>
    %74 = vector.shape_cast %73 : vector<1x1x512x128xbf16> to vector<512x128xbf16>
    %cst_56 = arith.constant dense<0.000000e+00> : vector<512x128xf32>
    %75 = tpu.matmul %74, %0, %cst_56 {dimension_numbers = #tpu.dot_dimension_numbers<[1], [0], [0], [1], [0, 0, 1, 1], [], []>} : vector<512x128xbf16>, vector<128x128xbf16>, vector<512x128xf32> -> vector<512x128xf32>
    %76 = arith.truncf %75 : vector<512x128xf32> to vector<512x128xbf16>
    %c0_57 = arith.constant 0 : index
    %c0_58 = arith.constant 0 : index
    %c2560_59 = arith.constant 2560 : index
    %c0_60 = arith.constant 0 : index
    %77 = vector.load %arg4[%c0_57, %c0_58, %c2560_59, %c0_60] : memref<1x1x4096x128xbf16, #tpu.memory_space<vmem>>, vector<1x1x512x128xbf16>
    %78 = vector.shape_cast %77 : vector<1x1x512x128xbf16> to vector<512x128xbf16>
    %79 = vector.shape_cast %76 : vector<512x128xbf16> to vector<1x1x512x128xbf16>
    tpu.vector_store %arg4[%c0_57, %c0_58, %c2560_59, %c0_60], %79 {strides = array<i32>} : memref<1x1x4096x128xbf16, #tpu.memory_space<vmem>>, vector<1x1x512x128xbf16>,
    %cst_61 = arith.constant dense<0.000000e+00> : vector<128xf32>
    %80 = vector.multi_reduction <add>, %75, %cst_61 [0] : vector<512x128xf32> to vector<128xf32>
    %81 = vector.shape_cast %80 : vector<128xf32> to vector<1x128xf32>
    %82 = arith.addf %68, %81 : vector<1x128xf32>
    %83 = arith.mulf %75, %75 : vector<512x128xf32>
    %cst_62 = arith.constant dense<0.000000e+00> : vector<128xf32>
    %84 = vector.multi_reduction <add>, %83, %cst_62 [0] : vector<512x128xf32> to vector<128xf32>
    %85 = vector.shape_cast %84 : vector<128xf32> to vector<1x128xf32>
    %86 = arith.addf %72, %85 : vector<1x128xf32>
    %c0_63 = arith.constant 0 : index
    %c0_64 = arith.constant 0 : index
    %c3072 = arith.constant 3072 : index
    %c0_65 = arith.constant 0 : index
    %87 = vector.load %arg2[%c0_63, %c0_64, %c3072, %c0_65] : memref<1x1x4096x128xbf16, #tpu.memory_space<vmem>>, vector<1x1x512x128xbf16>
    %88 = vector.shape_cast %87 : vector<1x1x512x128xbf16> to vector<512x128xbf16>
    %cst_66 = arith.constant dense<0.000000e+00> : vector<512x128xf32>
    %89 = tpu.matmul %88, %0, %cst_66 {dimension_numbers = #tpu.dot_dimension_numbers<[1], [0], [0], [1], [0, 0, 1, 1], [], []>} : vector<512x128xbf16>, vector<128x128xbf16>, vector<512x128xf32> -> vector<512x128xf32>
    %90 = arith.truncf %89 : vector<512x128xf32> to vector<512x128xbf16>
    %c0_67 = arith.constant 0 : index
    %c0_68 = arith.constant 0 : index
    %c3072_69 = arith.constant 3072 : index
    %c0_70 = arith.constant 0 : index
    %91 = vector.load %arg4[%c0_67, %c0_68, %c3072_69, %c0_70] : memref<1x1x4096x128xbf16, #tpu.memory_space<vmem>>, vector<1x1x512x128xbf16>
    %92 = vector.shape_cast %91 : vector<1x1x512x128xbf16> to vector<512x128xbf16>
    %93 = vector.shape_cast %90 : vector<512x128xbf16> to vector<1x1x512x128xbf16>
    tpu.vector_store %arg4[%c0_67, %c0_68, %c3072_69, %c0_70], %93 {strides = array<i32>} : memref<1x1x4096x128xbf16, #tpu.memory_space<vmem>>, vector<1x1x512x128xbf16>,
    %cst_71 = arith.constant dense<0.000000e+00> : vector<128xf32>
    %94 = vector.multi_reduction <add>, %89, %cst_71 [0] : vector<512x128xf32> to vector<128xf32>
    %95 = vector.shape_cast %94 : vector<128xf32> to vector<1x128xf32>
    %96 = arith.addf %82, %95 : vector<1x128xf32>
    %97 = arith.mulf %89, %89 : vector<512x128xf32>
    %cst_72 = arith.constant dense<0.000000e+00> : vector<128xf32>
    %98 = vector.multi_reduction <add>, %97, %cst_72 [0] : vector<512x128xf32> to vector<128xf32>
    %99 = vector.shape_cast %98 : vector<128xf32> to vector<1x128xf32>
    %100 = arith.addf %86, %99 : vector<1x128xf32>
    %c0_73 = arith.constant 0 : index
    %c0_74 = arith.constant 0 : index
    %c3584 = arith.constant 3584 : index
    %c0_75 = arith.constant 0 : index
    %101 = vector.load %arg2[%c0_73, %c0_74, %c3584, %c0_75] : memref<1x1x4096x128xbf16, #tpu.memory_space<vmem>>, vector<1x1x512x128xbf16>
    %102 = vector.shape_cast %101 : vector<1x1x512x128xbf16> to vector<512x128xbf16>
    %cst_76 = arith.constant dense<0.000000e+00> : vector<512x128xf32>
    %103 = tpu.matmul %102, %0, %cst_76 {dimension_numbers = #tpu.dot_dimension_numbers<[1], [0], [0], [1], [0, 0, 1, 1], [], []>} : vector<512x128xbf16>, vector<128x128xbf16>, vector<512x128xf32> -> vector<512x128xf32>
    %104 = arith.truncf %103 : vector<512x128xf32> to vector<512x128xbf16>
    %c0_77 = arith.constant 0 : index
    %c0_78 = arith.constant 0 : index
    %c3584_79 = arith.constant 3584 : index
    %c0_80 = arith.constant 0 : index
    %105 = vector.load %arg4[%c0_77, %c0_78, %c3584_79, %c0_80] : memref<1x1x4096x128xbf16, #tpu.memory_space<vmem>>, vector<1x1x512x128xbf16>
    %106 = vector.shape_cast %105 : vector<1x1x512x128xbf16> to vector<512x128xbf16>
    %107 = vector.shape_cast %104 : vector<512x128xbf16> to vector<1x1x512x128xbf16>
    tpu.vector_store %arg4[%c0_77, %c0_78, %c3584_79, %c0_80], %107 {strides = array<i32>} : memref<1x1x4096x128xbf16, #tpu.memory_space<vmem>>, vector<1x1x512x128xbf16>,
    %cst_81 = arith.constant dense<0.000000e+00> : vector<128xf32>
    %108 = vector.multi_reduction <add>, %103, %cst_81 [0] : vector<512x128xf32> to vector<128xf32>
    %109 = vector.shape_cast %108 : vector<128xf32> to vector<1x128xf32>
    %110 = arith.addf %96, %109 : vector<1x128xf32>
    %111 = arith.mulf %103, %103 : vector<512x128xf32>
    %cst_82 = arith.constant dense<0.000000e+00> : vector<128xf32>
    %112 = vector.multi_reduction <add>, %111, %cst_82 [0] : vector<512x128xf32> to vector<128xf32>
    %113 = vector.shape_cast %112 : vector<128xf32> to vector<1x128xf32>
    %114 = arith.addf %100, %113 : vector<1x128xf32>
    %c0_83 = arith.constant 0 : index
    %c0_84 = arith.constant 0 : index
    %c0_85 = arith.constant 0 : index
    %c0_86 = arith.constant 0 : index
    %115 = vector.load %arg5[%c0_83, %c0_84, %c0_85, %c0_86] : memref<1x1x1x128xf32, #tpu.memory_space<vmem>>, vector<1x1x1x128xf32>
    %116 = vector.shape_cast %115 : vector<1x1x1x128xf32> to vector<1x128xf32>
    %117 = vector.shape_cast %110 : vector<1x128xf32> to vector<1x1x1x128xf32>
    tpu.vector_store %arg5[%c0_83, %c0_84, %c0_85, %c0_86], %117 {strides = array<i32>} : memref<1x1x1x128xf32, #tpu.memory_space<vmem>>, vector<1x1x1x128xf32>,
    %c0_87 = arith.constant 0 : index
    %c0_88 = arith.constant 0 : index
    %c0_89 = arith.constant 0 : index
    %c0_90 = arith.constant 0 : index
    %118 = vector.load %arg6[%c0_87, %c0_88, %c0_89, %c0_90] : memref<1x1x1x128xf32, #tpu.memory_space<vmem>>, vector<1x1x1x128xf32>
    %119 = vector.shape_cast %118 : vector<1x1x1x128xf32> to vector<1x128xf32>
    %120 = vector.shape_cast %114 : vector<1x128xf32> to vector<1x1x1x128xf32>
    tpu.vector_store %arg6[%c0_87, %c0_88, %c0_89, %c0_90], %120 {strides = array<i32>} : memref<1x1x1x128xf32, #tpu.memory_space<vmem>>, vector<1x1x1x128xf32>,
    return
  }
  func.func @transform_0(%arg0: i32, %arg1: i32) -> (i32, i32, i32, i32) {
    %c0_i32 = arith.constant 0 : i32
    %c0_i32_0 = arith.constant 0 : i32
    %c0_i32_1 = arith.constant 0 : i32
    return %arg0, %arg1, %c0_i32, %c0_i32_0 : i32, i32, i32, i32
  }
  func.func @transform_1(%arg0: i32, %arg1: i32) -> (i32, i32) {
    %c0_i32 = arith.constant 0 : i32
    %c0_i32_0 = arith.constant 0 : i32
    %c0_i32_1 = arith.constant 0 : i32
    return %c0_i32, %c0_i32_0 : i32, i32
  }
  func.func @transform_2(%arg0: i32, %arg1: i32) -> (i32, i32, i32, i32) {
    %c0_i32 = arith.constant 0 : i32
    %c0_i32_0 = arith.constant 0 : i32
    %c0_i32_1 = arith.constant 0 : i32
    return %arg0, %arg1, %c0_i32, %c0_i32_0 : i32, i32, i32, i32
  }
  func.func @transform_3(%arg0: i32, %arg1: i32) -> (i32, i32, i32, i32) {
    %c0_i32 = arith.constant 0 : i32
    %c0_i32_0 = arith.constant 0 : i32
    %c0_i32_1 = arith.constant 0 : i32
    return %arg0, %arg1, %c0_i32, %c0_i32_0 : i32, i32, i32, i32
  }
  func.func @transform_4(%arg0: i32, %arg1: i32) -> (i32, i32, i32, i32) {
    %c0_i32 = arith.constant 0 : i32
    %c0_i32_0 = arith.constant 0 : i32
    %c0_i32_1 = arith.constant 0 : i32
    return %arg0, %arg1, %c0_i32, %c0_i32_0 : i32, i32, i32, i32
  }
}

</mosaic_0001>

<bundles_post_ra>
// kernel: tpu_custom_call.1
= control target key start
LH: loop header
LB: loop body
LE: loop exit
PB: predicated region body
PF: predicated region fallthrough
CT: control target
= control target key end

     0   :  { %s15660_s0 = inlined_call_operand.hbm [shape: bf16[2,1,4096,128], index: 0, kind: input, shape index: {}]   ;;  %s15661_s1 = inlined_call_operand.hbm [shape: bf16[128,128], index: 1, kind: input, shape index: {}]   ;;  %s15662_s2 = inlined_call_operand.hbm [shape: bf16[2,1,4096,128], index: 2, kind: output, shape index: {0}]   ;;  %s15663_s3 = inlined_call_operand.hbm [shape: f32[2,1,1,128], index: 3, kind: output, shape index: {1}]   ;;  %s15664_s4 = inlined_call_operand.hbm [shape: f32[2,1,1,128], index: 4, kind: output, shape index: {2}]  }
   0x1   :  { %15669 = sst [smem:[#allocation15_spill]] %s15661_s1 }
   0x2   :  { %10 = vsyncpa [#allocation3], 0 }
   0x3   :  { %12 = vsyncpa [#allocation3 + $0x1], 0 }
   0x4   :  { %13 = vsyncpa [#allocation6], 0 }
   0x5   :  { %14 = vsyncpa [#allocation4], 0 }
   0x6   :  { %16 = vsyncpa [#allocation4 + $0x1], 0 }
   0x7   :  { %17 = vsyncpa [#allocation9], 0 }
   0x8   :  { %19 = vsyncpa [#allocation9 + $0x1], 0  ;;  %s13493_s15 = smov 0   ;;  %s13495_s16 = smov 0  }
   0x9   :  { %s13497_s17 = smov 0   ;;  %s13499_s18 = smov 0  }
   0xa   :  { %s13501_s19 = smov 0   ;;  %s13503_s20 = smov 0  }
   0xb LB: > { %s13524_s21 = sadd.s32 4294967295, %s13457_s20   ;;  %s15665_s22 = sadd.s32 4294967294, %s13457_s20   ;;  %s13457_s20 = sphi %s13503_s20, %s25_s20   ;;  %s13453_s19 = sphi %s13501_s19, %s15690_s19   ;;  %s13449_s18 = sphi %s13499_s18, %s15689_s18   ;;  %s13445_s17 = sphi %s13497_s17, %s15688_s17   ;;  %s13441_s16 = sphi %s13495_s16, %s15687_s16   ;;  %s13437_s15 = sphi %s13493_s15, %s15686_s15  }
   0xc   : > { %p59_p0 = scmp.ne.s32.totalorder %s13441_s16, %s13437_s15  ;;  %p15668_p1 = scmp.eq.s32.totalorder %s13524_s21, 0 }
   0xd   : > { %p112_p3 = scmp.eq.s32.totalorder %s15665_s22, 1  ;;  %p9094_p5 = scmp.ge.s32.totalorder %s13457_s20, 1 }
   0xe   : > { %p13535_p4 = por %p15668_p1, %p59_p0  ;;  %p175_p7 = scmp.lt.s32.totalorder %s13457_s20, 3 }
   0xf   : > { %p13540_p6 = por %p112_p3, %p59_p0  ;;  %s13459_s26 = smov [#allocation5]  }
  0x10   : > { %p13545_p8 = pnand %p9094_p5, %p175_p7  ;;  %s187_s27 = sshll.u32 %s13459_s26, 4  ;;  %s188_s27 = int_to_ptr.vmem [resolvable:$true] %s187_s27 }
  0x11   : > { %s15671_s24 = scalar_select %p13540_p6, 1, 0 }
  0x12   : > { %p12908_p9 = pneg %p13545_p8  ;;  %s37_s29 = sadd.s32 1, %s13453_s19 }
  0x13   : > { %s13274_s30 = scalar_lea.vmem %s188_s27, 1024  ;;  %p13282_p5 = scmp.lt.s32.totalorder %s188_s27, %s188_s27 }
  0x14   : > { %p13554_p11 = pnand %p12908_p9, %p15668_p1  ;;  %p13275_p13 = scmp.ne.s32.totalorder %s188_s27, %s13274_s30 }
  0x15   : > { %p13283_p7 = scmp.lt.s32.totalorder %s13274_s30, %s13274_s30 }
  0x16   : > { %p13265_p12 = pneg %p13554_p11 }
  0x17   : > { %p13284_p2 = por %p13283_p7, %p13282_p5 }
  0x18   : > { %p13277_p0 = pnand %p13275_p13, %p13265_p12 }
  0x1a   : > { %p13278_p3 = pneg %p13277_p0 }
  0x1c   : > { %p13285_p6 = pnand %p13284_p2, %p13278_p3 }
  0x1e   : > { %13288 = shalt.err (!%p13285_p6)
}
  0x1f   : > { %s15666_s5 = smov 64   ;;  %s15667_s6 = smov 4  }
  0x20   : > { %s15674_s1 = sld [smem:[#allocation15_spill]]  ;;  %p39_p2 = scmp.ge.s32.totalorder %s37_s29, 2 }
  0x21   : > { %s46_s9 = sadd.s32 1, %s13445_s17  ;;  %p53_p6 = scmp.ne.s32.totalorder %s13445_s17, %s13441_s16 }
  0x22   : > { %p54_p9 = scmp.eq.s32.totalorder %s13457_s20, 0  ;;  %s15692_s29 = smov (%p39_p2, %s37_s29), 0 }
  0x23   : > { %p15676_p13 = scmp.eq.s32.totalorder %s13524_s21, 1  ;;  %s41_s12 = ssub.s32 %s13453_s19, %s15692_s29 }
  0x24   : > { %p13575_p12 = por %p54_p9, %p53_p6  ;;  %p12927_p3 = scmp.lt.s32.totalorder %s13457_s20, 2 }
  0x25   : > { %p13581_p0 = por %p15676_p13, %p53_p6  ;;  %s201_s13 = sand.u32 1, %s13445_s17  }
  0x26   : > { %12911 = dma.hbm_to_vmem [thread:$0]  (!%p13554_p11), %s15674_s1, 1024, %s188_s27, [#allocation6], %s15666_s5, %s15666_s5, %s15667_s6  }
  0x27   : > { %p44_p11 = scmp.eq.s32.totalorder %s41_s12, 0  ;;  %s9097_s14 = sshll.u32 %s201_s13, 11 }
  0x28   : > { %s9887_s27 = sshll.u32 %s13453_s19, 15  ;;  %s205_s8 = scalar_lea.vmem [#allocation2], %s9097_s14 }
  0x29   : > { %s13590_s26 = scalar_select %p44_p11, %s13445_s17, %s46_s9  }
  0x2a   : > { %s213_s7 = scalar_lea.hbm %s15660_s0, %s9887_s27  ;;  %s214_s22 = sshll.u32 %s205_s8, 4  ;;  %s215_s22 = int_to_ptr.vmem [resolvable:$true] %s214_s22 }
  0x2b   : > { %p13598_p5 = pnand %p12927_p3, %p13575_p12  ;;  %s202_s6 = scalar_lea.sflag [#allocation3], %s201_s13 }
  0x2c   : > { %s13302_s12 = scalar_lea.vmem %s215_s22, 32768  ;;  %s13462_s9 = smov [#allocation2]  }
  0x2d   : > { %p13291_p7 = pneg %p13598_p5  ;;  %p13303_p2 = scmp.ne.s32.totalorder %s215_s22, %s13302_s12 }
  0x2e   : > { %s13307_s1 = sshll.u32 %s13462_s9, 4  ;;  %s13308_s1 = int_to_ptr.vmem [resolvable:$false] %s13307_s1 }
  0x2f   : > { %p13305_p6 = pnand %p13303_p2, %p13291_p7  ;;  %s13309_s27 = scalar_lea.vmem %s13308_s1, 65536 }
  0x30   : > { %p13310_p13 = scmp.lt.s32.totalorder %s215_s22, %s13308_s1  ;;  %p13311_p11 = scmp.lt.s32.totalorder %s13309_s27, %s13302_s12 }
  0x31   : > { %p13306_p9 = pneg %p13305_p6 }
  0x32   : > { %p13312_p10 = por %p13311_p11, %p13310_p13 }
  0x34   : > { %p13313_p1 = pnand %p13312_p10, %p13306_p9 }
  0x36   : > { %13316 = shalt.err (!%p13313_p1)
}
  0x37   : > { %s15679_s10 = smov 4   ;;  %s15680_s14 = smov 64  }
  0x38   : > { %12915 = dma.hbm_to_vmem [thread:$0]  (!%p13598_p5), %s213_s7, 32768, %s215_s22, %s202_s6, %s15680_s14, %s15680_s14, %s15679_s10  }
  0x39   : > { %226 = sbr.rel (%p13545_p8) target bundleno = 877 (0x36d), region = 28  ;;  %s13612_s13 = sand.u32 (!%p13545_p8), 1, %s13441_s16  }
  0x3a   : > { %s9101_s1 = sshll.u32 (!%p13545_p8), %s13612_s13, 11  ;;  %s229_s28 = scalar_lea.sflag (!%p13545_p8), [#allocation3], %s13612_s13 }
  0x3b   : > { %s13618_s30 = scalar_lea.vmem (!%p13545_p8), [#allocation2], %s9101_s1 }
  0x3e   : > { %13420 = dma.done.wait (%p13535_p4), %s229_s28, 32768  }
  0x3f   : > { %13422 = vsyncadd (%p13535_p4), %s229_s28, 4294934528  ;;  %p15681_p1 = scmp.eq.s32.totalorder %s13524_s21, 0 }
  0x41   : > { %13424 = dma.done.wait (%p15681_p1), [#allocation6], 1024   ;;  %p15682_p8 = pmov %p15681_p1 }
  0x42   : > { %v13628_v0 = vld [vmem:[#allocation5 + $0x38] sm:$0xff]   ;;  %v12984_v1 = vld [vmem:[#allocation5 + $0x30] sm:$0xff]   ;;  %v13634_v2 = vld [vmem:[#allocation5 + $0x28] sm:$0xff]   ;;  %s13814_s22 = scalar_lea.vmem [#allocation7], %s9101_s1  ;;  %s10400_s23 = sshll.u32 %s13449_s18, 15 }
  0x43   : > { %13426 = vsyncadd (%p15682_p8), [#allocation6], 4294966272  ;;  %12256 = vmatprep.subr.bf16.mxu0 %v13628_v0  ;;  %12336 = vmatprep.subr.bf16.mxu1 %v13628_v0  ;;  %v13636_v3 = vld [vmem:[#allocation5 + $0x20] sm:$0xff]   ;;  %v13646_v6 = vld [vmem:[#allocation5 + $0x18] sm:$0xff]   ;;  %s8912_s25 = sshll.u32 %s13814_s22, 4  ;;  %s15508_s7 = scalar_lea.hbm %s15662_s2, %s10400_s23  ;;  %s15510_s25 = int_to_ptr.vmem [resolvable:$true] %s8912_s25 }
  0x44   : > { %12257 = vmatpush3.bf16.msra.mxu0 %v13628_v0  ;;  %12337 = vmatpush3.bf16.msra.mxu1 %v13628_v0  ;;  %v12991_v4 = vld [vmem:[%s13618_s30] sm:$0xff]   ;;  %v13652_v7 = vld [vmem:[#allocation5 + $0x10] sm:$0xff]   ;;  %v13658_v8 = vld [vmem:[#allocation5 + $0x8] sm:$0xff]   ;;  %s8889_s8 = scalar_lea.sflag [#allocation4], %s13612_s13  ;;  %s13317_s12 = scalar_lea.vmem %s15510_s25, 32768 }
  0x45   : > { %12258 = vmatprep.subr.bf16.mxu0 %v12984_v1  ;;  %12338 = vmatprep.subr.bf16.mxu1 %v12984_v1  ;;  %v12992_v5 = vld [vmem:[%s13618_s30 + $0x100] sm:$0xff]   ;;  %v12993_v10 = vld [vmem:[%s13618_s30 + $0x8] sm:$0xff]   ;;  %v12995_v12 = vld [vmem:[%s13618_s30 + $0x10] sm:$0xff]   ;;  %p13318_p4 = scmp.ne.s32.totalorder %s15510_s25, %s13317_s12  ;;  %s13463_s9 = smov [#allocation7]  }
  0x46   : > { %12272 = vmatprep.mubr.bf16.mxu0 %v12991_v4  ;;  %12352 = vmatprep.mubr.bf16.mxu1 %v12992_v5  ;;  %v13664_v9 = vld [vmem:[#allocation5] sm:$0xff]   ;;  %v12994_v11 = vld [vmem:[%s13618_s30 + $0x108] sm:$0xff]   ;;  %v12996_v13 = vld [vmem:[%s13618_s30 + $0x110] sm:$0xff]   ;;  %s13321_s27 = sshll.u32 %s13463_s9, 4  ;;  %s13322_s27 = int_to_ptr.vmem [resolvable:$false] %s13321_s27 }
  0x47   : > { %v12997_v14 = vld [vmem:[%s13618_s30 + $0x18] sm:$0xff]   ;;  %v12999_v16 = vld [vmem:[%s13618_s30 + $0x20] sm:$0xff]   ;;  %v13001_v18 = vld [vmem:[%s13618_s30 + $0x28] sm:$0xff]   ;;  %p13319_p10 = pnand %p13318_p4, %p13581_p0  ;;  %s13323_s10 = scalar_lea.vmem %s13322_s27, 65536 }
  0x48   : > { %12259 = vmatpush3.bf16.msra.mxu0 %v12984_v1  ;;  %12339 = vmatpush3.bf16.msra.mxu1 %v12984_v1  ;;  %v12998_v15 = vld [vmem:[%s13618_s30 + $0x118] sm:$0xff]   ;;  %v13000_v17 = vld [vmem:[%s13618_s30 + $0x120] sm:$0xff]   ;;  %v13002_v19 = vld [vmem:[%s13618_s30 + $0x128] sm:$0xff]   ;;  %p13324_p3 = scmp.lt.s32.totalorder %s15510_s25, %s13322_s27  ;;  %p13325_p5 = scmp.lt.s32.totalorder %s13323_s10, %s13317_s12 }
  0x49   : > { %12260 = vmatprep.subr.bf16.mxu0 %v13634_v2  ;;  %12340 = vmatprep.subr.bf16.mxu1 %v13634_v2  ;;  %v13003_v20 = vld [vmem:[%s13618_s30 + $0x30] sm:$0xff]   ;;  %v13005_v22 = vld [vmem:[%s13618_s30 + $0x38] sm:$0xff]   ;;  %v13007_v24 = vld [vmem:[%s13618_s30 + $0x40] sm:$0xff]   ;;  %p13320_p12 = pneg %p13319_p10 }
  0x4a   : > { %v13004_v21 = vld [vmem:[%s13618_s30 + $0x130] sm:$0xff]   ;;  %v13006_v23 = vld [vmem:[%s13618_s30 + $0x138] sm:$0xff]   ;;  %v13008_v25 = vld [vmem:[%s13618_s30 + $0x140] sm:$0xff]   ;;  %p13326_p7 = por %p13325_p5, %p13324_p3 }
  0x4b   : > { %v13009_v26 = vld [vmem:[%s13618_s30 + $0x48] sm:$0xff]   ;;  %v13011_v28 = vld [vmem:[%s13618_s30 + $0x50] sm:$0xff]   ;;  %v13013_v30 = vld [vmem:[%s13618_s30 + $0x58] sm:$0xff]  }
  0x4c   : > { %12261 = vmatpush3.bf16.msra.mxu0 %v13634_v2  ;;  %12341 = vmatpush3.bf16.msra.mxu1 %v13634_v2  ;;  %v13010_v27 = vld [vmem:[%s13618_s30 + $0x148] sm:$0xff]   ;;  %v13012_v29 = vld [vmem:[%s13618_s30 + $0x150] sm:$0xff]   ;;  %v13014_v31 = vld [vmem:[%s13618_s30 + $0x158] sm:$0xff]   ;;  %p13327_p2 = pnand %p13326_p7, %p13320_p12 }
  0x4d   : > { %12262 = vmatprep.subr.bf16.mxu0 %v13636_v3  ;;  %12342 = vmatprep.subr.bf16.mxu1 %v13636_v3  ;;  %v13015_v32 = vld [vmem:[%s13618_s30 + $0x60] sm:$0xff]   ;;  %v13017_v34 = vld [vmem:[%s13618_s30 + $0x68] sm:$0xff]   ;;  %v13019_v36 = vld [vmem:[%s13618_s30 + $0x70] sm:$0xff]  }
  0x4e   : > { %v13016_v33 = vld [vmem:[%s13618_s30 + $0x160] sm:$0xff]   ;;  %v13018_v35 = vld [vmem:[%s13618_s30 + $0x168] sm:$0xff]   ;;  %v13020_v37 = vld [vmem:[%s13618_s30 + $0x170] sm:$0xff]  }
  0x4f   : > { %v13021_v38 = vld [vmem:[%s13618_s30 + $0x78] sm:$0xff]   ;;  %v13023_v40 = vld [vmem:[%s13618_s30 + $0x80] sm:$0xff]   ;;  %v13025_v42 = vld [vmem:[%s13618_s30 + $0x88] sm:$0xff]  }
  0x50   : > { %12263 = vmatpush3.bf16.msra.mxu0 %v13636_v3  ;;  %12343 = vmatpush3.bf16.msra.mxu1 %v13636_v3  ;;  %v13022_v39 = vld [vmem:[%s13618_s30 + $0x178] sm:$0xff]   ;;  %v13024_v41 = vld [vmem:[%s13618_s30 + $0x180] sm:$0xff]   ;;  %v13026_v43 = vld [vmem:[%s13618_s30 + $0x188] sm:$0xff]  }
  0x51   : > { %12264 = vmatprep.subr.bf16.mxu0 %v13646_v6  ;;  %12344 = vmatprep.subr.bf16.mxu1 %v13646_v6  ;;  %v13027_v44 = vld [vmem:[%s13618_s30 + $0x90] sm:$0xff]   ;;  %v13029_v46 = vld [vmem:[%s13618_s30 + $0x98] sm:$0xff]   ;;  %v13031_v48 = vld [vmem:[%s13618_s30 + $0xa0] sm:$0xff]  }
  0x52   : > { %v13028_v45 = vld [vmem:[%s13618_s30 + $0x190] sm:$0xff]   ;;  %v13030_v47 = vld [vmem:[%s13618_s30 + $0x198] sm:$0xff]   ;;  %v13032_v49 = vld [vmem:[%s13618_s30 + $0x1a0] sm:$0xff]  }
  0x53   : > { %v13033_v50 = vld [vmem:[%s13618_s30 + $0xa8] sm:$0xff]   ;;  %v13035_v52 = vld [vmem:[%s13618_s30 + $0xb0] sm:$0xff]   ;;  %v13037_v54 = vld [vmem:[%s13618_s30 + $0xb8] sm:$0xff]  }
  0x54   : > { %12265 = vmatpush3.bf16.msra.mxu0 %v13646_v6  ;;  %12345 = vmatpush3.bf16.msra.mxu1 %v13646_v6  ;;  %v13034_v51 = vld [vmem:[%s13618_s30 + $0x1a8] sm:$0xff]   ;;  %v13036_v53 = vld [vmem:[%s13618_s30 + $0x1b0] sm:$0xff]   ;;  %v13038_v55 = vld [vmem:[%s13618_s30 + $0x1b8] sm:$0xff]  }
  0x55   : > { %12266 = vmatprep.subr.bf16.mxu0 %v13652_v7  ;;  %12346 = vmatprep.subr.bf16.mxu1 %v13652_v7  ;;  %v13039_v56 = vld [vmem:[%s13618_s30 + $0xc0] sm:$0xff]   ;;  %v13041_v58 = vld [vmem:[%s13618_s30 + $0xc8] sm:$0xff]   ;;  %v13043_v60 = vld [vmem:[%s13618_s30 + $0xd0] sm:$0xff]  }
  0x56   : > { %v13040_v57 = vld [vmem:[%s13618_s30 + $0x1c0] sm:$0xff]   ;;  %v13042_v59 = vld [vmem:[%s13618_s30 + $0x1c8] sm:$0xff]   ;;  %v13044_v61 = vld [vmem:[%s13618_s30 + $0x1d0] sm:$0xff]  }
  0x57   : > { %v13045_v62 = vld [vmem:[%s13618_s30 + $0xd8] sm:$0xff]   ;;  %v13051_v4 = vld [vmem:[%s13618_s30 + $0xf0] sm:$0xff]  }
  0x58   : > { %12267 = vmatpush3.bf16.msra.mxu0 %v13652_v7  ;;  %12347 = vmatpush3.bf16.msra.mxu1 %v13652_v7  ;;  %v13046_v63 = vld [vmem:[%s13618_s30 + $0x1d8] sm:$0xff]   ;;  %v13052_v5 = vld [vmem:[%s13618_s30 + $0x1f0] sm:$0xff]  }
  0x59   : > { %12268 = vmatprep.subr.bf16.mxu0 %v13658_v8  ;;  %12348 = vmatprep.subr.bf16.mxu1 %v13658_v8 }
  0x5c   : > { %12269 = vmatpush3.bf16.msra.mxu0 %v13658_v8  ;;  %12349 = vmatpush3.bf16.msra.mxu1 %v13658_v8 }
  0x5d   : > { %12270 = vmatprep.subr.bf16.mxu0 %v13664_v9  ;;  %12350 = vmatprep.subr.bf16.mxu1 %v13664_v9 }
  0x60   : > { %12271 = vmatpush3.bf16.msra.mxu0 %v13664_v9  ;;  %12351 = vmatpush3.bf16.msra.mxu1 %v13664_v9 }
  0x61   : > { %12416 = vmatprep.subr.bf16.mxu0 %v13628_v0  ;;  %12496 = vmatprep.subr.bf16.mxu1 %v13628_v0 }
  0x63   : > { %12273 = vmatmul.mubr.bf16.vlgmr.msra.gmra.mxu0 %v12993_v10  ;;  %12353 = vmatmul.mubr.bf16.vlgmr.msra.gmra.mxu1 %v12994_v11  ;;  %v13057_v10 = vld [vmem:[%s13618_s30 + $0x208] sm:$0xff]  }
  0x64   : > { %12417 = vmatpush3.bf16.msra.mxu0 %v13628_v0  ;;  %12497 = vmatpush3.bf16.msra.mxu1 %v13628_v0  ;;  %v13058_v11 = vld [vmem:[%s13618_s30 + $0x308] sm:$0xff]  }
  0x65   : > { %12276 = vmatprep.mubr.bf16.mxu0 %v12995_v12  ;;  %12356 = vmatprep.mubr.bf16.mxu1 %v12996_v13  ;;  %v13059_v12 = vld [vmem:[%s13618_s30 + $0x210] sm:$0xff]  }
  0x66   : > { %12418 = vmatprep.subr.bf16.mxu0 %v12984_v1  ;;  %12498 = vmatprep.subr.bf16.mxu1 %v12984_v1  ;;  %v13060_v13 = vld [vmem:[%s13618_s30 + $0x310] sm:$0xff]  }
  0x68   : > { %12419 = vmatpush3.bf16.msra.mxu0 %v12984_v1  ;;  %12499 = vmatpush3.bf16.msra.mxu1 %v12984_v1  ;;  %v13048_v1 = vld [vmem:[%s13618_s30 + $0x1e0] sm:$0xff]  }
  0x69   : > { %12420 = vmatprep.subr.bf16.mxu0 %v13634_v2  ;;  %12500 = vmatprep.subr.bf16.mxu1 %v13634_v2 }
  0x6b   : > { %12277 = vmatmul.mubr.bf16.gmra.mxu0 %v12997_v14  ;;  %12357 = vmatmul.mubr.bf16.gmra.mxu1 %v12998_v15  ;;  %v13770_v14 = vld [vmem:[#allocation5 + $0x38] sm:$0xff]  }
  0x6c   : > { %12280 = vmatprep.mubr.bf16.mxu0 %v12999_v16  ;;  %12360 = vmatprep.mubr.bf16.mxu1 %v13000_v17  ;;  %v13061_v15 = vld [vmem:[%s13618_s30 + $0x218] sm:$0xff]   ;;  %v13063_v17 = vld [vmem:[%s13618_s30 + $0x220] sm:$0xff]  }
  0x6d   : > { %12421 = vmatpush3.bf16.msra.mxu0 %v13634_v2  ;;  %12501 = vmatpush3.bf16.msra.mxu1 %v13634_v2  ;;  %v13049_v2 = vld [vmem:[%s13618_s30 + $0xe8] sm:$0xff]   ;;  %v13062_v16 = vld [vmem:[%s13618_s30 + $0x318] sm:$0xff]  }
  0x6e   : > { %12422 = vmatprep.subr.bf16.mxu0 %v13636_v3  ;;  %12502 = vmatprep.subr.bf16.mxu1 %v13636_v3 }
  0x71   : > { %12423 = vmatpush3.bf16.msra.mxu0 %v13636_v3  ;;  %12503 = vmatpush3.bf16.msra.mxu1 %v13636_v3  ;;  %v13050_v3 = vld [vmem:[%s13618_s30 + $0x1e8] sm:$0xff]  }
  0x72   : > { %12424 = vmatprep.subr.bf16.mxu0 %v13646_v6  ;;  %12504 = vmatprep.subr.bf16.mxu1 %v13646_v6 }
  0x73   : > { %12281 = vmatmul.mubr.bf16.gmra.mxu0 %v13001_v18  ;;  %12361 = vmatmul.mubr.bf16.gmra.mxu1 %v13002_v19  ;;  %v13064_v18 = vld [vmem:[%s13618_s30 + $0x320] sm:$0xff]   ;;  %v13248_v19 = vld [vmem:[#allocation5 + $0x30] sm:$0xff]  }
  0x74   : > { %12284 = vmatprep.mubr.bf16.mxu0 %v13003_v20  ;;  %12364 = vmatprep.mubr.bf16.mxu1 %v13004_v21  ;;  %v13249_v20 = vld [vmem:[#allocation5 + $0x28] sm:$0xff]  }
  0x75   : > { %12425 = vmatpush3.bf16.msra.mxu0 %v13646_v6  ;;  %12505 = vmatpush3.bf16.msra.mxu1 %v13646_v6  ;;  %v13053_v6 = vld [vmem:[%s13618_s30 + $0xf8] sm:$0xff]   ;;  %v13065_v21 = vld [vmem:[%s13618_s30 + $0x228] sm:$0xff]  }
  0x76   : > { %12426 = vmatprep.subr.bf16.mxu0 %v13652_v7  ;;  %12506 = vmatprep.subr.bf16.mxu1 %v13652_v7 }
  0x79   : > { %12427 = vmatpush3.bf16.msra.mxu0 %v13652_v7  ;;  %12507 = vmatpush3.bf16.msra.mxu1 %v13652_v7  ;;  %v13054_v7 = vld [vmem:[%s13618_s30 + $0x1f8] sm:$0xff]  }
  0x7a   : > { %12428 = vmatprep.subr.bf16.mxu0 %v13658_v8  ;;  %12508 = vmatprep.subr.bf16.mxu1 %v13658_v8 }
  0x7b   : > { %12285 = vmatmul.mubr.bf16.gmra.mxu0 %v13005_v22  ;;  %12365 = vmatmul.mubr.bf16.gmra.mxu1 %v13006_v23  ;;  %v13066_v22 = vld [vmem:[%s13618_s30 + $0x328] sm:$0xff]   ;;  %v13067_v23 = vld [vmem:[%s13618_s30 + $0x230] sm:$0xff]  }
  0x7c   : > { %12288 = vmatprep.mubr.bf16.mxu0 %v13007_v24  ;;  %12368 = vmatprep.mubr.bf16.mxu1 %v13008_v25  ;;  %v13068_v24 = vld [vmem:[%s13618_s30 + $0x330] sm:$0xff]   ;;  %v13250_v25 = vld [vmem:[#allocation5 + $0x20] sm:$0xff]  }
  0x7d   : > { %12429 = vmatpush3.bf16.msra.mxu0 %v13658_v8  ;;  %12509 = vmatpush3.bf16.msra.mxu1 %v13658_v8  ;;  %v13055_v8 = vld [vmem:[%s13618_s30 + $0x200] sm:$0xff]  }
  0x7e   : > { %12430 = vmatprep.subr.bf16.mxu0 %v13664_v9  ;;  %12510 = vmatprep.subr.bf16.mxu1 %v13664_v9 }
  0x81   : > { %12431 = vmatpush3.bf16.msra.mxu0 %v13664_v9  ;;  %12511 = vmatpush3.bf16.msra.mxu1 %v13664_v9  ;;  %v13056_v9 = vld [vmem:[%s13618_s30 + $0x300] sm:$0xff]  }
  0x82   : > { %12576 = vmatprep.subr.bf16.mxu0 %v13628_v0  ;;  %12656 = vmatprep.subr.bf16.mxu1 %v13628_v0  ;;  %v13047_v0 = vld [vmem:[%s13618_s30 + $0xe0] sm:$0xff]  }
  0x83   : > { %12289 = vmatmul.mubr.bf16.gmra.mxu0 %v13009_v26  ;;  %12369 = vmatmul.mubr.bf16.gmra.mxu1 %v13010_v27  ;;  %v13251_v26 = vld [vmem:[#allocation5 + $0x18] sm:$0xff]  }
  0x84   : > { %12292 = vmatprep.mubr.bf16.mxu0 %v13011_v28  ;;  %12372 = vmatprep.mubr.bf16.mxu1 %v13012_v29  ;;  %v13069_v27 = vld [vmem:[%s13618_s30 + $0x238] sm:$0xff]   ;;  %v13071_v29 = vld [vmem:[%s13618_s30 + $0x240] sm:$0xff]  }
  0x85   : > { %v13070_v28 = vld [vmem:[%s13618_s30 + $0x338] sm:$0xff]  }
  0x8b   : > { %12293 = vmatmul.mubr.bf16.gmra.mxu0 %v13013_v30  ;;  %12373 = vmatmul.mubr.bf16.gmra.mxu1 %v13014_v31  ;;  %v13072_v30 = vld [vmem:[%s13618_s30 + $0x340] sm:$0xff]   ;;  %v13252_v31 = vld [vmem:[#allocation5 + $0x10] sm:$0xff]  }
  0x8c   : > { %12296 = vmatprep.mubr.bf16.mxu0 %v13015_v32  ;;  %12376 = vmatprep.mubr.bf16.mxu1 %v13016_v33  ;;  %v13253_v32 = vld [vmem:[#allocation5 + $0x8] sm:$0xff]  }
  0x8d   : > { %v13073_v33 = vld [vmem:[%s13618_s30 + $0x248] sm:$0xff]  }
  0x93   : > { %12297 = vmatmul.mubr.bf16.gmra.mxu0 %v13017_v34  ;;  %12377 = vmatmul.mubr.bf16.gmra.mxu1 %v13018_v35  ;;  %v13074_v34 = vld [vmem:[%s13618_s30 + $0x348] sm:$0xff]   ;;  %v13075_v35 = vld [vmem:[%s13618_s30 + $0x250] sm:$0xff]  }
  0x94   : > { %12300 = vmatprep.mubr.bf16.mxu0 %v13019_v36  ;;  %12380 = vmatprep.mubr.bf16.mxu1 %v13020_v37  ;;  %v13076_v36 = vld [vmem:[%s13618_s30 + $0x350] sm:$0xff]   ;;  %v13254_v37 = vld [vmem:[#allocation5] sm:$0xff]  }
  0x9b   : > { %12301 = vmatmul.mubr.bf16.gmra.mxu0 %v13021_v38  ;;  %12381 = vmatmul.mubr.bf16.gmra.mxu1 %v13022_v39  ;;  %v13077_v38 = vld [vmem:[%s13618_s30 + $0x258] sm:$0xff]  }
  0x9c   : > { %12304 = vmatprep.mubr.bf16.mxu0 %v13023_v40  ;;  %12384 = vmatprep.mubr.bf16.mxu1 %v13024_v41  ;;  %v13078_v39 = vld [vmem:[%s13618_s30 + $0x358] sm:$0xff]   ;;  %v13079_v40 = vld [vmem:[%s13618_s30 + $0x260] sm:$0xff]  }
  0x9d   : > { %v13080_v41 = vld [vmem:[%s13618_s30 + $0x360] sm:$0xff]  }
  0xa3   : > { %12305 = vmatmul.mubr.bf16.gmra.mxu0 %v13025_v42  ;;  %12385 = vmatmul.mubr.bf16.gmra.mxu1 %v13026_v43  ;;  %v13081_v42 = vld [vmem:[%s13618_s30 + $0x268] sm:$0xff]  }
  0xa4   : > { %12308 = vmatprep.mubr.bf16.mxu0 %v13027_v44  ;;  %12388 = vmatprep.mubr.bf16.mxu1 %v13028_v45  ;;  %v13082_v43 = vld [vmem:[%s13618_s30 + $0x368] sm:$0xff]   ;;  %v13083_v44 = vld [vmem:[%s13618_s30 + $0x270] sm:$0xff]  }
  0xa5   : > { %v13084_v45 = vld [vmem:[%s13618_s30 + $0x370] sm:$0xff]  }
  0xab   : > { %12309 = vmatmul.mubr.bf16.gmra.mxu0 %v13029_v46  ;;  %12389 = vmatmul.mubr.bf16.gmra.mxu1 %v13030_v47  ;;  %v13085_v46 = vld [vmem:[%s13618_s30 + $0x278] sm:$0xff]  }
  0xac   : > { %12312 = vmatprep.mubr.bf16.mxu0 %v13031_v48  ;;  %12392 = vmatprep.mubr.bf16.mxu1 %v13032_v49  ;;  %v13086_v47 = vld [vmem:[%s13618_s30 + $0x378] sm:$0xff]   ;;  %v13087_v48 = vld [vmem:[%s13618_s30 + $0x280] sm:$0xff]  }
  0xad   : > { %v13088_v49 = vld [vmem:[%s13618_s30 + $0x380] sm:$0xff]  }
  0xb3   : > { %12313 = vmatmul.mubr.bf16.gmra.mxu0 %v13033_v50  ;;  %12393 = vmatmul.mubr.bf16.gmra.mxu1 %v13034_v51  ;;  %v13089_v50 = vld [vmem:[%s13618_s30 + $0x288] sm:$0xff]  }
  0xb4   : > { %12316 = vmatprep.mubr.bf16.mxu0 %v13035_v52  ;;  %12396 = vmatprep.mubr.bf16.mxu1 %v13036_v53  ;;  %v13090_v51 = vld [vmem:[%s13618_s30 + $0x388] sm:$0xff]   ;;  %v13091_v52 = vld [vmem:[%s13618_s30 + $0x290] sm:$0xff]  }
  0xb5   : > { %v13092_v53 = vld [vmem:[%s13618_s30 + $0x390] sm:$0xff]  }
  0xbb   : > { %12317 = vmatmul.mubr.bf16.gmra.mxu0 %v13037_v54  ;;  %12397 = vmatmul.mubr.bf16.gmra.mxu1 %v13038_v55 }
  0xbc   : > { %12320 = vmatprep.mubr.bf16.mxu0 %v13039_v56  ;;  %12400 = vmatprep.mubr.bf16.mxu1 %v13040_v57 }
  0xc3   : > { %12321 = vmatmul.mubr.bf16.gmra.mxu0 %v13041_v58  ;;  %12401 = vmatmul.mubr.bf16.gmra.mxu1 %v13042_v59  ;;  %v13093_v58 = vld [vmem:[%s13618_s30 + $0x298] sm:$0xff]  }
  0xc4   : > { %12324 = vmatprep.mubr.bf16.mxu0 %v13043_v60  ;;  %12404 = vmatprep.mubr.bf16.mxu1 %v13044_v61  ;;  %v13094_v59 = vld [vmem:[%s13618_s30 + $0x398] sm:$0xff]   ;;  %v13095_v60 = vld [vmem:[%s13618_s30 + $0x2a0] sm:$0xff]  }
  0xcb   : > { %12325 = vmatmul.mubr.bf16.gmra.mxu0 %v13045_v62  ;;  %12405 = vmatmul.mubr.bf16.gmra.mxu1 %v13046_v63  ;;  %v13096_v63 = vld [vmem:[%s13618_s30 + $0x3a0] sm:$0xff]  }
  0xcc   : > { %12328 = vmatprep.mubr.bf16.mxu0 %v13047_v0  ;;  %12408 = vmatprep.mubr.bf16.mxu1 %v13048_v1 }
  0xd3   : > { %12329 = vmatmul.mubr.bf16.gmra.mxu0 %v13049_v2  ;;  %12409 = vmatmul.mubr.bf16.gmra.mxu1 %v13050_v3 }
  0xd4   : > { %12332 = vmatprep.mubr.bf16.mxu0 %v13051_v4  ;;  %12412 = vmatprep.mubr.bf16.mxu1 %v13052_v5 }
  0xdb   : > { %12333 = vmatmul.mubr.bf16.gmra.mxu0 %v13053_v6  ;;  %12413 = vmatmul.mubr.bf16.gmra.mxu1 %v13054_v7 }
  0xdc   : > { %12432 = vmatprep.mubr.bf16.mxu0 %v13055_v8  ;;  %12512 = vmatprep.mubr.bf16.mxu1 %v13056_v9 }
  0xe3   : > { %12433 = vmatmul.mubr.bf16.vlgmr.msra.gmra.mxu0 %v13057_v10  ;;  %12513 = vmatmul.mubr.bf16.vlgmr.msra.gmra.mxu1 %v13058_v11 }
  0xe4   : > { %12577 = vmatpush3.bf16.msra.mxu0 %v13770_v14  ;;  %12657 = vmatpush3.bf16.msra.mxu1 %v13770_v14 }
  0xe5   : > { %12436 = vmatprep.mubr.bf16.mxu0 %v13059_v12  ;;  %12516 = vmatprep.mubr.bf16.mxu1 %v13060_v13 }
  0xe6   : > { %12578 = vmatprep.subr.bf16.mxu0 %v13248_v19  ;;  %12658 = vmatprep.subr.bf16.mxu1 %v13248_v19 }
  0xe8   : > { %12579 = vmatpush3.bf16.msra.mxu0 %v13248_v19  ;;  %12659 = vmatpush3.bf16.msra.mxu1 %v13248_v19 }
  0xe9   : > { %12580 = vmatprep.subr.bf16.mxu0 %v13249_v20  ;;  %12660 = vmatprep.subr.bf16.mxu1 %v13249_v20 }
  0xeb   : > { %12437 = vmatmul.mubr.bf16.gmra.mxu0 %v13061_v15  ;;  %12517 = vmatmul.mubr.bf16.gmra.mxu1 %v13062_v16 }
  0xec   : > { %12440 = vmatprep.mubr.bf16.mxu0 %v13063_v17  ;;  %12520 = vmatprep.mubr.bf16.mxu1 %v13064_v18 }
  0xed   : > { %12581 = vmatpush3.bf16.msra.mxu0 %v13249_v20  ;;  %12661 = vmatpush3.bf16.msra.mxu1 %v13249_v20 }
  0xee   : > { %12582 = vmatprep.subr.bf16.mxu0 %v13250_v25  ;;  %12662 = vmatprep.subr.bf16.mxu1 %v13250_v25 }
  0xf1   : > { %12583 = vmatpush3.bf16.msra.mxu0 %v13250_v25  ;;  %12663 = vmatpush3.bf16.msra.mxu1 %v13250_v25 }
  0xf2   : > { %12584 = vmatprep.subr.bf16.mxu0 %v13251_v26  ;;  %12664 = vmatprep.subr.bf16.mxu1 %v13251_v26 }
  0xf3   : > { %12441 = vmatmul.mubr.bf16.gmra.mxu0 %v13065_v21  ;;  %12521 = vmatmul.mubr.bf16.gmra.mxu1 %v13066_v22 }
  0xf4   : > { %12444 = vmatprep.mubr.bf16.mxu0 %v13067_v23  ;;  %12524 = vmatprep.mubr.bf16.mxu1 %v13068_v24 }
  0xf5   : > { %12585 = vmatpush3.bf16.msra.mxu0 %v13251_v26  ;;  %12665 = vmatpush3.bf16.msra.mxu1 %v13251_v26 }
  0xf6   : > { %12586 = vmatprep.subr.bf16.mxu0 %v13252_v31  ;;  %12666 = vmatprep.subr.bf16.mxu1 %v13252_v31 }
  0xf9   : > { %12587 = vmatpush3.bf16.msra.mxu0 %v13252_v31  ;;  %12667 = vmatpush3.bf16.msra.mxu1 %v13252_v31 }
  0xfa   : > { %12588 = vmatprep.subr.bf16.mxu0 %v13253_v32  ;;  %12668 = vmatprep.subr.bf16.mxu1 %v13253_v32 }
  0xfb   : > { %12445 = vmatmul.mubr.bf16.gmra.mxu0 %v13069_v27  ;;  %12525 = vmatmul.mubr.bf16.gmra.mxu1 %v13070_v28 }
  0xfc   : > { %12448 = vmatprep.mubr.bf16.mxu0 %v13071_v29  ;;  %12528 = vmatprep.mubr.bf16.mxu1 %v13072_v30  ;;  %v13097_v30 = vld [vmem:[%s13618_s30 + $0x2a8] sm:$0xff]  }
  0xfd   : > { %12589 = vmatpush3.bf16.msra.mxu0 %v13253_v32  ;;  %12669 = vmatpush3.bf16.msra.mxu1 %v13253_v32 }
  0xfe   : > { %12590 = vmatprep.subr.bf16.mxu0 %v13254_v37  ;;  %12670 = vmatprep.subr.bf16.mxu1 %v13254_v37 }
 0x101   : > { %12591 = vmatpush3.bf16.msra.mxu0 %v13254_v37  ;;  %12671 = vmatpush3.bf16.msra.mxu1 %v13254_v37 }
 0x102   : > { %12736 = vmatprep.subr.bf16.mxu0 %v13770_v14  ;;  %12816 = vmatprep.subr.bf16.mxu1 %v13770_v14 }
 0x103   : > { %12449 = vmatmul.mubr.bf16.gmra.mxu0 %v13073_v33  ;;  %12529 = vmatmul.mubr.bf16.gmra.mxu1 %v13074_v34 }
 0x104   : > { %12452 = vmatprep.mubr.bf16.mxu0 %v13075_v35  ;;  %12532 = vmatprep.mubr.bf16.mxu1 %v13076_v36  ;;  %v13098_v35 = vld [vmem:[%s13618_s30 + $0x3a8] sm:$0xff]  }
 0x10b   : > { %12453 = vmatmul.mubr.bf16.gmra.mxu0 %v13077_v38  ;;  %12533 = vmatmul.mubr.bf16.gmra.mxu1 %v13078_v39 }
 0x10c   : > { %12456 = vmatprep.mubr.bf16.mxu0 %v13079_v40  ;;  %12536 = vmatprep.mubr.bf16.mxu1 %v13080_v41 }
 0x113   : > { %12457 = vmatmul.mubr.bf16.gmra.mxu0 %v13081_v42  ;;  %12537 = vmatmul.mubr.bf16.gmra.mxu1 %v13082_v43  ;;  %v13099_v42 = vld [vmem:[%s13618_s30 + $0x2b0] sm:$0xff]  }
 0x114   : > { %12460 = vmatprep.mubr.bf16.mxu0 %v13083_v44  ;;  %12540 = vmatprep.mubr.bf16.mxu1 %v13084_v45  ;;  %v13100_v43 = vld [vmem:[%s13618_s30 + $0x3b0] sm:$0xff]  }
 0x11b   : > { %12461 = vmatmul.mubr.bf16.gmra.mxu0 %v13085_v46  ;;  %12541 = vmatmul.mubr.bf16.gmra.mxu1 %v13086_v47 }
 0x11c   : > { %12464 = vmatprep.mubr.bf16.mxu0 %v13087_v48  ;;  %12544 = vmatprep.mubr.bf16.mxu1 %v13088_v49 }
 0x123   : > { %v12274_v54 = vpop.f32.mrf.mxu0  ;;  %v12354_v55 = vpop.f32.mrf.mxu1  ;;  %12465 = vmatmul.mubr.bf16.gmra.mxu0 %v13089_v50  ;;  %12545 = vmatmul.mubr.bf16.gmra.mxu1 %v13090_v51 }
 0x124   : > { %12468 = vmatprep.mubr.bf16.mxu0 %v13091_v52  ;;  %12548 = vmatprep.mubr.bf16.mxu1 %v13092_v53  ;;  %v1271_v14 = vmul.f32 %v12274_v54, %v12274_v54  ;;  %v2340_v17 = vmul.f32 %v12354_v55, %v12354_v55 }
 0x125   : > { %v624_v56 = vpop.f32.mrf.mxu0  ;;  %v1693_v57 = vpop.f32.mrf.mxu1 }
 0x126   : > { %v1269_v2 = vmul.f32 %v624_v56, %v624_v56  ;;  %v2338_v9 = vmul.f32 %v1693_v57, %v1693_v57 }
 0x127   : > { %v12275_v61 = vpop.f32.mrf.mxu0  ;;  %v12355_v62 = vpop.f32.mrf.mxu1 }
 0x128   : > { %v10409_v0 = vpack.c.bf16 %v12275_v61, %v12274_v54  ;;  %v10569_v1 = vpack.c.bf16 %v12355_v62, %v12354_v55  ;;  %v1272_v22 = vmul.f32 %v12275_v61, %v12275_v61  ;;  %v2341_v25 = vmul.f32 %v12355_v62, %v12355_v62 }
 0x129   : > { %v627_v3 = vpop.f32.mrf.mxu0  ;;  %v1696_v4 = vpop.f32.mrf.mxu1 }
 0x12a   : > { %11681 = vst [vmem:[%s13814_s22 + $0x8] sm:$0xff] %v10409_v0   ;;  %11713 = vst [vmem:[%s13814_s22 + $0x108] sm:$0xff] %v10569_v1   ;;  %v10404_v5 = vpack.c.bf16 %v627_v3, %v624_v56  ;;  %v1199_v6 = vadd.f32 %v627_v3, %v624_v56  ;;  %v1270_v7 = vmul.f32 %v627_v3, %v627_v3 }
 0x12b   : > { %v10564_v8 = vpack.c.bf16 %v1696_v4, %v1693_v57  ;;  %v2268_v10 = vadd.f32 %v1696_v4, %v1693_v57  ;;  %v2339_v11 = vmul.f32 %v1696_v4, %v1696_v4  ;;  %v12278_v12 = vpop.f32.mrf.mxu0  ;;  %v12358_v13 = vpop.f32.mrf.mxu1  ;;  %12469 = vmatmul.mubr.bf16.gmra.mxu0 %v13093_v58  ;;  %12549 = vmatmul.mubr.bf16.gmra.mxu1 %v13094_v59 }
 0x12c   : > { %10405 = vst [vmem:[%s13814_s22] sm:$0xff] %v10404_v5   ;;  %v1333_v15 = vadd.f32 %v1270_v7, %v1269_v2  ;;  %v1200_v16 = vadd.f32 %v12274_v54, %v1199_v6  ;;  %12472 = vmatprep.mubr.bf16.mxu0 %v13095_v60  ;;  %12552 = vmatprep.mubr.bf16.mxu1 %v13096_v63  ;;  %v13101_v6 = vld [vmem:[%s13618_s30 + $0x2b8] sm:$0xff]  }
 0x12d   : > { %11712 = vst [vmem:[%s13814_s22 + $0x100] sm:$0xff] %v10564_v8   ;;  %v2402_v18 = vadd.f32 %v2339_v11, %v2338_v9  ;;  %v640_v19 = vpop.f32.mrf.mxu0  ;;  %v1709_v20 = vpop.f32.mrf.mxu1  ;;  %v2269_v21 = vadd.f32 %v12354_v55, %v2268_v10  ;;  %v1275_v54 = vmul.f32 %v12278_v12, %v12278_v12  ;;  %v2344_v57 = vmul.f32 %v12358_v13, %v12358_v13  ;;  %v13102_v11 = vld [vmem:[%s13618_s30 + $0x3b8] sm:$0xff]  }
 0x12e   : > { %v1201_v23 = vadd.f32 %v12275_v61, %v1200_v16  ;;  %v1334_v24 = vadd.f32 %v1333_v15, %v1271_v14  ;;  %v1273_v32 = vmul.f32 %v640_v19, %v640_v19  ;;  %v2342_v37 = vmul.f32 %v1709_v20, %v1709_v20 }
 0x12f   : > { %v2270_v26 = vadd.f32 %v12355_v62, %v2269_v21  ;;  %v2403_v27 = vadd.f32 %v2402_v18, %v2340_v17  ;;  %v12279_v28 = vpop.f32.mrf.mxu0  ;;  %v12359_v29 = vpop.f32.mrf.mxu1  ;;  %v13103_v18 = vld [vmem:[%s13618_s30 + $0x2c0] sm:$0xff]  }
 0x130   : > { %v1202_v31 = vadd.f32 %v1201_v23, %v640_v19  ;;  %v1335_v33 = vadd.f32 %v1334_v24, %v1272_v22  ;;  %v10419_v34 = vpack.c.bf16 %v12279_v28, %v12278_v12  ;;  %v10579_v39 = vpack.c.bf16 %v12359_v29, %v12358_v13 }
 0x131   : > { %v2271_v36 = vadd.f32 %v2270_v26, %v1709_v20  ;;  %v2404_v38 = vadd.f32 %v2403_v27, %v2341_v25  ;;  %v643_v40 = vpop.f32.mrf.mxu0  ;;  %v1712_v41 = vpop.f32.mrf.mxu1  ;;  %v1276_v62 = vmul.f32 %v12279_v28, %v12279_v28  ;;  %v2345_v1 = vmul.f32 %v12359_v29, %v12359_v29 }
 0x132   : > { %v1336_v44 = vadd.f32 %v1335_v33, %v1273_v32  ;;  %11683 = vst [vmem:[%s13814_s22 + $0x18] sm:$0xff] %v10419_v34   ;;  %v10414_v45 = vpack.c.bf16 %v643_v40, %v640_v19  ;;  %v1203_v46 = vadd.f32 %v1202_v31, %v643_v40  ;;  %v1274_v47 = vmul.f32 %v643_v40, %v643_v40  ;;  %v13104_v19 = vld [vmem:[%s13618_s30 + $0x3c0] sm:$0xff]  }
 0x133   : > { %v2405_v48 = vadd.f32 %v2404_v38, %v2342_v37  ;;  %11715 = vst [vmem:[%s13814_s22 + $0x118] sm:$0xff] %v10579_v39   ;;  %v10574_v49 = vpack.c.bf16 %v1712_v41, %v1709_v20  ;;  %v2272_v50 = vadd.f32 %v2271_v36, %v1712_v41  ;;  %v2343_v51 = vmul.f32 %v1712_v41, %v1712_v41  ;;  %v12282_v52 = vpop.f32.mrf.mxu0  ;;  %v12362_v53 = vpop.f32.mrf.mxu1 }
 0x134   : > { %12473 = vmatmul.mubr.bf16.gmra.mxu0 %v13097_v30  ;;  %11682 = vst [vmem:[%s13814_s22 + $0x10] sm:$0xff] %v10414_v45   ;;  %v1337_v55 = vadd.f32 %v1336_v44, %v1274_v47  ;;  %12553 = vmatmul.mubr.bf16.gmra.mxu1 %v13098_v35  ;;  %v1204_v56 = vadd.f32 %v12278_v12, %v1203_v46  ;;  %v13105_v46 = vld [vmem:[%s13618_s30 + $0x2c8] sm:$0xff]  }
 0x135   : > { %11714 = vst [vmem:[%s13814_s22 + $0x110] sm:$0xff] %v10574_v49   ;;  %v2406_v58 = vadd.f32 %v2405_v48, %v2343_v51  ;;  %v656_v59 = vpop.f32.mrf.mxu0  ;;  %v1725_v60 = vpop.f32.mrf.mxu1  ;;  %v2273_v61 = vadd.f32 %v12358_v13, %v2272_v50  ;;  %12476 = vmatprep.mubr.bf16.mxu0 %v13099_v42  ;;  %12556 = vmatprep.mubr.bf16.mxu1 %v13100_v43  ;;  %v13106_v51 = vld [vmem:[%s13618_s30 + $0x3c8] sm:$0xff]  }
 0x136   : > { %v1205_v63 = vadd.f32 %v12279_v28, %v1204_v56  ;;  %v1338_v0 = vadd.f32 %v1337_v55, %v1275_v54  ;;  %v1277_v8 = vmul.f32 %v656_v59, %v656_v59  ;;  %v2346_v13 = vmul.f32 %v1725_v60, %v1725_v60 }
 0x137   : > { %v2274_v2 = vadd.f32 %v12359_v29, %v2273_v61  ;;  %v2407_v3 = vadd.f32 %v2406_v58, %v2344_v57  ;;  %v12283_v4 = vpop.f32.mrf.mxu0  ;;  %v12363_v5 = vpop.f32.mrf.mxu1  ;;  %v1279_v30 = vmul.f32 %v12282_v52, %v12282_v52  ;;  %v2348_v33 = vmul.f32 %v12362_v53, %v12362_v53  ;;  %v13107_v58 = vld [vmem:[%s13618_s30 + $0x2d0] sm:$0xff]  }
 0x138   : > { %v1206_v7 = vadd.f32 %v1205_v63, %v656_v59  ;;  %v1339_v9 = vadd.f32 %v1338_v0, %v1276_v62  ;;  %v10429_v10 = vpack.c.bf16 %v12283_v4, %v12282_v52  ;;  %v10589_v15 = vpack.c.bf16 %v12363_v5, %v12362_v53 }
 0x139   : > { %v2275_v12 = vadd.f32 %v2274_v2, %v1725_v60  ;;  %v2408_v14 = vadd.f32 %v2407_v3, %v2345_v1  ;;  %v659_v16 = vpop.f32.mrf.mxu0  ;;  %v1728_v17 = vpop.f32.mrf.mxu1  ;;  %v1280_v38 = vmul.f32 %v12283_v4, %v12283_v4  ;;  %v2349_v41 = vmul.f32 %v12363_v5, %v12363_v5 }
 0x13a   : > { %v1340_v20 = vadd.f32 %v1339_v9, %v1277_v8  ;;  %11685 = vst [vmem:[%s13814_s22 + $0x28] sm:$0xff] %v10429_v10   ;;  %v10424_v21 = vpack.c.bf16 %v659_v16, %v656_v59  ;;  %v1207_v22 = vadd.f32 %v1206_v7, %v659_v16  ;;  %v1278_v23 = vmul.f32 %v659_v16, %v659_v16  ;;  %v13108_v59 = vld [vmem:[%s13618_s30 + $0x3d0] sm:$0xff]  }
 0x13b   : > { %v2409_v24 = vadd.f32 %v2408_v14, %v2346_v13  ;;  %11717 = vst [vmem:[%s13814_s22 + $0x128] sm:$0xff] %v10589_v15   ;;  %v10584_v25 = vpack.c.bf16 %v1728_v17, %v1725_v60  ;;  %v2276_v26 = vadd.f32 %v2275_v12, %v1728_v17  ;;  %v2347_v27 = vmul.f32 %v1728_v17, %v1728_v17  ;;  %v12286_v28 = vpop.f32.mrf.mxu0  ;;  %v12366_v29 = vpop.f32.mrf.mxu1 }
 0x13c   : > { %12477 = vmatmul.mubr.bf16.gmra.mxu0 %v13101_v6  ;;  %11684 = vst [vmem:[%s13814_s22 + $0x20] sm:$0xff] %v10424_v21   ;;  %v1341_v31 = vadd.f32 %v1340_v20, %v1278_v23  ;;  %12557 = vmatmul.mubr.bf16.gmra.mxu1 %v13102_v11  ;;  %v1208_v32 = vadd.f32 %v12282_v52, %v1207_v22  ;;  %v13109_v22 = vld [vmem:[%s13618_s30 + $0x2d8] sm:$0xff]  }
 0x13d   : > { %11716 = vst [vmem:[%s13814_s22 + $0x120] sm:$0xff] %v10584_v25   ;;  %v2410_v34 = vadd.f32 %v2409_v24, %v2347_v27  ;;  %v672_v35 = vpop.f32.mrf.mxu0  ;;  %v1741_v36 = vpop.f32.mrf.mxu1  ;;  %v2277_v37 = vadd.f32 %v12362_v53, %v2276_v26  ;;  %12480 = vmatprep.mubr.bf16.mxu0 %v13103_v18  ;;  %12560 = vmatprep.mubr.bf16.mxu1 %v13104_v19  ;;  %v13110_v27 = vld [vmem:[%s13618_s30 + $0x3d8] sm:$0xff]  }
 0x13e   : > { %v1209_v39 = vadd.f32 %v12283_v4, %v1208_v32  ;;  %v1342_v40 = vadd.f32 %v1341_v31, %v1279_v30  ;;  %v1281_v48 = vmul.f32 %v672_v35, %v672_v35  ;;  %v2350_v53 = vmul.f32 %v1741_v36, %v1741_v36 }
 0x13f   : > { %v2278_v42 = vadd.f32 %v12363_v5, %v2277_v37  ;;  %v2411_v43 = vadd.f32 %v2410_v34, %v2348_v33  ;;  %v12287_v44 = vpop.f32.mrf.mxu0  ;;  %v12367_v45 = vpop.f32.mrf.mxu1  ;;  %v1283_v6 = vmul.f32 %v12286_v28, %v12286_v28  ;;  %v2352_v9 = vmul.f32 %v12366_v29, %v12366_v29  ;;  %v13111_v34 = vld [vmem:[%s13618_s30 + $0x2e0] sm:$0xff]  }
 0x140   : > { %v1210_v47 = vadd.f32 %v1209_v39, %v672_v35  ;;  %v1343_v49 = vadd.f32 %v1342_v40, %v1280_v38  ;;  %v10439_v50 = vpack.c.bf16 %v12287_v44, %v12286_v28  ;;  %v10599_v55 = vpack.c.bf16 %v12367_v45, %v12366_v29 }
 0x141   : > { %v2279_v52 = vadd.f32 %v2278_v42, %v1741_v36  ;;  %v2412_v54 = vadd.f32 %v2411_v43, %v2349_v41  ;;  %v675_v56 = vpop.f32.mrf.mxu0  ;;  %v1744_v57 = vpop.f32.mrf.mxu1  ;;  %v1284_v14 = vmul.f32 %v12287_v44, %v12287_v44  ;;  %v2353_v17 = vmul.f32 %v12367_v45, %v12367_v45 }
 0x142   : > { %v1344_v60 = vadd.f32 %v1343_v49, %v1281_v48  ;;  %11687 = vst [vmem:[%s13814_s22 + $0x38] sm:$0xff] %v10439_v50   ;;  %v10434_v61 = vpack.c.bf16 %v675_v56, %v672_v35  ;;  %v1211_v62 = vadd.f32 %v1210_v47, %v675_v56  ;;  %v1282_v63 = vmul.f32 %v675_v56, %v675_v56  ;;  %v13112_v35 = vld [vmem:[%s13618_s30 + $0x3e0] sm:$0xff]  }
 0x143   : > { %v2413_v0 = vadd.f32 %v2412_v54, %v2350_v53  ;;  %11719 = vst [vmem:[%s13814_s22 + $0x138] sm:$0xff] %v10599_v55   ;;  %v10594_v1 = vpack.c.bf16 %v1744_v57, %v1741_v36  ;;  %v2280_v2 = vadd.f32 %v2279_v52, %v1744_v57  ;;  %v2351_v3 = vmul.f32 %v1744_v57, %v1744_v57  ;;  %v12290_v4 = vpop.f32.mrf.mxu0  ;;  %v12370_v5 = vpop.f32.mrf.mxu1 }
 0x144   : > { %12481 = vmatmul.mubr.bf16.gmra.mxu0 %v13105_v46  ;;  %11686 = vst [vmem:[%s13814_s22 + $0x30] sm:$0xff] %v10434_v61   ;;  %v1345_v7 = vadd.f32 %v1344_v60, %v1282_v63  ;;  %12561 = vmatmul.mubr.bf16.gmra.mxu1 %v13106_v51  ;;  %v1212_v8 = vadd.f32 %v12286_v28, %v1211_v62  ;;  %v13113_v62 = vld [vmem:[%s13618_s30 + $0x2e8] sm:$0xff]  }
 0x145   : > { %11718 = vst [vmem:[%s13814_s22 + $0x130] sm:$0xff] %v10594_v1   ;;  %v2414_v10 = vadd.f32 %v2413_v0, %v2351_v3  ;;  %v688_v11 = vpop.f32.mrf.mxu0  ;;  %v1757_v12 = vpop.f32.mrf.mxu1  ;;  %v2281_v13 = vadd.f32 %v12366_v29, %v2280_v2  ;;  %12484 = vmatprep.mubr.bf16.mxu0 %v13107_v58  ;;  %12564 = vmatprep.mubr.bf16.mxu1 %v13108_v59  ;;  %v13114_v3 = vld [vmem:[%s13618_s30 + $0x3e8] sm:$0xff]  }
 0x146   : > { %v1213_v15 = vadd.f32 %v12287_v44, %v1212_v8  ;;  %v1346_v16 = vadd.f32 %v1345_v7, %v1283_v6  ;;  %v1285_v24 = vmul.f32 %v688_v11, %v688_v11  ;;  %v2354_v29 = vmul.f32 %v1757_v12, %v1757_v12 }
 0x147   : > { %v2282_v18 = vadd.f32 %v12367_v45, %v2281_v13  ;;  %v2415_v19 = vadd.f32 %v2414_v10, %v2352_v9  ;;  %v12291_v20 = vpop.f32.mrf.mxu0  ;;  %v12371_v21 = vpop.f32.mrf.mxu1  ;;  %v1287_v46 = vmul.f32 %v12290_v4, %v12290_v4  ;;  %v2356_v49 = vmul.f32 %v12370_v5, %v12370_v5  ;;  %v13115_v10 = vld [vmem:[%s13618_s30 + $0x2f0] sm:$0xff]  }
 0x148   : > { %v1214_v23 = vadd.f32 %v1213_v15, %v688_v11  ;;  %v1347_v25 = vadd.f32 %v1346_v16, %v1284_v14  ;;  %v10449_v26 = vpack.c.bf16 %v12291_v20, %v12290_v4  ;;  %v10609_v31 = vpack.c.bf16 %v12371_v21, %v12370_v5 }
 0x149   : > { %v2283_v28 = vadd.f32 %v2282_v18, %v1757_v12  ;;  %v2416_v30 = vadd.f32 %v2415_v19, %v2353_v17  ;;  %v691_v32 = vpop.f32.mrf.mxu0  ;;  %v1760_v33 = vpop.f32.mrf.mxu1  ;;  %v1288_v54 = vmul.f32 %v12291_v20, %v12291_v20  ;;  %v2357_v57 = vmul.f32 %v12371_v21, %v12371_v21 }
 0x14a   : > { %v1348_v36 = vadd.f32 %v1347_v25, %v1285_v24  ;;  %11689 = vst [vmem:[%s13814_s22 + $0x48] sm:$0xff] %v10449_v26   ;;  %v10444_v37 = vpack.c.bf16 %v691_v32, %v688_v11  ;;  %v1215_v38 = vadd.f32 %v1214_v23, %v691_v32  ;;  %v1286_v39 = vmul.f32 %v691_v32, %v691_v32  ;;  %v13116_v11 = vld [vmem:[%s13618_s30 + $0x3f0] sm:$0xff]  }
 0x14b   : > { %v2417_v40 = vadd.f32 %v2416_v30, %v2354_v29  ;;  %11721 = vst [vmem:[%s13814_s22 + $0x148] sm:$0xff] %v10609_v31   ;;  %v10604_v41 = vpack.c.bf16 %v1760_v33, %v1757_v12  ;;  %v2284_v42 = vadd.f32 %v2283_v28, %v1760_v33  ;;  %v2355_v43 = vmul.f32 %v1760_v33, %v1760_v33  ;;  %v12294_v44 = vpop.f32.mrf.mxu0  ;;  %v12374_v45 = vpop.f32.mrf.mxu1 }
 0x14c   : > { %12485 = vmatmul.mubr.bf16.gmra.mxu0 %v13109_v22  ;;  %11688 = vst [vmem:[%s13814_s22 + $0x40] sm:$0xff] %v10444_v37   ;;  %v1349_v47 = vadd.f32 %v1348_v36, %v1286_v39  ;;  %12565 = vmatmul.mubr.bf16.gmra.mxu1 %v13110_v27  ;;  %v1216_v48 = vadd.f32 %v12290_v4, %v1215_v38  ;;  %v13117_v38 = vld [vmem:[%s13618_s30 + $0x2f8] sm:$0xff]  }
 0x14d   : > { %11720 = vst [vmem:[%s13814_s22 + $0x140] sm:$0xff] %v10604_v41   ;;  %v2418_v50 = vadd.f32 %v2417_v40, %v2355_v43  ;;  %v704_v51 = vpop.f32.mrf.mxu0  ;;  %v1773_v52 = vpop.f32.mrf.mxu1  ;;  %v2285_v53 = vadd.f32 %v12370_v5, %v2284_v42  ;;  %12488 = vmatprep.mubr.bf16.mxu0 %v13111_v34  ;;  %12568 = vmatprep.mubr.bf16.mxu1 %v13112_v35  ;;  %v13118_v43 = vld [vmem:[%s13618_s30 + $0x3f8] sm:$0xff]  }
 0x14e   : > { %v1217_v55 = vadd.f32 %v12291_v20, %v1216_v48  ;;  %v1350_v56 = vadd.f32 %v1349_v47, %v1287_v46  ;;  %v1289_v0 = vmul.f32 %v704_v51, %v704_v51  ;;  %v2358_v5 = vmul.f32 %v1773_v52, %v1773_v52 }
 0x14f   : > { %v2286_v58 = vadd.f32 %v12371_v21, %v2285_v53  ;;  %v2419_v59 = vadd.f32 %v2418_v50, %v2356_v49  ;;  %v12295_v60 = vpop.f32.mrf.mxu0  ;;  %v12375_v61 = vpop.f32.mrf.mxu1  ;;  %v1291_v22 = vmul.f32 %v12294_v44, %v12294_v44  ;;  %v2360_v25 = vmul.f32 %v12374_v45, %v12374_v45  ;;  %v13119_v50 = vld [vmem:[%s13618_s30 + $0x400] sm:$0xff]  }
 0x150   : > { %v1218_v63 = vadd.f32 %v1217_v55, %v704_v51  ;;  %v1351_v1 = vadd.f32 %v1350_v56, %v1288_v54  ;;  %v10459_v2 = vpack.c.bf16 %v12295_v60, %v12294_v44  ;;  %v10619_v7 = vpack.c.bf16 %v12375_v61, %v12374_v45 }
 0x151   : > { %v2287_v4 = vadd.f32 %v2286_v58, %v1773_v52  ;;  %v2420_v6 = vadd.f32 %v2419_v59, %v2357_v57  ;;  %v707_v8 = vpop.f32.mrf.mxu0  ;;  %v1776_v9 = vpop.f32.mrf.mxu1  ;;  %v1292_v30 = vmul.f32 %v12295_v60, %v12295_v60  ;;  %v2361_v33 = vmul.f32 %v12375_v61, %v12375_v61 }
 0x152   : > { %v1352_v12 = vadd.f32 %v1351_v1, %v1289_v0  ;;  %11691 = vst [vmem:[%s13814_s22 + $0x58] sm:$0xff] %v10459_v2   ;;  %v10454_v13 = vpack.c.bf16 %v707_v8, %v704_v51  ;;  %v1219_v14 = vadd.f32 %v1218_v63, %v707_v8  ;;  %v1290_v15 = vmul.f32 %v707_v8, %v707_v8  ;;  %v13120_v51 = vld [vmem:[%s13618_s30 + $0x500] sm:$0xff]  }
 0x153   : > { %v2421_v16 = vadd.f32 %v2420_v6, %v2358_v5  ;;  %11723 = vst [vmem:[%s13814_s22 + $0x158] sm:$0xff] %v10619_v7   ;;  %v10614_v17 = vpack.c.bf16 %v1776_v9, %v1773_v52  ;;  %v2288_v18 = vadd.f32 %v2287_v4, %v1776_v9  ;;  %v2359_v19 = vmul.f32 %v1776_v9, %v1776_v9  ;;  %v12298_v20 = vpop.f32.mrf.mxu0  ;;  %v12378_v21 = vpop.f32.mrf.mxu1 }
 0x154   : > { %12489 = vmatmul.mubr.bf16.gmra.mxu0 %v13113_v62  ;;  %11690 = vst [vmem:[%s13814_s22 + $0x50] sm:$0xff] %v10454_v13   ;;  %v1353_v23 = vadd.f32 %v1352_v12, %v1290_v15  ;;  %12569 = vmatmul.mubr.bf16.gmra.mxu1 %v13114_v3  ;;  %v1220_v24 = vadd.f32 %v12294_v44, %v1219_v14  ;;  %v13121_v14 = vld [vmem:[%s13618_s30 + $0x408] sm:$0xff]  }
 0x155   : > { %11722 = vst [vmem:[%s13814_s22 + $0x150] sm:$0xff] %v10614_v17   ;;  %v2422_v26 = vadd.f32 %v2421_v16, %v2359_v19  ;;  %v720_v27 = vpop.f32.mrf.mxu0  ;;  %v1789_v28 = vpop.f32.mrf.mxu1  ;;  %v2289_v29 = vadd.f32 %v12374_v45, %v2288_v18  ;;  %12492 = vmatprep.mubr.bf16.mxu0 %v13115_v10  ;;  %12572 = vmatprep.mubr.bf16.mxu1 %v13116_v11  ;;  %v13122_v19 = vld [vmem:[%s13618_s30 + $0x508] sm:$0xff]  }
 0x156   : > { %v1221_v31 = vadd.f32 %v12295_v60, %v1220_v24  ;;  %v1354_v32 = vadd.f32 %v1353_v23, %v1291_v22  ;;  %v1293_v40 = vmul.f32 %v720_v27, %v720_v27  ;;  %v2362_v45 = vmul.f32 %v1789_v28, %v1789_v28 }
 0x157   : > { %v2290_v34 = vadd.f32 %v12375_v61, %v2289_v29  ;;  %v2423_v35 = vadd.f32 %v2422_v26, %v2360_v25  ;;  %v12299_v36 = vpop.f32.mrf.mxu0  ;;  %v12379_v37 = vpop.f32.mrf.mxu1  ;;  %v1295_v62 = vmul.f32 %v12298_v20, %v12298_v20  ;;  %v2364_v1 = vmul.f32 %v12378_v21, %v12378_v21  ;;  %v13123_v26 = vld [vmem:[%s13618_s30 + $0x410] sm:$0xff]  }
 0x158   : > { %v1222_v39 = vadd.f32 %v1221_v31, %v720_v27  ;;  %v1355_v41 = vadd.f32 %v1354_v32, %v1292_v30  ;;  %v10469_v42 = vpack.c.bf16 %v12299_v36, %v12298_v20  ;;  %v10629_v47 = vpack.c.bf16 %v12379_v37, %v12378_v21  ;;  %v13124_v31 = vld [vmem:[%s13618_s30 + $0x510] sm:$0xff]  }
 0x159   : > { %v2291_v44 = vadd.f32 %v2290_v34, %v1789_v28  ;;  %v2424_v46 = vadd.f32 %v2423_v35, %v2361_v33  ;;  %v723_v48 = vpop.f32.mrf.mxu0  ;;  %v1792_v49 = vpop.f32.mrf.mxu1  ;;  %v1296_v6 = vmul.f32 %v12299_v36, %v12299_v36  ;;  %v2365_v9 = vmul.f32 %v12379_v37, %v12379_v37 }
 0x15a   : > { %v1356_v52 = vadd.f32 %v1355_v41, %v1293_v40  ;;  %11693 = vst [vmem:[%s13814_s22 + $0x68] sm:$0xff] %v10469_v42   ;;  %v10464_v53 = vpack.c.bf16 %v723_v48, %v720_v27  ;;  %v1223_v54 = vadd.f32 %v1222_v39, %v723_v48  ;;  %v1294_v55 = vmul.f32 %v723_v48, %v723_v48  ;;  %v13255_v41 = vld [vmem:[#allocation5 + $0x38] sm:$0xff]  }
 0x15b   : > { %v2425_v56 = vadd.f32 %v2424_v46, %v2362_v45  ;;  %11725 = vst [vmem:[%s13814_s22 + $0x168] sm:$0xff] %v10629_v47   ;;  %v10624_v57 = vpack.c.bf16 %v1792_v49, %v1789_v28  ;;  %v2292_v58 = vadd.f32 %v2291_v44, %v1792_v49  ;;  %v2363_v59 = vmul.f32 %v1792_v49, %v1792_v49  ;;  %v12302_v60 = vpop.f32.mrf.mxu0  ;;  %v12382_v61 = vpop.f32.mrf.mxu1  ;;  %v13256_v49 = vld [vmem:[#allocation5 + $0x30] sm:$0xff]  }
 0x15c   : > { %12493 = vmatmul.mubr.bf16.gmra.mxu0 %v13117_v38  ;;  %11692 = vst [vmem:[%s13814_s22 + $0x60] sm:$0xff] %v10464_v53   ;;  %v1357_v63 = vadd.f32 %v1356_v52, %v1294_v55  ;;  %12573 = vmatmul.mubr.bf16.gmra.mxu1 %v13118_v43  ;;  %v1224_v0 = vadd.f32 %v12298_v20, %v1223_v54 }
 0x15d   : > { %11724 = vst [vmem:[%s13814_s22 + $0x160] sm:$0xff] %v10624_v57   ;;  %v2426_v2 = vadd.f32 %v2425_v56, %v2363_v59  ;;  %v736_v3 = vpop.f32.mrf.mxu0  ;;  %v1805_v4 = vpop.f32.mrf.mxu1  ;;  %v2293_v5 = vadd.f32 %v12378_v21, %v2292_v58  ;;  %12592 = vmatprep.mubr.bf16.mxu0 %v13119_v50  ;;  %12672 = vmatprep.mubr.bf16.mxu1 %v13120_v51  ;;  %v13125_v56 = vld [vmem:[%s13618_s30 + $0x418] sm:$0xff]  }
 0x15e   : > { %v1225_v7 = vadd.f32 %v12299_v36, %v1224_v0  ;;  %v1358_v8 = vadd.f32 %v1357_v63, %v1295_v62  ;;  %v1297_v16 = vmul.f32 %v736_v3, %v736_v3  ;;  %v2366_v21 = vmul.f32 %v1805_v4, %v1805_v4  ;;  %v13127_v62 = vld [vmem:[%s13618_s30 + $0x420] sm:$0xff]  }
 0x15f   : > { %v2294_v10 = vadd.f32 %v12379_v37, %v2293_v5  ;;  %v2427_v11 = vadd.f32 %v2426_v2, %v2364_v1  ;;  %v12303_v12 = vpop.f32.mrf.mxu0  ;;  %v12383_v13 = vpop.f32.mrf.mxu1  ;;  %v1299_v38 = vmul.f32 %v12302_v60, %v12302_v60  ;;  %v2368_v39 = vmul.f32 %v12382_v61, %v12382_v61  ;;  %v13128_v5 = vld [vmem:[%s13618_s30 + $0x520] sm:$0xff]  }
 0x160   : > { %v1226_v15 = vadd.f32 %v1225_v7, %v736_v3  ;;  %v1359_v17 = vadd.f32 %v1358_v8, %v1296_v6  ;;  %v10479_v18 = vpack.c.bf16 %v12303_v12, %v12302_v60  ;;  %v10639_v23 = vpack.c.bf16 %v12383_v13, %v12382_v61 }
 0x161   : > { %v2295_v20 = vadd.f32 %v2294_v10, %v1805_v4  ;;  %v2428_v22 = vadd.f32 %v2427_v11, %v2365_v9  ;;  %v739_v24 = vpop.f32.mrf.mxu0  ;;  %v1808_v25 = vpop.f32.mrf.mxu1  ;;  %v1300_v47 = vmul.f32 %v12303_v12, %v12303_v12  ;;  %v2369_v50 = vmul.f32 %v12383_v13, %v12383_v13  ;;  %v13257_v10 = vld [vmem:[#allocation5 + $0x28] sm:$0xff]  }
 0x162   : > { %v1360_v27 = vadd.f32 %v1359_v17, %v1297_v16  ;;  %11695 = vst [vmem:[%s13814_s22 + $0x78] sm:$0xff] %v10479_v18   ;;  %v10474_v28 = vpack.c.bf16 %v739_v24, %v736_v3  ;;  %v1227_v29 = vadd.f32 %v1226_v15, %v739_v24  ;;  %v1298_v30 = vmul.f32 %v739_v24, %v739_v24 }
 0x163   : > { %v2429_v32 = vadd.f32 %v2428_v22, %v2366_v21  ;;  %11727 = vst [vmem:[%s13814_s22 + $0x178] sm:$0xff] %v10639_v23   ;;  %v10634_v33 = vpack.c.bf16 %v1808_v25, %v1805_v4  ;;  %v2296_v34 = vadd.f32 %v2295_v20, %v1808_v25  ;;  %v2367_v35 = vmul.f32 %v1808_v25, %v1808_v25  ;;  %v13874_v36 = vpop.f32.mrf.mxu0  ;;  %v13876_v37 = vpop.f32.mrf.mxu1 }
 0x164   : > { %12593 = vmatmul.mubr.bf16.vlgmr.msra.gmra.mxu0 %v13121_v14  ;;  %11694 = vst [vmem:[%s13814_s22 + $0x70] sm:$0xff] %v10474_v28   ;;  %v1361_v40 = vadd.f32 %v1360_v27, %v1298_v30  ;;  %12673 = vmatmul.mubr.bf16.vlgmr.msra.gmra.mxu1 %v13122_v19  ;;  %v1228_v44 = vadd.f32 %v12302_v60, %v1227_v29  ;;  %v13258_v27 = vld [vmem:[#allocation5 + $0x20] sm:$0xff]  }
 0x165   : > { %12737 = vmatpush3.bf16.msra.mxu0 %v13255_v41  ;;  %11726 = vst [vmem:[%s13814_s22 + $0x170] sm:$0xff] %v10634_v33   ;;  %v2430_v42 = vadd.f32 %v2429_v32, %v2367_v35  ;;  %v752_v43 = vpop.f32.mrf.mxu0  ;;  %v1821_v45 = vpop.f32.mrf.mxu1  ;;  %v2297_v46 = vadd.f32 %v12382_v61, %v2296_v34  ;;  %12817 = vmatpush3.bf16.msra.mxu1 %v13255_v41  ;;  %v13126_v61 = vld [vmem:[%s13618_s30 + $0x518] sm:$0xff]   ;;  %v13129_v34 = vld [vmem:[%s13618_s30 + $0x428] sm:$0xff]  }
 0x166   : > { %12596 = vmatprep.mubr.bf16.mxu0 %v13123_v26  ;;  %v1362_v48 = vadd.f32 %v1361_v40, %v1299_v38  ;;  %12676 = vmatprep.mubr.bf16.mxu1 %v13124_v31  ;;  %v1229_v51 = vadd.f32 %v12303_v12, %v1228_v44  ;;  %v1301_v57 = vmul.f32 %v752_v43, %v752_v43  ;;  %v13131_v40 = vld [vmem:[%s13618_s30 + $0x430] sm:$0xff]  }
 0x167   : > { %12738 = vmatprep.subr.bf16.mxu0 %v13256_v49  ;;  %v2298_v52 = vadd.f32 %v12383_v13, %v2297_v46  ;;  %v2431_v53 = vadd.f32 %v2430_v42, %v2368_v39  ;;  %v12307_v54 = vpop.f32.mrf.mxu0  ;;  %v12387_v55 = vpop.f32.mrf.mxu1  ;;  %12818 = vmatprep.subr.bf16.mxu1 %v13256_v49  ;;  %v2370_v1 = vmul.f32 %v1821_v45, %v1821_v45  ;;  %v13130_v39 = vld [vmem:[%s13618_s30 + $0x528] sm:$0xff]  }
 0x168   : > { %v1363_v58 = vadd.f32 %v1362_v48, %v1300_v47  ;;  %v10489_v59 = vpack.c.bf16 %v12307_v54, %v13874_v36  ;;  %v10649_v60 = vpack.c.bf16 %v12387_v55, %v13876_v37  ;;  %v1230_v63 = vadd.f32 %v1229_v51, %v752_v43  ;;  %v13132_v47 = vld [vmem:[%s13618_s30 + $0x530] sm:$0xff]  }
 0x169   : > { %12739 = vmatpush3.bf16.msra.mxu0 %v13256_v49  ;;  %v2299_v0 = vadd.f32 %v2298_v52, %v1821_v45  ;;  %v2432_v2 = vadd.f32 %v2431_v53, %v2369_v50  ;;  %v755_v3 = vpop.f32.mrf.mxu0  ;;  %v1824_v4 = vpop.f32.mrf.mxu1  ;;  %12819 = vmatpush3.bf16.msra.mxu1 %v13256_v49  ;;  %v1303_v17 = vmul.f32 %v13874_v36, %v13874_v36  ;;  %v13259_v52 = vld [vmem:[#allocation5 + $0x18] sm:$0xff]  }
 0x16a   : > { %v1364_v6 = vadd.f32 %v1363_v58, %v1301_v57  ;;  %11697 = vst [vmem:[%s13814_s22 + $0x88] sm:$0xff] %v10489_v59   ;;  %11729 = vst [vmem:[%s13814_s22 + $0x188] sm:$0xff] %v10649_v60   ;;  %v10484_v7 = vpack.c.bf16 %v755_v3, %v752_v43  ;;  %v1302_v8 = vmul.f32 %v755_v3, %v755_v3  ;;  %12740 = vmatprep.subr.bf16.mxu0 %v13257_v10 }
 0x16b   : > { %v10644_v9 = vpack.c.bf16 %v1824_v4, %v1821_v45  ;;  %v2433_v11 = vadd.f32 %v2432_v2, %v2370_v1  ;;  %v1231_v12 = vadd.f32 %v1230_v63, %v755_v3  ;;  %v2300_v13 = vadd.f32 %v2299_v0, %v1824_v4  ;;  %v13888_v15 = vpop.f32.mrf.mxu0  ;;  %v13890_v16 = vpop.f32.mrf.mxu1  ;;  %12820 = vmatprep.subr.bf16.mxu1 %v13257_v10 }
 0x16c   : > { %v2371_v14 = vmul.f32 %v1824_v4, %v1824_v4  ;;  %12597 = vmatmul.mubr.bf16.gmra.mxu0 %v13125_v56  ;;  %v2372_v18 = vmul.f32 %v13876_v37, %v13876_v37  ;;  %11696 = vst [vmem:[%s13814_s22 + $0x80] sm:$0xff] %v10484_v7   ;;  %v1365_v19 = vadd.f32 %v1364_v6, %v1302_v8 }
 0x16d   : > { %11728 = vst [vmem:[%s13814_s22 + $0x180] sm:$0xff] %v10644_v9   ;;  %12677 = vmatmul.mubr.bf16.gmra.mxu1 %v13126_v61  ;;  %12600 = vmatprep.mubr.bf16.mxu0 %v13127_v62  ;;  %v768_v21 = vpop.f32.mrf.mxu0  ;;  %v1232_v22 = vadd.f32 %v13874_v36, %v1231_v12  ;;  %v1837_v23 = vpop.f32.mrf.mxu1  ;;  %v2301_v24 = vadd.f32 %v13876_v37, %v2300_v13  ;;  %v13260_v12 = vld [vmem:[#allocation5 + $0x10] sm:$0xff]  }
 0x16e   : > { %v2434_v20 = vadd.f32 %v2433_v11, %v2371_v14  ;;  %12680 = vmatprep.mubr.bf16.mxu1 %v13128_v5  ;;  %12741 = vmatpush3.bf16.msra.mxu0 %v13257_v10  ;;  %v1304_v25 = vmul.f32 %v12307_v54, %v12307_v54  ;;  %v1366_v26 = vadd.f32 %v1365_v19, %v1303_v17  ;;  %v13133_v11 = vld [vmem:[%s13618_s30 + $0x438] sm:$0xff]  }
 0x16f   : > { %12742 = vmatprep.subr.bf16.mxu0 %v13258_v27  ;;  %v2373_v28 = vmul.f32 %v12387_v55, %v12387_v55  ;;  %v1233_v29 = vadd.f32 %v12307_v54, %v1232_v22  ;;  %v2302_v30 = vadd.f32 %v12387_v55, %v2301_v24  ;;  %v12311_v32 = vpop.f32.mrf.mxu0  ;;  %v12391_v33 = vpop.f32.mrf.mxu1  ;;  %12821 = vmatpush3.bf16.msra.mxu1 %v13257_v10  ;;  %v13134_v17 = vld [vmem:[%s13618_s30 + $0x538] sm:$0xff]  }
 0x170   : > { %v2435_v31 = vadd.f32 %v2434_v20, %v2372_v18  ;;  %v1305_v35 = vmul.f32 %v768_v21, %v768_v21  ;;  %v1367_v36 = vadd.f32 %v1366_v26, %v1304_v25  ;;  %v10499_v37 = vpack.c.bf16 %v12311_v32, %v13888_v15  ;;  %12822 = vmatprep.subr.bf16.mxu1 %v13258_v27  ;;  %v13135_v18 = vld [vmem:[%s13618_s30 + $0x440] sm:$0xff]  }
 0x171   : > { %v10659_v38 = vpack.c.bf16 %v12391_v33, %v13890_v16  ;;  %v1234_v41 = vadd.f32 %v1233_v29, %v768_v21  ;;  %v2303_v42 = vadd.f32 %v2302_v30, %v1837_v23  ;;  %v2374_v43 = vmul.f32 %v1837_v23, %v1837_v23  ;;  %v771_v45 = vpop.f32.mrf.mxu0  ;;  %v1840_v46 = vpop.f32.mrf.mxu1  ;;  %v13136_v25 = vld [vmem:[%s13618_s30 + $0x540] sm:$0xff]  }
 0x172   : > { %v2436_v44 = vadd.f32 %v2435_v31, %v2373_v28  ;;  %12743 = vmatpush3.bf16.msra.mxu0 %v13258_v27  ;;  %v1368_v48 = vadd.f32 %v1367_v36, %v1305_v35  ;;  %11699 = vst [vmem:[%s13814_s22 + $0x98] sm:$0xff] %v10499_v37   ;;  %v10494_v49 = vpack.c.bf16 %v771_v45, %v768_v21 }
 0x173   : > { %11731 = vst [vmem:[%s13814_s22 + $0x198] sm:$0xff] %v10659_v38   ;;  %v1306_v50 = vmul.f32 %v771_v45, %v771_v45  ;;  %v10654_v51 = vpack.c.bf16 %v1840_v46, %v1837_v23  ;;  %12744 = vmatprep.subr.bf16.mxu0 %v13259_v52  ;;  %v1235_v54 = vadd.f32 %v1234_v41, %v771_v45  ;;  %v13908_v57 = vpop.f32.mrf.mxu0  ;;  %v13910_v58 = vpop.f32.mrf.mxu1 }
 0x174   : > { %v2437_v53 = vadd.f32 %v2436_v44, %v2374_v43  ;;  %v2304_v55 = vadd.f32 %v2303_v42, %v1840_v46  ;;  %v2375_v56 = vmul.f32 %v1840_v46, %v1840_v46  ;;  %12601 = vmatmul.mubr.bf16.gmra.mxu0 %v13129_v34  ;;  %v1307_v59 = vmul.f32 %v13888_v15, %v13888_v15 }
 0x175   : > { %v2376_v60 = vmul.f32 %v13890_v16, %v13890_v16  ;;  %11698 = vst [vmem:[%s13814_s22 + $0x90] sm:$0xff] %v10494_v49   ;;  %v1369_v61 = vadd.f32 %v1368_v48, %v1306_v50  ;;  %11730 = vst [vmem:[%s13814_s22 + $0x190] sm:$0xff] %v10654_v51   ;;  %12681 = vmatmul.mubr.bf16.gmra.mxu1 %v13130_v39  ;;  %12604 = vmatprep.mubr.bf16.mxu0 %v13131_v40  ;;  %v784_v63 = vpop.f32.mrf.mxu0  ;;  %v1853_v1 = vpop.f32.mrf.mxu1 }
 0x176   : > { %v2438_v62 = vadd.f32 %v2437_v53, %v2375_v56  ;;  %v1236_v0 = vadd.f32 %v13888_v15, %v1235_v54  ;;  %v2305_v2 = vadd.f32 %v13890_v16, %v2304_v55  ;;  %12684 = vmatprep.mubr.bf16.mxu1 %v13132_v47  ;;  %12823 = vmatpush3.bf16.msra.mxu1 %v13258_v27  ;;  %v13261_v47 = vld [vmem:[#allocation5 + $0x8] sm:$0xff]  }
 0x177   : > { %v1308_v3 = vmul.f32 %v12311_v32, %v12311_v32  ;;  %v1370_v4 = vadd.f32 %v1369_v61, %v1307_v59  ;;  %12745 = vmatpush3.bf16.msra.mxu0 %v13259_v52  ;;  %12824 = vmatprep.subr.bf16.mxu1 %v13259_v52  ;;  %v2377_v5 = vmul.f32 %v12391_v33, %v12391_v33  ;;  %v12315_v9 = vpop.f32.mrf.mxu0  ;;  %v12395_v10 = vpop.f32.mrf.mxu1  ;;  %v13137_v53 = vld [vmem:[%s13618_s30 + $0x448] sm:$0xff]   ;;  %v13139_v59 = vld [vmem:[%s13618_s30 + $0x450] sm:$0xff]  }
 0x178   : > { %v1237_v6 = vadd.f32 %v12311_v32, %v1236_v0  ;;  %v2306_v7 = vadd.f32 %v12391_v33, %v2305_v2  ;;  %v2439_v8 = vadd.f32 %v2438_v62, %v2376_v60  ;;  %12746 = vmatprep.subr.bf16.mxu0 %v13260_v12  ;;  %v1309_v13 = vmul.f32 %v784_v63, %v784_v63  ;;  %v13262_v60 = vld [vmem:[#allocation5] sm:$0xff]  }
 0x179   : > { %v1371_v14 = vadd.f32 %v1370_v4, %v1308_v3  ;;  %v10509_v15 = vpack.c.bf16 %v12315_v9, %v13908_v57  ;;  %v10669_v16 = vpack.c.bf16 %v12395_v10, %v13910_v58  ;;  %v2378_v21 = vmul.f32 %v1853_v1, %v1853_v1  ;;  %v787_v23 = vpop.f32.mrf.mxu0  ;;  %v1856_v24 = vpop.f32.mrf.mxu1  ;;  %v13140_v3 = vld [vmem:[%s13618_s30 + $0x550] sm:$0xff]  }
 0x17a   : > { %v1238_v19 = vadd.f32 %v1237_v6, %v784_v63  ;;  %v2307_v20 = vadd.f32 %v2306_v7, %v1853_v1  ;;  %v2440_v22 = vadd.f32 %v2439_v8, %v2377_v5  ;;  %12825 = vmatpush3.bf16.msra.mxu1 %v13259_v52  ;;  %v10504_v27 = vpack.c.bf16 %v787_v23, %v784_v63 }
 0x17b   : > { %v1372_v26 = vadd.f32 %v1371_v14, %v1309_v13  ;;  %11701 = vst [vmem:[%s13814_s22 + $0xa8] sm:$0xff] %v10509_v15   ;;  %11733 = vst [vmem:[%s13814_s22 + $0x1a8] sm:$0xff] %v10669_v16   ;;  %v1310_v28 = vmul.f32 %v787_v23, %v787_v23  ;;  %v10664_v29 = vpack.c.bf16 %v1856_v24, %v1853_v1  ;;  %12747 = vmatpush3.bf16.msra.mxu0 %v13260_v12  ;;  %v13928_v34 = vpop.f32.mrf.mxu0  ;;  %v13930_v35 = vpop.f32.mrf.mxu1 }
 0x17c   : > { %v2441_v30 = vadd.f32 %v2440_v22, %v2378_v21  ;;  %v1239_v31 = vadd.f32 %v1238_v19, %v787_v23  ;;  %v2308_v32 = vadd.f32 %v2307_v20, %v1856_v24  ;;  %v2379_v33 = vmul.f32 %v1856_v24, %v1856_v24  ;;  %12605 = vmatmul.mubr.bf16.gmra.mxu0 %v13133_v11 }
 0x17d   : > { %v1311_v36 = vmul.f32 %v13908_v57, %v13908_v57  ;;  %v2380_v37 = vmul.f32 %v13910_v58, %v13910_v58  ;;  %11700 = vst [vmem:[%s13814_s22 + $0xa0] sm:$0xff] %v10504_v27   ;;  %v1373_v38 = vadd.f32 %v1372_v26, %v1310_v28  ;;  %11732 = vst [vmem:[%s13814_s22 + $0x1a0] sm:$0xff] %v10664_v29   ;;  %12685 = vmatmul.mubr.bf16.gmra.mxu1 %v13134_v17  ;;  %v800_v40 = vpop.f32.mrf.mxu0  ;;  %v1869_v42 = vpop.f32.mrf.mxu1 }
 0x17e   : > { %12608 = vmatprep.mubr.bf16.mxu0 %v13135_v18  ;;  %v2442_v39 = vadd.f32 %v2441_v30, %v2379_v33  ;;  %v1240_v41 = vadd.f32 %v13908_v57, %v1239_v31  ;;  %v2309_v43 = vadd.f32 %v13910_v58, %v2308_v32  ;;  %12688 = vmatprep.mubr.bf16.mxu1 %v13136_v25  ;;  %v13138_v58 = vld [vmem:[%s13618_s30 + $0x548] sm:$0xff]   ;;  %v13141_v30 = vld [vmem:[%s13618_s30 + $0x458] sm:$0xff]  }
 0x17f   : > { %12826 = vmatprep.subr.bf16.mxu1 %v13260_v12  ;;  %v1312_v44 = vmul.f32 %v12315_v9, %v12315_v9  ;;  %v2381_v45 = vmul.f32 %v12395_v10, %v12395_v10  ;;  %v1374_v46 = vadd.f32 %v1373_v38, %v1311_v36  ;;  %12748 = vmatprep.subr.bf16.mxu0 %v13261_v47  ;;  %v12319_v51 = vpop.f32.mrf.mxu0  ;;  %v12399_v52 = vpop.f32.mrf.mxu1  ;;  %v13143_v36 = vld [vmem:[%s13618_s30 + $0x460] sm:$0xff]  }
 0x180   : > { %12827 = vmatpush3.bf16.msra.mxu1 %v13260_v12  ;;  %v1241_v48 = vadd.f32 %v12315_v9, %v1240_v41  ;;  %v2310_v49 = vadd.f32 %v12395_v10, %v2309_v43  ;;  %v2443_v50 = vadd.f32 %v2442_v39, %v2380_v37  ;;  %12749 = vmatpush3.bf16.msra.mxu0 %v13261_v47  ;;  %v13144_v43 = vld [vmem:[%s13618_s30 + $0x560] sm:$0xff]  }
 0x181   : > { %12828 = vmatprep.subr.bf16.mxu1 %v13261_v47  ;;  %v1313_v54 = vmul.f32 %v800_v40, %v800_v40  ;;  %v1375_v55 = vadd.f32 %v1374_v46, %v1312_v44  ;;  %v10519_v56 = vpack.c.bf16 %v12319_v51, %v13928_v34  ;;  %v10679_v57 = vpack.c.bf16 %v12399_v52, %v13930_v35  ;;  %v803_v1 = vpop.f32.mrf.mxu0  ;;  %v1872_v2 = vpop.f32.mrf.mxu1 }
 0x182   : > { %12750 = vmatprep.subr.bf16.mxu0 %v13262_v60  ;;  %v1242_v61 = vadd.f32 %v1241_v48, %v800_v40  ;;  %v2311_v62 = vadd.f32 %v2310_v49, %v1869_v42  ;;  %v2382_v63 = vmul.f32 %v1869_v42, %v1869_v42  ;;  %v2444_v0 = vadd.f32 %v2443_v50, %v2381_v45 }
 0x183   : > { %v1376_v4 = vadd.f32 %v1375_v55, %v1313_v54  ;;  %11703 = vst [vmem:[%s13814_s22 + $0xb8] sm:$0xff] %v10519_v56   ;;  %11735 = vst [vmem:[%s13814_s22 + $0x1b8] sm:$0xff] %v10679_v57   ;;  %v10514_v5 = vpack.c.bf16 %v803_v1, %v800_v40  ;;  %v1314_v6 = vmul.f32 %v803_v1, %v803_v1  ;;  %v13948_v12 = vpop.f32.mrf.mxu0  ;;  %v13950_v13 = vpop.f32.mrf.mxu1 }
 0x184   : > { %v10674_v7 = vpack.c.bf16 %v1872_v2, %v1869_v42  ;;  %12829 = vmatpush3.bf16.msra.mxu1 %v13261_v47  ;;  %v2445_v8 = vadd.f32 %v2444_v0, %v2382_v63  ;;  %v1243_v9 = vadd.f32 %v1242_v61, %v803_v1  ;;  %v2312_v10 = vadd.f32 %v2311_v62, %v1872_v2 }
 0x185   : > { %v2383_v11 = vmul.f32 %v1872_v2, %v1872_v2  ;;  %12609 = vmatmul.mubr.bf16.gmra.mxu0 %v13137_v53  ;;  %v1315_v14 = vmul.f32 %v13928_v34, %v13928_v34  ;;  %v2384_v15 = vmul.f32 %v13930_v35, %v13930_v35  ;;  %11702 = vst [vmem:[%s13814_s22 + $0xb0] sm:$0xff] %v10514_v5   ;;  %v816_v18 = vpop.f32.mrf.mxu0  ;;  %v1885_v20 = vpop.f32.mrf.mxu1 }
 0x186   : > { %v1377_v16 = vadd.f32 %v1376_v4, %v1314_v6  ;;  %11734 = vst [vmem:[%s13814_s22 + $0x1b0] sm:$0xff] %v10674_v7   ;;  %12689 = vmatmul.mubr.bf16.gmra.mxu1 %v13138_v58  ;;  %12612 = vmatprep.mubr.bf16.mxu0 %v13139_v59  ;;  %v1244_v19 = vadd.f32 %v13928_v34, %v1243_v9  ;;  %v13145_v6 = vld [vmem:[%s13618_s30 + $0x468] sm:$0xff]  }
 0x187   : > { %v2446_v17 = vadd.f32 %v2445_v8, %v2383_v11  ;;  %v2313_v21 = vadd.f32 %v13930_v35, %v2312_v10  ;;  %12692 = vmatprep.mubr.bf16.mxu1 %v13140_v3  ;;  %12751 = vmatpush3.bf16.msra.mxu0 %v13262_v60  ;;  %v1316_v22 = vmul.f32 %v12319_v51, %v12319_v51  ;;  %v12323_v28 = vpop.f32.mrf.mxu0  ;;  %v12403_v29 = vpop.f32.mrf.mxu1  ;;  %v13142_v35 = vld [vmem:[%s13618_s30 + $0x558] sm:$0xff]   ;;  %v13146_v11 = vld [vmem:[%s13618_s30 + $0x568] sm:$0xff]  }
 0x188   : > { %v1378_v23 = vadd.f32 %v1377_v16, %v1315_v14  ;;  %12830 = vmatprep.subr.bf16.mxu1 %v13262_v60  ;;  %v2385_v24 = vmul.f32 %v12399_v52, %v12399_v52  ;;  %v1245_v25 = vadd.f32 %v12319_v51, %v1244_v19  ;;  %v1317_v31 = vmul.f32 %v816_v18, %v816_v18  ;;  %v13148_v19 = vld [vmem:[%s13618_s30 + $0x570] sm:$0xff]  }
 0x189   : > { %v2314_v26 = vadd.f32 %v12399_v52, %v2313_v21  ;;  %v2447_v27 = vadd.f32 %v2446_v17, %v2384_v15  ;;  %12831 = vmatpush3.bf16.msra.mxu1 %v13262_v60  ;;  %v10529_v33 = vpack.c.bf16 %v12323_v28, %v13948_v12  ;;  %v10689_v34 = vpack.c.bf16 %v12403_v29, %v13950_v13  ;;  %v819_v41 = vpop.f32.mrf.mxu0  ;;  %v1888_v42 = vpop.f32.mrf.mxu1 }
 0x18a   : > { %v1379_v32 = vadd.f32 %v1378_v23, %v1316_v22  ;;  %v1246_v37 = vadd.f32 %v1245_v25, %v816_v18  ;;  %v2386_v39 = vmul.f32 %v1885_v20, %v1885_v20  ;;  %v10524_v45 = vpack.c.bf16 %v819_v41, %v816_v18 }
 0x18b   : > { %v2315_v38 = vadd.f32 %v2314_v26, %v1885_v20  ;;  %v2448_v40 = vadd.f32 %v2447_v27, %v2385_v24  ;;  %11705 = vst [vmem:[%s13814_s22 + $0xc8] sm:$0xff] %v10529_v33   ;;  %11737 = vst [vmem:[%s13814_s22 + $0x1c8] sm:$0xff] %v10689_v34   ;;  %v1318_v46 = vmul.f32 %v819_v41, %v819_v41  ;;  %v12326_v52 = vpop.f32.mrf.mxu0  ;;  %v12406_v53 = vpop.f32.mrf.mxu1 }
 0x18c   : > { %v1380_v44 = vadd.f32 %v1379_v32, %v1317_v31  ;;  %v10684_v47 = vpack.c.bf16 %v1888_v42, %v1885_v20  ;;  %v1247_v49 = vadd.f32 %v1246_v37, %v819_v41  ;;  %v2387_v51 = vmul.f32 %v1888_v42, %v1888_v42  ;;  %11704 = vst [vmem:[%s13814_s22 + $0xc0] sm:$0xff] %v10524_v45  }
 0x18d   : > { %v2449_v48 = vadd.f32 %v2448_v40, %v2386_v39  ;;  %v2316_v50 = vadd.f32 %v2315_v38, %v1888_v42  ;;  %12613 = vmatmul.mubr.bf16.gmra.mxu0 %v13141_v30  ;;  %v1319_v54 = vmul.f32 %v13948_v12, %v13948_v12  ;;  %v2388_v56 = vmul.f32 %v13950_v13, %v13950_v13  ;;  %v832_v58 = vpop.f32.mrf.mxu0  ;;  %v1901_v60 = vpop.f32.mrf.mxu1 }
 0x18e   : > { %v1381_v55 = vadd.f32 %v1380_v44, %v1318_v46  ;;  %11736 = vst [vmem:[%s13814_s22 + $0x1c0] sm:$0xff] %v10684_v47   ;;  %12693 = vmatmul.mubr.bf16.gmra.mxu1 %v13142_v35  ;;  %12616 = vmatprep.mubr.bf16.mxu0 %v13143_v36  ;;  %v1248_v59 = vadd.f32 %v13948_v12, %v1247_v49  ;;  %v13147_v12 = vld [vmem:[%s13618_s30 + $0x470] sm:$0xff]   ;;  %v13149_v46 = vld [vmem:[%s13618_s30 + $0x478] sm:$0xff]  }
 0x18f   : > { %v2450_v57 = vadd.f32 %v2449_v48, %v2387_v51  ;;  %v2317_v61 = vadd.f32 %v13950_v13, %v2316_v50  ;;  %12696 = vmatprep.mubr.bf16.mxu1 %v13144_v43  ;;  %v1320_v62 = vmul.f32 %v12323_v28, %v12323_v28  ;;  %v2389_v0 = vmul.f32 %v12403_v29, %v12403_v29  ;;  %v12327_v4 = vpop.f32.mrf.mxu0  ;;  %v12407_v5 = vpop.f32.mrf.mxu1  ;;  %v13150_v51 = vld [vmem:[%s13618_s30 + $0x578] sm:$0xff]  }
 0x190   : > { %v1382_v63 = vadd.f32 %v1381_v55, %v1319_v54  ;;  %v1249_v1 = vadd.f32 %v12323_v28, %v1248_v59  ;;  %v1321_v7 = vmul.f32 %v832_v58, %v832_v58  ;;  %v10539_v9 = vpack.c.bf16 %v12327_v4, %v12326_v52  ;;  %v13152_v59 = vld [vmem:[%s13618_s30 + $0x580] sm:$0xff]  }
 0x191   : > { %v2318_v2 = vadd.f32 %v12403_v29, %v2317_v61  ;;  %v2451_v3 = vadd.f32 %v2450_v57, %v2388_v56  ;;  %v10699_v10 = vpack.c.bf16 %v12407_v5, %v12406_v53  ;;  %v2390_v15 = vmul.f32 %v1901_v60, %v1901_v60  ;;  %v835_v17 = vpop.f32.mrf.mxu0  ;;  %v1904_v18 = vpop.f32.mrf.mxu1 }
 0x192   : > { %v1383_v8 = vadd.f32 %v1382_v63, %v1320_v62  ;;  %v1250_v13 = vadd.f32 %v1249_v1, %v832_v58  ;;  %11707 = vst [vmem:[%s13814_s22 + $0xd8] sm:$0xff] %v10539_v9   ;;  %v10534_v21 = vpack.c.bf16 %v835_v17, %v832_v58  ;;  %v1322_v22 = vmul.f32 %v835_v17, %v835_v17 }
 0x193   : > { %v2319_v14 = vadd.f32 %v2318_v2, %v1901_v60  ;;  %v2452_v16 = vadd.f32 %v2451_v3, %v2389_v0  ;;  %11739 = vst [vmem:[%s13814_s22 + $0x1d8] sm:$0xff] %v10699_v10   ;;  %v10694_v23 = vpack.c.bf16 %v1904_v18, %v1901_v60  ;;  %v2391_v27 = vmul.f32 %v1904_v18, %v1904_v18  ;;  %v12330_v28 = vpop.f32.mrf.mxu0  ;;  %v12410_v29 = vpop.f32.mrf.mxu1 }
 0x194   : > { %v1384_v20 = vadd.f32 %v1383_v8, %v1321_v7  ;;  %v1251_v25 = vadd.f32 %v1250_v13, %v835_v17  ;;  %v1323_v30 = vmul.f32 %v12326_v52, %v12326_v52  ;;  %11706 = vst [vmem:[%s13814_s22 + $0xd0] sm:$0xff] %v10534_v21   ;;  %v2392_v32 = vmul.f32 %v12406_v53, %v12406_v53 }
 0x195   : > { %v2453_v24 = vadd.f32 %v2452_v16, %v2390_v15  ;;  %v2320_v26 = vadd.f32 %v2319_v14, %v1904_v18  ;;  %12617 = vmatmul.mubr.bf16.gmra.mxu0 %v13145_v6  ;;  %11738 = vst [vmem:[%s13814_s22 + $0x1d0] sm:$0xff] %v10694_v23   ;;  %v848_v34 = vpop.f32.mrf.mxu0  ;;  %v1917_v36 = vpop.f32.mrf.mxu1  ;;  %v1324_v38 = vmul.f32 %v12327_v4, %v12327_v4 }
 0x196   : > { %v1385_v31 = vadd.f32 %v1384_v20, %v1322_v22  ;;  %12697 = vmatmul.mubr.bf16.gmra.mxu1 %v13146_v11  ;;  %12620 = vmatprep.mubr.bf16.mxu0 %v13147_v12  ;;  %v1252_v35 = vadd.f32 %v12326_v52, %v1251_v25  ;;  %v2393_v40 = vmul.f32 %v12407_v5, %v12407_v5  ;;  %v13151_v52 = vld [vmem:[%s13618_s30 + $0x480] sm:$0xff]   ;;  %v13153_v22 = vld [vmem:[%s13618_s30 + $0x488] sm:$0xff]  }
 0x197   : > { %v2454_v33 = vadd.f32 %v2453_v24, %v2391_v27  ;;  %v2321_v37 = vadd.f32 %v12406_v53, %v2320_v26  ;;  %12700 = vmatprep.mubr.bf16.mxu1 %v13148_v19  ;;  %v12331_v44 = vpop.f32.mrf.mxu0  ;;  %v12411_v45 = vpop.f32.mrf.mxu1  ;;  %v1325_v47 = vmul.f32 %v848_v34, %v848_v34  ;;  %v2394_v55 = vmul.f32 %v1917_v36, %v1917_v36  ;;  %v13154_v27 = vld [vmem:[%s13618_s30 + $0x588] sm:$0xff]  }
 0x198   : > { %v1386_v39 = vadd.f32 %v1385_v31, %v1323_v30  ;;  %v1253_v41 = vadd.f32 %v12327_v4, %v1252_v35  ;;  %v10549_v49 = vpack.c.bf16 %v12331_v44, %v12330_v28  ;;  %v10709_v50 = vpack.c.bf16 %v12411_v45, %v12410_v29  ;;  %v13156_v35 = vld [vmem:[%s13618_s30 + $0x590] sm:$0xff]  }
 0x199   : > { %v2322_v42 = vadd.f32 %v12407_v5, %v2321_v37  ;;  %v2455_v43 = vadd.f32 %v2454_v33, %v2392_v32  ;;  %v851_v57 = vpop.f32.mrf.mxu0  ;;  %v1920_v58 = vpop.f32.mrf.mxu1  ;;  %v1327_v6 = vmul.f32 %v12330_v28, %v12330_v28  ;;  %v2396_v8 = vmul.f32 %v12410_v29, %v12410_v29 }
 0x19a   : > { %v1387_v48 = vadd.f32 %v1386_v39, %v1324_v38  ;;  %v1254_v53 = vadd.f32 %v1253_v41, %v848_v34  ;;  %11709 = vst [vmem:[%s13814_s22 + $0xe8] sm:$0xff] %v10549_v49   ;;  %11741 = vst [vmem:[%s13814_s22 + $0x1e8] sm:$0xff] %v10709_v50   ;;  %v10544_v61 = vpack.c.bf16 %v851_v57, %v848_v34 }
 0x19b   : > { %v2323_v54 = vadd.f32 %v2322_v42, %v1917_v36  ;;  %v2456_v56 = vadd.f32 %v2455_v43, %v2393_v40  ;;  %v1326_v62 = vmul.f32 %v851_v57, %v851_v57  ;;  %v10704_v63 = vpack.c.bf16 %v1920_v58, %v1917_v36  ;;  %v12334_v4 = vpop.f32.mrf.mxu0  ;;  %v12414_v5 = vpop.f32.mrf.mxu1 }
 0x19c   : > { %v1388_v60 = vadd.f32 %v1387_v48, %v1325_v47  ;;  %v1255_v1 = vadd.f32 %v1254_v53, %v851_v57  ;;  %v2395_v3 = vmul.f32 %v1920_v58, %v1920_v58  ;;  %11708 = vst [vmem:[%s13814_s22 + $0xe0] sm:$0xff] %v10544_v61   ;;  %v1328_v14 = vmul.f32 %v12331_v44, %v12331_v44 }
 0x19d   : > { %v2457_v0 = vadd.f32 %v2456_v56, %v2394_v55  ;;  %v2324_v2 = vadd.f32 %v2323_v54, %v1920_v58  ;;  %12621 = vmatmul.mubr.bf16.gmra.mxu0 %v13149_v46  ;;  %11740 = vst [vmem:[%s13814_s22 + $0x1e0] sm:$0xff] %v10704_v63   ;;  %v864_v10 = vpop.f32.mrf.mxu0  ;;  %v1933_v12 = vpop.f32.mrf.mxu1  ;;  %v2397_v16 = vmul.f32 %v12411_v45, %v12411_v45  ;;  %v13157_v63 = vld [vmem:[%s13618_s30 + $0x498] sm:$0xff]  }
 0x19e   : > { %v1389_v7 = vadd.f32 %v1388_v60, %v1326_v62  ;;  %12701 = vmatmul.mubr.bf16.gmra.mxu1 %v13150_v51  ;;  %12624 = vmatprep.mubr.bf16.mxu0 %v13151_v52  ;;  %v1256_v11 = vadd.f32 %v12330_v28, %v1255_v1  ;;  %v1329_v23 = vmul.f32 %v864_v10, %v864_v10  ;;  %v13155_v28 = vld [vmem:[%s13618_s30 + $0x490] sm:$0xff]  }
 0x19f   : > { %v2458_v9 = vadd.f32 %v2457_v0, %v2395_v3  ;;  %v2325_v13 = vadd.f32 %v12410_v29, %v2324_v2  ;;  %12704 = vmatprep.mubr.bf16.mxu1 %v13152_v59  ;;  %v12335_v20 = vpop.f32.mrf.mxu0  ;;  %v12415_v21 = vpop.f32.mrf.mxu1  ;;  %v2398_v31 = vmul.f32 %v1933_v12, %v1933_v12  ;;  %v1331_v46 = vmul.f32 %v12334_v4, %v12334_v4 }
 0x1a0   : > { %v1390_v15 = vadd.f32 %v1389_v7, %v1327_v6  ;;  %v1257_v17 = vadd.f32 %v12331_v44, %v1256_v11  ;;  %v10559_v25 = vpack.c.bf16 %v12335_v20, %v12334_v4  ;;  %v10719_v26 = vpack.c.bf16 %v12415_v21, %v12414_v5  ;;  %v13159_v11 = vld [vmem:[%s13618_s30 + $0x4a0] sm:$0xff]  }
 0x1a1   : > { %v2326_v18 = vadd.f32 %v12411_v45, %v2325_v13  ;;  %v2459_v19 = vadd.f32 %v2458_v9, %v2396_v8  ;;  %v867_v33 = vpop.f32.mrf.mxu0  ;;  %v1936_v34 = vpop.f32.mrf.mxu1  ;;  %v2400_v48 = vmul.f32 %v12414_v5, %v12414_v5  ;;  %v1332_v54 = vmul.f32 %v12335_v20, %v12335_v20 }
 0x1a2   : > { %v1391_v24 = vadd.f32 %v1390_v15, %v1328_v14  ;;  %v1258_v29 = vadd.f32 %v1257_v17, %v864_v10  ;;  %11711 = vst [vmem:[%s13814_s22 + $0xf8] sm:$0xff] %v10559_v25   ;;  %11743 = vst [vmem:[%s13814_s22 + $0x1f8] sm:$0xff] %v10719_v26   ;;  %v10554_v37 = vpack.c.bf16 %v867_v33, %v864_v10 }
 0x1a3   : > { %v2327_v30 = vadd.f32 %v2326_v18, %v1933_v12  ;;  %v2460_v32 = vadd.f32 %v2459_v19, %v2397_v16  ;;  %v1330_v38 = vmul.f32 %v867_v33, %v867_v33  ;;  %v10714_v39 = vpack.c.bf16 %v1936_v34, %v1933_v12  ;;  %v13998_v44 = vpop.f32.mrf.mxu0  ;;  %v14000_v45 = vpop.f32.mrf.mxu1  ;;  %v13160_v12 = vld [vmem:[%s13618_s30 + $0x5a0] sm:$0xff]  }
 0x1a4   : > { %v1392_v36 = vadd.f32 %v1391_v24, %v1329_v23  ;;  %v1259_v41 = vadd.f32 %v1258_v29, %v867_v33  ;;  %v2399_v43 = vmul.f32 %v1936_v34, %v1936_v34  ;;  %11710 = vst [vmem:[%s13814_s22 + $0xf0] sm:$0xff] %v10554_v37   ;;  %v2401_v55 = vmul.f32 %v12415_v21, %v12415_v21 }
 0x1a5   : > { %v2461_v40 = vadd.f32 %v2460_v32, %v2398_v31  ;;  %v2328_v42 = vadd.f32 %v2327_v30, %v1936_v34  ;;  %12625 = vmatmul.mubr.bf16.gmra.mxu0 %v13153_v22  ;;  %11742 = vst [vmem:[%s13814_s22 + $0x1f0] sm:$0xff] %v10714_v39   ;;  %v2762_v52 = vpop.f32.mrf.mxu0  ;;  %v3831_v53 = vpop.f32.mrf.mxu1  ;;  %v3409_v60 = vmul.f32 %v13998_v44, %v13998_v44 }
 0x1a6   : > { %v1393_v47 = vadd.f32 %v1392_v36, %v1330_v38  ;;  %12705 = vmatmul.mubr.bf16.gmra.mxu1 %v13154_v27  ;;  %12628 = vmatprep.mubr.bf16.mxu0 %v13155_v28  ;;  %v1260_v49 = vadd.f32 %v12334_v4, %v1259_v41  ;;  %v3407_v1 = vmul.f32 %v2762_v52, %v2762_v52  ;;  %v13158_v4 = vld [vmem:[%s13618_s30 + $0x598] sm:$0xff]  }
 0x1a7   : > { %v2329_v50 = vadd.f32 %v12414_v5, %v2328_v42  ;;  %v2462_v51 = vadd.f32 %v2461_v40, %v2399_v43  ;;  %12708 = vmatprep.mubr.bf16.mxu1 %v13156_v35  ;;  %v12435_v61 = vpop.f32.mrf.mxu0  ;;  %v14006_v62 = vpop.f32.mrf.mxu1  ;;  %v4476_v8 = vmul.f32 %v3831_v53, %v3831_v53  ;;  %v4478_v30 = vmul.f32 %v14000_v45, %v14000_v45  ;;  %v13161_v43 = vld [vmem:[%s13618_s30 + $0x4a8] sm:$0xff]  }
 0x1a8   : > { %v1394_v56 = vadd.f32 %v1393_v47, %v1331_v46  ;;  %v1261_v57 = vadd.f32 %v12335_v20, %v1260_v49  ;;  %v10729_v2 = vpack.c.bf16 %v12435_v61, %v13998_v44  ;;  %v10889_v3 = vpack.c.bf16 %v14006_v62, %v14000_v45 }
 0x1a9   : > { %v2330_v58 = vadd.f32 %v12415_v21, %v2329_v50  ;;  %v2463_v59 = vadd.f32 %v2462_v51, %v2400_v48  ;;  %v2765_v9 = vpop.f32.mrf.mxu0  ;;  %v3834_v10 = vpop.f32.mrf.mxu1  ;;  %v3410_v34 = vmul.f32 %v12435_v61, %v12435_v61  ;;  %v4479_v40 = vmul.f32 %v14006_v62, %v14006_v62  ;;  %v13162_v50 = vld [vmem:[%s13618_s30 + $0x5a8] sm:$0xff]  }
 0x1aa   : > { %v1395_v0 = vadd.f32 %v1394_v56, %v1332_v54  ;;  %v1262_v5 = vrot.slane %v1261_v57, 4  ;;  %11745 = vst [vmem:[%s13814_s22 + $0x208] sm:$0xff] %v10729_v2   ;;  %11777 = vst [vmem:[%s13814_s22 + $0x308] sm:$0xff] %v10889_v3   ;;  %v10724_v14 = vpack.c.bf16 %v2765_v9, %v2762_v52  ;;  %v3337_v15 = vadd.f32 %v2765_v9, %v2762_v52  ;;  %v13163_v56 = vld [vmem:[%s13618_s30 + $0x4b0] sm:$0xff]  }
 0x1ab   : > { %v2331_v6 = vrot.slane %v2330_v58, 4  ;;  %v2464_v7 = vadd.f32 %v2463_v59, %v2401_v55  ;;  %v3408_v16 = vmul.f32 %v2765_v9, %v2765_v9  ;;  %v10884_v20 = vpack.c.bf16 %v3834_v10, %v3831_v53  ;;  %v14017_v21 = vpop.f32.mrf.mxu0  ;;  %v14019_v22 = vpop.f32.mrf.mxu1 }
 0x1ac   : > { %v1396_v13 = vrot.slane %v1395_v0, 4  ;;  %v1263_v17 = vadd.f32 %v1262_v5, %v1261_v57  ;;  %11744 = vst [vmem:[%s13814_s22 + $0x200] sm:$0xff] %v10724_v14   ;;  %v4406_v25 = vadd.f32 %v3834_v10, %v3831_v53  ;;  %v4477_v26 = vmul.f32 %v3834_v10, %v3834_v10 }
 0x1ad   : > { %v2332_v18 = vadd.f32 %v2331_v6, %v2330_v58  ;;  %v2465_v19 = vrot.slane %v2464_v7, 4  ;;  %12629 = vmatmul.mubr.bf16.gmra.mxu0 %v13157_v63  ;;  %v3471_v24 = vadd.f32 %v3408_v16, %v3407_v1  ;;  %11776 = vst [vmem:[%s13814_s22 + $0x300] sm:$0xff] %v10884_v20   ;;  %v14025_v31 = vpop.f32.mrf.mxu0  ;;  %v14027_v32 = vpop.f32.mrf.mxu1  ;;  %v3338_v36 = vadd.f32 %v13998_v44, %v3337_v15 }
 0x1ae   : > { %v1397_v23 = vadd.f32 %v1396_v13, %v1395_v0  ;;  %12709 = vmatmul.mubr.bf16.gmra.mxu1 %v13158_v4  ;;  %v1264_v27 = vrot.slane %v1263_v17, 2  ;;  %12632 = vmatprep.mubr.bf16.mxu0 %v13159_v11  ;;  %v4540_v35 = vadd.f32 %v4477_v26, %v4476_v8  ;;  %v4407_v49 = vadd.f32 %v14000_v45, %v4406_v25 }
 0x1af   : > { %v2333_v28 = vrot.slane %v2332_v18, 2  ;;  %v2466_v29 = vadd.f32 %v2465_v19, %v2464_v7  ;;  %12712 = vmatprep.mubr.bf16.mxu1 %v13160_v12  ;;  %v14032_v41 = vpop.f32.mrf.mxu0  ;;  %v14034_v42 = vpop.f32.mrf.mxu1  ;;  %v3339_v47 = vadd.f32 %v12435_v61, %v3338_v36  ;;  %v3472_v48 = vadd.f32 %v3471_v24, %v3409_v60  ;;  %v13164_v61 = vld [vmem:[%s13618_s30 + $0x5b0] sm:$0xff]   ;;  %v13165_v24 = vld [vmem:[%s13618_s30 + $0x4b8] sm:$0xff]  }
 0x1b0   : > { %v1398_v33 = vrot.slane %v1397_v23, 2  ;;  %v1265_v37 = vadd.f32 %v1264_v27, %v1263_v17  ;;  %v3411_v53 = vmul.f32 %v14025_v31, %v14025_v31  ;;  %v4408_v63 = vadd.f32 %v14006_v62, %v4407_v49  ;;  %v13166_v27 = vld [vmem:[%s13618_s30 + $0x5b8] sm:$0xff]  }
 0x1b1   : > { %v2334_v38 = vadd.f32 %v2333_v28, %v2332_v18  ;;  %v2467_v39 = vrot.slane %v2466_v29, 2  ;;  %v2781_v54 = vpop.f32.mrf.mxu0  ;;  %v3850_v55 = vpop.f32.mrf.mxu1  ;;  %v3340_v58 = vadd.f32 %v3339_v47, %v14025_v31  ;;  %v3473_v59 = vadd.f32 %v3472_v48, %v3410_v34  ;;  %v13167_v34 = vld [vmem:[%s13618_s30 + $0x4c0] sm:$0xff]  }
 0x1b2   : > { %v1399_v46 = vadd.f32 %v1398_v33, %v1397_v23  ;;  %v1266_v44 = vrot.slane %v1265_v37, 1  ;;  %v4541_v1 = vadd.f32 %v4540_v35, %v4478_v30  ;;  %v4409_v6 = vadd.f32 %v4408_v63, %v14027_v32 }
 0x1b3   : > { %v2335_v51 = vrot.slane %v2334_v38, 1  ;;  %v2468_v52 = vadd.f32 %v2467_v39, %v2466_v29  ;;  %v14045_v2 = vpop.f32.mrf.mxu0  ;;  %v14047_v3 = vpop.f32.mrf.mxu1  ;;  %v3474_v5 = vadd.f32 %v3473_v59, %v3411_v53  ;;  %v10739_v7 = vpack.c.bf16 %v14032_v41, %v14017_v21  ;;  %v13168_v39 = vld [vmem:[%s13618_s30 + $0x5c0] sm:$0xff]  }
 0x1b4   : > { %v1400_v57 = vrot.slane %v1399_v46, 1  ;;  %v1267_v60 = vadd.f32 %v1266_v44, %v1265_v37  ;;  %v4480_v9 = vmul.f32 %v14027_v32, %v14027_v32  ;;  %v4542_v10 = vadd.f32 %v4541_v1, %v4479_v40 }
 0x1b5   : > { %v2336_v0 = vadd.f32 %v2335_v51, %v2334_v38  ;;  %v2469_v45 = vrot.slane %v2468_v52, 1  ;;  %12633 = vmatmul.mubr.bf16.gmra.mxu0 %v13161_v43  ;;  %v2794_v11 = vpop.f32.mrf.mxu0  ;;  %v3863_v12 = vpop.f32.mrf.mxu1  ;;  %11747 = vst [vmem:[%s13814_s22 + $0x218] sm:$0xff] %v10739_v7   ;;  %v10899_v13 = vpack.c.bf16 %v14034_v42, %v14019_v22  ;;  %v10734_v14 = vpack.c.bf16 %v2781_v54, %v14025_v31 }
 0x1b6   : > { %v1401_v4 = vadd.f32 %v1400_v57, %v1399_v46  ;;  %12713 = vmatmul.mubr.bf16.gmra.mxu1 %v13162_v50  ;;  %12636 = vmatprep.mubr.bf16.mxu0 %v13163_v56  ;;  %v3341_v15 = vadd.f32 %v3340_v58, %v2781_v54  ;;  %v4543_v17 = vadd.f32 %v4542_v10, %v4480_v9 }
 0x1b7   : > { %v14052_v62 = vadd.f32 %v2336_v0, %v1267_v60  ;;  %v2470_v8 = vadd.f32 %v2469_v45, %v2468_v52  ;;  %12716 = vmatprep.mubr.bf16.mxu1 %v13164_v61  ;;  %v3412_v18 = vmul.f32 %v2781_v54, %v2781_v54  ;;  %v10894_v19 = vpack.c.bf16 %v3850_v55, %v14027_v32  ;;  %v14063_v20 = vpop.f32.mrf.mxu0  ;;  %v14065_v23 = vpop.f32.mrf.mxu1  ;;  %v13169_v0 = vld [vmem:[%s13618_s30 + $0x4c8] sm:$0xff]  }
 0x1b8   : > { %11779 = vst [vmem:[%s13814_s22 + $0x318] sm:$0xff] %v10899_v13   ;;  %11746 = vst [vmem:[%s13814_s22 + $0x210] sm:$0xff] %v10734_v14   ;;  %v4410_v25 = vadd.f32 %v4409_v6, %v3850_v55  ;;  %v4481_v26 = vmul.f32 %v3850_v55, %v3850_v55  ;;  %v3413_v28 = vmul.f32 %v14017_v21, %v14017_v21  ;;  %v13172_v13 = vld [vmem:[%s13618_s30 + $0x5d0] sm:$0xff]  }
 0x1b9   : > { %v14060_v16 = vadd.f32 %v2470_v8, %v1401_v4  ;;  %v4482_v29 = vmul.f32 %v14019_v22, %v14019_v22  ;;  %v3475_v30 = vadd.f32 %v3474_v5, %v3412_v18  ;;  %11778 = vst [vmem:[%s13814_s22 + $0x310] sm:$0xff] %v10894_v19   ;;  %v3342_v31 = vadd.f32 %v14017_v21, %v3341_v15  ;;  %v2797_v32 = vpop.f32.mrf.mxu0  ;;  %v3866_v33 = vpop.f32.mrf.mxu1  ;;  %v13170_v5 = vld [vmem:[%s13618_s30 + $0x5c8] sm:$0xff]  }
 0x1ba   : > { %v3414_v35 = vmul.f32 %v14032_v41, %v14032_v41  ;;  %v4544_v36 = vadd.f32 %v4543_v17, %v4481_v26  ;;  %v4411_v37 = vadd.f32 %v14019_v22, %v4410_v25  ;;  %v10749_v38 = vpack.c.bf16 %v14063_v20, %v14045_v2 }
 0x1bb   : > { %v4483_v40 = vmul.f32 %v14034_v42, %v14034_v42  ;;  %v3343_v21 = vadd.f32 %v14032_v41, %v3342_v31  ;;  %v3476_v43 = vadd.f32 %v3475_v30, %v3413_v28  ;;  %v10909_v46 = vpack.c.bf16 %v14065_v23, %v14047_v3  ;;  %v14089_v47 = vpop.f32.mrf.mxu0  ;;  %v14091_v48 = vpop.f32.mrf.mxu1 }
 0x1bc   : > { %v3415_v22 = vmul.f32 %v2794_v11, %v2794_v11  ;;  %v4412_v49 = vadd.f32 %v14034_v42, %v4411_v37  ;;  %v4545_v50 = vadd.f32 %v4544_v36, %v4482_v29  ;;  %11749 = vst [vmem:[%s13814_s22 + $0x228] sm:$0xff] %v10749_v38   ;;  %v10744_v44 = vpack.c.bf16 %v2797_v32, %v2794_v11 }
 0x1bd   : > { %12637 = vmatmul.mubr.bf16.gmra.mxu0 %v13165_v24  ;;  %v3344_v51 = vadd.f32 %v3343_v21, %v2794_v11  ;;  %v3477_v41 = vadd.f32 %v3476_v43, %v3414_v35  ;;  %11781 = vst [vmem:[%s13814_s22 + $0x328] sm:$0xff] %v10909_v46   ;;  %v3416_v52 = vmul.f32 %v2797_v32, %v2797_v32  ;;  %v2810_v54 = vpop.f32.mrf.mxu0  ;;  %v3879_v55 = vpop.f32.mrf.mxu1  ;;  %v13173_v43 = vld [vmem:[%s13618_s30 + $0x4d8] sm:$0xff]  }
 0x1be   : > { %12717 = vmatmul.mubr.bf16.gmra.mxu1 %v13166_v27  ;;  %v10904_v53 = vpack.c.bf16 %v3866_v33, %v3863_v12  ;;  %12640 = vmatprep.mubr.bf16.mxu0 %v13167_v34  ;;  %v4413_v56 = vadd.f32 %v4412_v49, %v3863_v12  ;;  %v4484_v57 = vmul.f32 %v3863_v12, %v3863_v12  ;;  %v13171_v12 = vld [vmem:[%s13618_s30 + $0x4d0] sm:$0xff]  }
 0x1bf   : > { %v4546_v58 = vadd.f32 %v4545_v50, %v4483_v40  ;;  %11748 = vst [vmem:[%s13814_s22 + $0x220] sm:$0xff] %v10744_v44   ;;  %v4485_v42 = vmul.f32 %v3866_v33, %v3866_v33  ;;  %12720 = vmatprep.mubr.bf16.mxu1 %v13168_v39  ;;  %v3478_v59 = vadd.f32 %v3477_v41, %v3415_v22  ;;  %v14098_v61 = vpop.f32.mrf.mxu0  ;;  %v14100_v60 = vpop.f32.mrf.mxu1  ;;  %v13174_v50 = vld [vmem:[%s13618_s30 + $0x5d8] sm:$0xff]  }
 0x1c0   : > { %v3345_v63 = vadd.f32 %v3344_v51, %v2797_v32  ;;  %11780 = vst [vmem:[%s13814_s22 + $0x320] sm:$0xff] %v10904_v53   ;;  %v4414_v1 = vadd.f32 %v4413_v56, %v3866_v33  ;;  %v10759_v4 = vpack.c.bf16 %v14098_v61, %v14089_v47  ;;  %v3417_v6 = vmul.f32 %v14045_v2, %v14045_v2  ;;  %v13176_v56 = vld [vmem:[%s13618_s30 + $0x5e0] sm:$0xff]  }
 0x1c1   : > { %v4547_v45 = vadd.f32 %v4546_v58, %v4484_v57  ;;  %v3479_v7 = vadd.f32 %v3478_v59, %v3416_v52  ;;  %v10919_v9 = vpack.c.bf16 %v14100_v60, %v14091_v48  ;;  %v2813_v10 = vpop.f32.mrf.mxu0  ;;  %v3882_v11 = vpop.f32.mrf.mxu1  ;;  %v4486_v14 = vmul.f32 %v14047_v3, %v14047_v3 }
 0x1c2   : > { %v3346_v8 = vadd.f32 %v14045_v2, %v3345_v63  ;;  %v4415_v17 = vadd.f32 %v14047_v3, %v4414_v1  ;;  %11751 = vst [vmem:[%s13814_s22 + $0x238] sm:$0xff] %v10759_v4   ;;  %v10754_v18 = vpack.c.bf16 %v2813_v10, %v2810_v54  ;;  %v3418_v19 = vmul.f32 %v14063_v20, %v14063_v20 }
 0x1c3   : > { %v4548_v15 = vadd.f32 %v4547_v45, %v4485_v42  ;;  %v3480_v24 = vadd.f32 %v3479_v7, %v3417_v6  ;;  %11783 = vst [vmem:[%s13814_s22 + $0x338] sm:$0xff] %v10919_v9   ;;  %v10914_v25 = vpack.c.bf16 %v3882_v11, %v3879_v55  ;;  %v14121_v26 = vpop.f32.mrf.mxu0  ;;  %v14123_v27 = vpop.f32.mrf.mxu1  ;;  %v4487_v28 = vmul.f32 %v14065_v23, %v14065_v23 }
 0x1c4   : > { %v3347_v2 = vadd.f32 %v14063_v20, %v3346_v8  ;;  %v3419_v3 = vmul.f32 %v2810_v54, %v2810_v54  ;;  %v4416_v29 = vadd.f32 %v14065_v23, %v4415_v17  ;;  %11750 = vst [vmem:[%s13814_s22 + $0x230] sm:$0xff] %v10754_v18   ;;  %v3420_v32 = vmul.f32 %v2813_v10, %v2813_v10 }
 0x1c5   : > { %12641 = vmatmul.mubr.bf16.gmra.mxu0 %v13169_v0  ;;  %v4549_v30 = vadd.f32 %v4548_v15, %v4486_v14  ;;  %v3481_v20 = vadd.f32 %v3480_v24, %v3418_v19  ;;  %11782 = vst [vmem:[%s13814_s22 + $0x330] sm:$0xff] %v10914_v25   ;;  %v2826_v33 = vpop.f32.mrf.mxu0  ;;  %v3895_v34 = vpop.f32.mrf.mxu1  ;;  %v4488_v36 = vmul.f32 %v3879_v55, %v3879_v55 }
 0x1c6   : > { %12721 = vmatmul.mubr.bf16.gmra.mxu1 %v13170_v5  ;;  %v3348_v31 = vadd.f32 %v3347_v2, %v2810_v54  ;;  %12644 = vmatprep.mubr.bf16.mxu0 %v13171_v12  ;;  %v4417_v35 = vadd.f32 %v4416_v29, %v3879_v55  ;;  %v4489_v38 = vmul.f32 %v3882_v11, %v3882_v11  ;;  %v13175_v55 = vld [vmem:[%s13618_s30 + $0x4e0] sm:$0xff]   ;;  %v13177_v2 = vld [vmem:[%s13618_s30 + $0x4e8] sm:$0xff]  }
 0x1c7   : > { %12724 = vmatprep.mubr.bf16.mxu1 %v13172_v13  ;;  %v4550_v37 = vadd.f32 %v4549_v30, %v4487_v28  ;;  %v3482_v39 = vadd.f32 %v3481_v20, %v3419_v3  ;;  %v14130_v40 = vpop.f32.mrf.mxu0  ;;  %v14132_v21 = vpop.f32.mrf.mxu1  ;;  %v3421_v44 = vmul.f32 %v14089_v47, %v14089_v47  ;;  %v4490_v57 = vmul.f32 %v14091_v48, %v14091_v48  ;;  %v13178_v3 = vld [vmem:[%s13618_s30 + $0x5e8] sm:$0xff]  }
 0x1c8   : > { %v3349_v23 = vadd.f32 %v3348_v31, %v2813_v10  ;;  %v4418_v22 = vadd.f32 %v4417_v35, %v3882_v11  ;;  %v10769_v49 = vpack.c.bf16 %v14130_v40, %v14121_v26  ;;  %v10929_v52 = vpack.c.bf16 %v14132_v21, %v14123_v27  ;;  %v13180_v35 = vld [vmem:[%s13618_s30 + $0x5f0] sm:$0xff]  }
 0x1c9   : > { %v4551_v46 = vadd.f32 %v4550_v37, %v4488_v36  ;;  %v3483_v51 = vadd.f32 %v3482_v39, %v3420_v32  ;;  %v2829_v53 = vpop.f32.mrf.mxu0  ;;  %v3898_v54 = vpop.f32.mrf.mxu1  ;;  %v3422_v63 = vmul.f32 %v14098_v61, %v14098_v61  ;;  %v4491_v5 = vmul.f32 %v14100_v60, %v14100_v60 }
 0x1ca   : > { %v3350_v41 = vadd.f32 %v14089_v47, %v3349_v23  ;;  %v4419_v42 = vadd.f32 %v14091_v48, %v4418_v22  ;;  %11753 = vst [vmem:[%s13814_s22 + $0x248] sm:$0xff] %v10769_v49   ;;  %v10764_v59 = vpack.c.bf16 %v2829_v53, %v2826_v33  ;;  %11785 = vst [vmem:[%s13814_s22 + $0x348] sm:$0xff] %v10929_v52  }
 0x1cb   : > { %v4552_v58 = vadd.f32 %v4551_v46, %v4489_v38  ;;  %v3484_v0 = vadd.f32 %v3483_v51, %v3421_v44  ;;  %v10924_v45 = vpack.c.bf16 %v3898_v54, %v3895_v34  ;;  %v14153_v1 = vpop.f32.mrf.mxu0  ;;  %v14155_v4 = vpop.f32.mrf.mxu1  ;;  %v3423_v48 = vmul.f32 %v2826_v33, %v2826_v33 }
 0x1cc   : > { %v3351_v47 = vadd.f32 %v14098_v61, %v3350_v41  ;;  %v4420_v6 = vadd.f32 %v14100_v60, %v4419_v42  ;;  %11752 = vst [vmem:[%s13814_s22 + $0x240] sm:$0xff] %v10764_v59   ;;  %v3424_v9 = vmul.f32 %v2829_v53, %v2829_v53  ;;  %v4492_v13 = vmul.f32 %v3895_v34, %v3895_v34 }
 0x1cd   : > { %12645 = vmatmul.mubr.bf16.gmra.mxu0 %v13173_v43  ;;  %v4553_v7 = vadd.f32 %v4552_v58, %v4490_v57  ;;  %v3485_v61 = vadd.f32 %v3484_v0, %v3422_v63  ;;  %11784 = vst [vmem:[%s13814_s22 + $0x340] sm:$0xff] %v10924_v45   ;;  %v2842_v10 = vpop.f32.mrf.mxu0  ;;  %v3911_v11 = vpop.f32.mrf.mxu1  ;;  %v4493_v15 = vmul.f32 %v3898_v54, %v3898_v54 }
 0x1ce   : > { %12725 = vmatmul.mubr.bf16.gmra.mxu1 %v13174_v50  ;;  %v3352_v8 = vadd.f32 %v3351_v47, %v2826_v33  ;;  %12648 = vmatprep.mubr.bf16.mxu0 %v13175_v55  ;;  %v4421_v12 = vadd.f32 %v4420_v6, %v3895_v34  ;;  %v3425_v29 = vmul.f32 %v14121_v26, %v14121_v26  ;;  %v13179_v34 = vld [vmem:[%s13618_s30 + $0x4f0] sm:$0xff]   ;;  %v13181_v47 = vld [vmem:[%s13618_s30 + $0x4f8] sm:$0xff]  }
 0x1cf   : > { %12728 = vmatprep.mubr.bf16.mxu1 %v13176_v56  ;;  %v4554_v14 = vadd.f32 %v4553_v7, %v4491_v5  ;;  %v3486_v17 = vadd.f32 %v3485_v61, %v3423_v48  ;;  %v14162_v18 = vpop.f32.mrf.mxu0  ;;  %v14164_v19 = vpop.f32.mrf.mxu1  ;;  %v4494_v36 = vmul.f32 %v14123_v27, %v14123_v27  ;;  %v3426_v23 = vmul.f32 %v14130_v40, %v14130_v40  ;;  %v13182_v48 = vld [vmem:[%s13618_s30 + $0x5f8] sm:$0xff]  }
 0x1d0   : > { %v3353_v60 = vadd.f32 %v3352_v8, %v2829_v53  ;;  %v4422_v25 = vadd.f32 %v4421_v12, %v3898_v54  ;;  %v10779_v28 = vpack.c.bf16 %v14162_v18, %v14153_v1  ;;  %v10939_v20 = vpack.c.bf16 %v14164_v19, %v14155_v4  ;;  %v13184_v12 = vld [vmem:[%s13618_s30 + $0x700] sm:$0xff]  }
 0x1d1   : > { %v4555_v24 = vadd.f32 %v4554_v14, %v4492_v13  ;;  %v3487_v30 = vadd.f32 %v3486_v17, %v3424_v9  ;;  %v2845_v32 = vpop.f32.mrf.mxu0  ;;  %v3914_v33 = vpop.f32.mrf.mxu1  ;;  %v4495_v50 = vmul.f32 %v14132_v21, %v14132_v21  ;;  %v4496_v56 = vmul.f32 %v3911_v11, %v3911_v11 }
 0x1d2   : > { %v3354_v31 = vadd.f32 %v14121_v26, %v3353_v60  ;;  %v4423_v38 = vadd.f32 %v14123_v27, %v4422_v25  ;;  %11755 = vst [vmem:[%s13814_s22 + $0x258] sm:$0xff] %v10779_v28   ;;  %v10774_v39 = vpack.c.bf16 %v2845_v32, %v2842_v10  ;;  %11787 = vst [vmem:[%s13814_s22 + $0x358] sm:$0xff] %v10939_v20  }
 0x1d3   : > { %v4556_v37 = vadd.f32 %v4555_v24, %v4493_v15  ;;  %v3488_v43 = vadd.f32 %v3487_v30, %v3425_v29  ;;  %v10934_v46 = vpack.c.bf16 %v3914_v33, %v3911_v11  ;;  %v14185_v22 = vpop.f32.mrf.mxu0  ;;  %v14187_v49 = vpop.f32.mrf.mxu1  ;;  %v3427_v27 = vmul.f32 %v2842_v10, %v2842_v10 }
 0x1d4   : > { %v3355_v26 = vadd.f32 %v14130_v40, %v3354_v31  ;;  %v4424_v44 = vadd.f32 %v14132_v21, %v4423_v38  ;;  %11754 = vst [vmem:[%s13814_s22 + $0x250] sm:$0xff] %v10774_v39   ;;  %v3428_v52 = vmul.f32 %v2845_v32, %v2845_v32  ;;  %v4497_v58 = vmul.f32 %v3914_v33, %v3914_v33 }
 0x1d5   : > { %12649 = vmatmul.mubr.bf16.gmra.mxu0 %v13177_v2  ;;  %v4557_v51 = vadd.f32 %v4556_v37, %v4494_v36  ;;  %v3489_v40 = vadd.f32 %v3488_v43, %v3426_v23  ;;  %11786 = vst [vmem:[%s13814_s22 + $0x350] sm:$0xff] %v10934_v46   ;;  %v2858_v53 = vpop.f32.mrf.mxu0  ;;  %v3927_v54 = vpop.f32.mrf.mxu1  ;;  %v3429_v6 = vmul.f32 %v14153_v1, %v14153_v1 }
 0x1d6   : > { %12729 = vmatmul.mubr.bf16.gmra.mxu1 %v13178_v3  ;;  %v3356_v41 = vadd.f32 %v3355_v26, %v2842_v10  ;;  %12652 = vmatprep.mubr.bf16.mxu0 %v13179_v34  ;;  %v4425_v55 = vadd.f32 %v4424_v44, %v3911_v11  ;;  %v13183_v11 = vld [vmem:[%s13618_s30 + $0x600] sm:$0xff]   ;;  %v4498_v13 = vmul.f32 %v14155_v4, %v14155_v4  ;;  %v13185_v26 = vld [vmem:[%s13618_s30 + $0x608] sm:$0xff]  }
 0x1d7   : > { %12732 = vmatprep.mubr.bf16.mxu1 %v13180_v35  ;;  %v4558_v57 = vadd.f32 %v4557_v51, %v4495_v50  ;;  %v3490_v42 = vadd.f32 %v3489_v40, %v3427_v27  ;;  %v14194_v59 = vpop.f32.mrf.mxu0  ;;  %v14196_v63 = vpop.f32.mrf.mxu1  ;;  %v3430_v60 = vmul.f32 %v14162_v18, %v14162_v18  ;;  %v4499_v3 = vmul.f32 %v14164_v19, %v14164_v19  ;;  %v13186_v27 = vld [vmem:[%s13618_s30 + $0x708] sm:$0xff]  }
 0x1d8   : > { %v3357_v21 = vadd.f32 %v3356_v41, %v2845_v32  ;;  %v4426_v45 = vadd.f32 %v4425_v55, %v3914_v33  ;;  %v10789_v5 = vpack.c.bf16 %v14194_v59, %v14185_v22  ;;  %v10949_v61 = vpack.c.bf16 %v14196_v63, %v14187_v49  ;;  %v13188_v55 = vld [vmem:[%s13618_s30 + $0x710] sm:$0xff]  }
 0x1d9   : > { %v4559_v0 = vadd.f32 %v4558_v57, %v4496_v56  ;;  %v3491_v7 = vadd.f32 %v3490_v42, %v3428_v52  ;;  %v2861_v9 = vpop.f32.mrf.mxu0  ;;  %v3930_v10 = vpop.f32.mrf.mxu1  ;;  %v4500_v35 = vmul.f32 %v3927_v54, %v3927_v54  ;;  %v3433_v44 = vmul.f32 %v14185_v22, %v14185_v22 }
 0x1da   : > { %v3358_v8 = vadd.f32 %v14153_v1, %v3357_v21  ;;  %v4427_v15 = vadd.f32 %v14155_v4, %v4426_v45  ;;  %11757 = vst [vmem:[%s13814_s22 + $0x268] sm:$0xff] %v10789_v5   ;;  %v10784_v17 = vpack.c.bf16 %v2861_v9, %v2858_v53  ;;  %11789 = vst [vmem:[%s13814_s22 + $0x368] sm:$0xff] %v10949_v61  }
 0x1db   : > { %v4560_v14 = vadd.f32 %v4559_v0, %v4497_v58  ;;  %v3492_v2 = vadd.f32 %v3491_v7, %v3429_v6  ;;  %v10944_v24 = vpack.c.bf16 %v3930_v10, %v3927_v54  ;;  %v14217_v25 = vpop.f32.mrf.mxu0  ;;  %v14219_v28 = vpop.f32.mrf.mxu1  ;;  %v3431_v4 = vmul.f32 %v2858_v53, %v2858_v53 }
 0x1dc   : > { %v3359_v1 = vadd.f32 %v14162_v18, %v3358_v8  ;;  %v4428_v29 = vadd.f32 %v14164_v19, %v4427_v15  ;;  %11756 = vst [vmem:[%s13814_s22 + $0x260] sm:$0xff] %v10784_v17   ;;  %v3432_v20 = vmul.f32 %v2861_v9, %v2861_v9  ;;  %v4501_v37 = vmul.f32 %v3930_v10, %v3930_v10 }
 0x1dd   : > { %12653 = vmatmul.mubr.bf16.gmra.mxu0 %v13181_v47  ;;  %v4561_v30 = vadd.f32 %v4560_v14, %v4498_v13  ;;  %v3493_v18 = vadd.f32 %v3492_v2, %v3430_v60  ;;  %11788 = vst [vmem:[%s13814_s22 + $0x360] sm:$0xff] %v10944_v24   ;;  %v2874_v32 = vpop.f32.mrf.mxu0  ;;  %v3943_v33 = vpop.f32.mrf.mxu1  ;;  %v4502_v56 = vmul.f32 %v14187_v49, %v14187_v49 }
 0x1de   : > { %12733 = vmatmul.mubr.bf16.gmra.mxu1 %v13182_v48  ;;  %v3360_v31 = vadd.f32 %v3359_v1, %v2858_v53  ;;  %12752 = vmatprep.mubr.bf16.mxu0 %v13183_v11  ;;  %v4429_v34 = vadd.f32 %v4428_v29, %v3927_v54  ;;  %v13187_v54 = vld [vmem:[%s13618_s30 + $0x610] sm:$0xff]   ;;  %v3434_v21 = vmul.f32 %v14194_v59, %v14194_v59  ;;  %v13189_v1 = vld [vmem:[%s13618_s30 + $0x618] sm:$0xff]  }
 0x1df   : > { %12832 = vmatprep.mubr.bf16.mxu1 %v13184_v12  ;;  %v4562_v36 = vadd.f32 %v4561_v30, %v4499_v3  ;;  %v3494_v38 = vadd.f32 %v3493_v18, %v3431_v4  ;;  %v14226_v39 = vpop.f32.mrf.mxu0  ;;  %v14228_v23 = vpop.f32.mrf.mxu1  ;;  %v4503_v48 = vmul.f32 %v14196_v63, %v14196_v63  ;;  %v4504_v12 = vmul.f32 %v3943_v33, %v3943_v33  ;;  %v13190_v4 = vld [vmem:[%s13618_s30 + $0x718] sm:$0xff]  }
 0x1e0   : > { %v3361_v19 = vadd.f32 %v3360_v31, %v2861_v9  ;;  %v4430_v46 = vadd.f32 %v4429_v34, %v3930_v10  ;;  %v10799_v50 = vpack.c.bf16 %v14226_v39, %v14217_v25  ;;  %v10959_v40 = vpack.c.bf16 %v14228_v23, %v14219_v28  ;;  %v13192_v34 = vld [vmem:[%s13618_s30 + $0x720] sm:$0xff]  }
 0x1e1   : > { %v4563_v43 = vadd.f32 %v4562_v36, %v4500_v35  ;;  %v3495_v51 = vadd.f32 %v3494_v38, %v3432_v20  ;;  %v2877_v52 = vpop.f32.mrf.mxu0  ;;  %v3946_v53 = vpop.f32.mrf.mxu1  ;;  %v3437_v29 = vmul.f32 %v14217_v25, %v14217_v25  ;;  %v4506_v35 = vmul.f32 %v14219_v28, %v14219_v28 }
 0x1e2   : > { %v3362_v41 = vadd.f32 %v14185_v22, %v3361_v19  ;;  %v4431_v58 = vadd.f32 %v14187_v49, %v4430_v46  ;;  %11759 = vst [vmem:[%s13814_s22 + $0x278] sm:$0xff] %v10799_v50   ;;  %v10794_v42 = vpack.c.bf16 %v2877_v52, %v2874_v32  ;;  %11791 = vst [vmem:[%s13814_s22 + $0x378] sm:$0xff] %v10959_v40  }
 0x1e3   : > { %v4564_v57 = vadd.f32 %v4563_v43, %v4501_v37  ;;  %v3496_v47 = vadd.f32 %v3495_v51, %v3433_v44  ;;  %v10954_v0 = vpack.c.bf16 %v3946_v53, %v3943_v33  ;;  %v14249_v45 = vpop.f32.mrf.mxu0  ;;  %v14251_v5 = vpop.f32.mrf.mxu1  ;;  %v3435_v49 = vmul.f32 %v2874_v32, %v2874_v32 }
 0x1e4   : > { %v3363_v22 = vadd.f32 %v14194_v59, %v3362_v41  ;;  %v4432_v6 = vadd.f32 %v14196_v63, %v4431_v58  ;;  %11758 = vst [vmem:[%s13814_s22 + $0x270] sm:$0xff] %v10794_v42   ;;  %v3436_v61 = vmul.f32 %v2877_v52, %v2877_v52  ;;  %v4505_v14 = vmul.f32 %v3946_v53, %v3946_v53 }
 0x1e5   : > { %12753 = vmatmul.mubr.bf16.vlgmr.msra.gmra.mxu0 %v13185_v26  ;;  %v4565_v7 = vadd.f32 %v4564_v57, %v4502_v56  ;;  %v3497_v59 = vadd.f32 %v3496_v47, %v3434_v21  ;;  %11790 = vst [vmem:[%s13814_s22 + $0x370] sm:$0xff] %v10954_v0   ;;  %v2890_v9 = vpop.f32.mrf.mxu0  ;;  %v3959_v10 = vpop.f32.mrf.mxu1  ;;  %v3438_v19 = vmul.f32 %v14226_v39, %v14226_v39 }
 0x1e6   : > { %12833 = vmatmul.mubr.bf16.vlgmr.msra.gmra.mxu1 %v13186_v27  ;;  %v3364_v8 = vadd.f32 %v3363_v22, %v2874_v32  ;;  %12756 = vmatprep.mubr.bf16.mxu0 %v13187_v54  ;;  %v4433_v11 = vadd.f32 %v4432_v6, %v3943_v33  ;;  %v13191_v33 = vld [vmem:[%s13618_s30 + $0x620] sm:$0xff]   ;;  %v4507_v27 = vmul.f32 %v14228_v23, %v14228_v23  ;;  %v13193_v22 = vld [vmem:[%s13618_s30 + $0x628] sm:$0xff]   ;;  %v13195_v6 = vld [vmem:[%s13618_s30 + $0x630] sm:$0xff]  }
 0x1e7   : > { %12836 = vmatprep.mubr.bf16.mxu1 %v13188_v55  ;;  %v4566_v13 = vadd.f32 %v4565_v7, %v4503_v48  ;;  %v3498_v15 = vadd.f32 %v3497_v59, %v3435_v49  ;;  %v14258_v17 = vpop.f32.mrf.mxu0  ;;  %v14260_v60 = vpop.f32.mrf.mxu1  ;;  %v4508_v55 = vmul.f32 %v3959_v10, %v3959_v10  ;;  %v13194_v49 = vld [vmem:[%s13618_s30 + $0x728] sm:$0xff]   ;;  %v3441_v7 = vmul.f32 %v14249_v45, %v14249_v45 }
 0x1e8   : > { %v3365_v63 = vadd.f32 %v3364_v8, %v2877_v52  ;;  %v4434_v24 = vadd.f32 %v4433_v11, %v3946_v53  ;;  %v10809_v3 = vpack.c.bf16 %v14258_v17, %v14249_v45  ;;  %v10969_v18 = vpack.c.bf16 %v14260_v60, %v14251_v5  ;;  %v13196_v11 = vld [vmem:[%s13618_s30 + $0x730] sm:$0xff]  }
 0x1e9   : > { %v4567_v2 = vadd.f32 %v4566_v13, %v4504_v12  ;;  %v3499_v30 = vadd.f32 %v3498_v15, %v3436_v61  ;;  %v2893_v20 = vpop.f32.mrf.mxu0  ;;  %v3962_v32 = vpop.f32.mrf.mxu1  ;;  %v4510_v12 = vmul.f32 %v14251_v5, %v14251_v5 }
 0x1ea   : > { %v3366_v31 = vadd.f32 %v14217_v25, %v3365_v63  ;;  %v4435_v37 = vadd.f32 %v14219_v28, %v4434_v24  ;;  %11761 = vst [vmem:[%s13814_s22 + $0x288] sm:$0xff] %v10809_v3   ;;  %v10804_v38 = vpack.c.bf16 %v2893_v20, %v2890_v9  ;;  %11793 = vst [vmem:[%s13814_s22 + $0x388] sm:$0xff] %v10969_v18  }
 0x1eb   : > { %v4568_v36 = vadd.f32 %v4567_v2, %v4505_v14  ;;  %v3500_v26 = vadd.f32 %v3499_v30, %v3437_v29  ;;  %v10964_v43 = vpack.c.bf16 %v3962_v32, %v3959_v10  ;;  %v14281_v46 = vpop.f32.mrf.mxu0  ;;  %v14283_v50 = vpop.f32.mrf.mxu1  ;;  %v3439_v28 = vmul.f32 %v2890_v9, %v2890_v9 }
 0x1ec   : > { %v3367_v25 = vadd.f32 %v14226_v39, %v3366_v31  ;;  %v4436_v44 = vadd.f32 %v14228_v23, %v4435_v37  ;;  %11760 = vst [vmem:[%s13814_s22 + $0x280] sm:$0xff] %v10804_v38   ;;  %v3440_v40 = vmul.f32 %v2893_v20, %v2893_v20  ;;  %v4509_v57 = vmul.f32 %v3962_v32, %v3962_v32 }
 0x1ed   : > { %12757 = vmatmul.mubr.bf16.gmra.mxu0 %v13189_v1  ;;  %v4569_v51 = vadd.f32 %v4568_v36, %v4506_v35  ;;  %v3501_v39 = vadd.f32 %v3500_v26, %v3438_v19  ;;  %11792 = vst [vmem:[%s13814_s22 + $0x380] sm:$0xff] %v10964_v43   ;;  %v2906_v52 = vpop.f32.mrf.mxu0  ;;  %v3975_v53 = vpop.f32.mrf.mxu1  ;;  %v3442_v63 = vmul.f32 %v14258_v17, %v14258_v17  ;;  %v13197_v19 = vld [vmem:[%s13618_s30 + $0x638] sm:$0xff]  }
 0x1ee   : > { %12837 = vmatmul.mubr.bf16.gmra.mxu1 %v13190_v4  ;;  %v3368_v41 = vadd.f32 %v3367_v25, %v2890_v9  ;;  %12760 = vmatprep.mubr.bf16.mxu0 %v13191_v33  ;;  %v4437_v54 = vadd.f32 %v4436_v44, %v3959_v10  ;;  %v4511_v3 = vmul.f32 %v14260_v60, %v14260_v60  ;;  %v13199_v44 = vld [vmem:[%s13618_s30 + $0x640] sm:$0xff]  }
 0x1ef   : > { %12840 = vmatprep.mubr.bf16.mxu1 %v13192_v34  ;;  %v4570_v56 = vadd.f32 %v4569_v51, %v4507_v27  ;;  %v3502_v58 = vadd.f32 %v3501_v39, %v3439_v28  ;;  %v14290_v42 = vpop.f32.mrf.mxu0  ;;  %v14292_v21 = vpop.f32.mrf.mxu1  ;;  %v3443_v30 = vmul.f32 %v2906_v52, %v2906_v52  ;;  %v4512_v33 = vmul.f32 %v3975_v53, %v3975_v53  ;;  %v13198_v28 = vld [vmem:[%s13618_s30 + $0x738] sm:$0xff]  }
 0x1f0   : > { %v3369_v23 = vadd.f32 %v3368_v41, %v2893_v20  ;;  %v4438_v0 = vadd.f32 %v4437_v54, %v3962_v32  ;;  %v10819_v48 = vpack.c.bf16 %v14290_v42, %v14281_v46  ;;  %v10979_v61 = vpack.c.bf16 %v14292_v21, %v14283_v50 }
 0x1f1   : > { %v4571_v47 = vadd.f32 %v4570_v56, %v4508_v55  ;;  %v3503_v8 = vadd.f32 %v3502_v58, %v3440_v40  ;;  %v2909_v9 = vpop.f32.mrf.mxu0  ;;  %v3978_v10 = vpop.f32.mrf.mxu1  ;;  %v3445_v51 = vmul.f32 %v14281_v46, %v14281_v46  ;;  %v4514_v54 = vmul.f32 %v14283_v50, %v14283_v50 }
 0x1f2   : > { %v3370_v59 = vadd.f32 %v14249_v45, %v3369_v23  ;;  %v4439_v14 = vadd.f32 %v14251_v5, %v4438_v0  ;;  %11763 = vst [vmem:[%s13814_s22 + $0x298] sm:$0xff] %v10819_v48   ;;  %v10814_v15 = vpack.c.bf16 %v2909_v9, %v2906_v52  ;;  %11795 = vst [vmem:[%s13814_s22 + $0x398] sm:$0xff] %v10979_v61  }
 0x1f3   : > { %v4572_v13 = vadd.f32 %v4571_v47, %v4509_v57  ;;  %v3504_v1 = vadd.f32 %v3503_v8, %v3441_v7  ;;  %v10974_v2 = vpack.c.bf16 %v3978_v10, %v3975_v53  ;;  %v3444_v18 = vmul.f32 %v2909_v9, %v2909_v9 }
 0x1f4   : > { %v3371_v45 = vadd.f32 %v14258_v17, %v3370_v59  ;;  %v14313_v24 = vpop.f32.mrf.mxu0  ;;  %v4440_v4 = vadd.f32 %v14260_v60, %v4439_v14  ;;  %11762 = vst [vmem:[%s13814_s22 + $0x290] sm:$0xff] %v10814_v15   ;;  %v14319_v29 = vpop.f32.mrf.mxu1  ;;  %v4513_v60 = vmul.f32 %v3978_v10, %v3978_v10  ;;  %v3446_v23 = vmul.f32 %v14290_v42, %v14290_v42 }
 0x1f5   : > { %12761 = vmatmul.mubr.bf16.gmra.mxu0 %v13193_v22  ;;  %v4573_v5 = vadd.f32 %v4572_v13, %v4510_v12  ;;  %v3505_v31 = vadd.f32 %v3504_v1, %v3442_v63  ;;  %11794 = vst [vmem:[%s13814_s22 + $0x390] sm:$0xff] %v10974_v2   ;;  %v4515_v48 = vmul.f32 %v14292_v21, %v14292_v21  ;;  %v13201_v63 = vld [vmem:[%s13618_s30 + $0x648] sm:$0xff]  }
 0x1f6   : > { %12841 = vmatmul.mubr.bf16.gmra.mxu1 %v13194_v49  ;;  %12764 = vmatprep.mubr.bf16.mxu0 %v13195_v6  ;;  %v3372_v17 = vadd.f32 %v3371_v45, %v2906_v52  ;;  %v2922_v20 = vpop.f32.mrf.mxu0  ;;  %v4441_v32 = vadd.f32 %v4440_v4, %v3975_v53  ;;  %v3991_v35 = vpop.f32.mrf.mxu1  ;;  %v13200_v53 = vld [vmem:[%s13618_s30 + $0x740] sm:$0xff]   ;;  %v13202_v4 = vld [vmem:[%s13618_s30 + $0x748] sm:$0xff]  }
 0x1f7   : > { %12844 = vmatprep.mubr.bf16.mxu1 %v13196_v11  ;;  %v4574_v34 = vadd.f32 %v4573_v5, %v4511_v3  ;;  %v3506_v36 = vadd.f32 %v3505_v31, %v3443_v30  ;;  %v3447_v7 = vmul.f32 %v2922_v20, %v2922_v20  ;;  %v13203_v5 = vld [vmem:[%s13618_s30 + $0x650] sm:$0xff]  }
 0x1f8   : > { %v3373_v37 = vadd.f32 %v3372_v17, %v2909_v9  ;;  %v14322_v38 = vpop.f32.mrf.mxu0  ;;  %v4442_v26 = vadd.f32 %v4441_v32, %v3978_v10  ;;  %v14327_v27 = vpop.f32.mrf.mxu1  ;;  %v4516_v10 = vmul.f32 %v3991_v35, %v3991_v35  ;;  %v3449_v17 = vmul.f32 %v14313_v24, %v14313_v24  ;;  %v13204_v32 = vld [vmem:[%s13618_s30 + $0x750] sm:$0xff]  }
 0x1f9   : > { %v4575_v25 = vadd.f32 %v4574_v34, %v4512_v33  ;;  %v10829_v43 = vpack.c.bf16 %v14322_v38, %v14313_v24  ;;  %v3507_v41 = vadd.f32 %v3506_v36, %v3444_v18  ;;  %v10989_v40 = vpack.c.bf16 %v14327_v27, %v14319_v29 }
 0x1fa   : > { %v3374_v39 = vadd.f32 %v14281_v46, %v3373_v37  ;;  %v2925_v52 = vpop.f32.mrf.mxu0  ;;  %v4443_v56 = vadd.f32 %v14283_v50, %v4442_v26  ;;  %v3994_v58 = vpop.f32.mrf.mxu1  ;;  %v4518_v33 = vmul.f32 %v14319_v29, %v14319_v29  ;;  %v3450_v37 = vmul.f32 %v14322_v38, %v14322_v38 }
 0x1fb   : > { %v4576_v55 = vadd.f32 %v4575_v25, %v4513_v60  ;;  %11765 = vst [vmem:[%s13814_s22 + $0x2a8] sm:$0xff] %v10829_v43   ;;  %v10824_v57 = vpack.c.bf16 %v2925_v52, %v2922_v20  ;;  %v3508_v22 = vadd.f32 %v3507_v41, %v3445_v51  ;;  %11797 = vst [vmem:[%s13814_s22 + $0x3a8] sm:$0xff] %v10989_v40  }
 0x1fc   : > { %v3375_v46 = vadd.f32 %v14290_v42, %v3374_v39  ;;  %v10984_v47 = vpack.c.bf16 %v3994_v58, %v3991_v35  ;;  %v14345_v0 = vpop.f32.mrf.mxu0  ;;  %v4444_v50 = vadd.f32 %v14292_v21, %v4443_v56  ;;  %v14351_v6 = vpop.f32.mrf.mxu1  ;;  %v3448_v59 = vmul.f32 %v2925_v52, %v2925_v52 }
 0x1fd   : > { %12765 = vmatmul.mubr.bf16.gmra.mxu0 %v13197_v19  ;;  %v4577_v49 = vadd.f32 %v4576_v55, %v4514_v54  ;;  %11764 = vst [vmem:[%s13814_s22 + $0x2a0] sm:$0xff] %v10824_v57   ;;  %v3509_v8 = vadd.f32 %v3508_v22, %v3446_v23  ;;  %v4517_v21 = vmul.f32 %v3994_v58, %v3994_v58  ;;  %v13205_v23 = vld [vmem:[%s13618_s30 + $0x658] sm:$0xff]  }
 0x1fe   : > { %12845 = vmatmul.mubr.bf16.gmra.mxu1 %v13198_v28  ;;  %12768 = vmatprep.mubr.bf16.mxu0 %v13199_v44  ;;  %v3376_v42 = vadd.f32 %v3375_v46, %v2922_v20  ;;  %11796 = vst [vmem:[%s13814_s22 + $0x3a0] sm:$0xff] %v10984_v47   ;;  %v2938_v61 = vpop.f32.mrf.mxu0  ;;  %v4445_v9 = vadd.f32 %v4444_v50, %v3991_v35  ;;  %v4007_v12 = vpop.f32.mrf.mxu1  ;;  %v13206_v50 = vld [vmem:[%s13618_s30 + $0x758] sm:$0xff]  }
 0x1ff   : > { %12848 = vmatprep.mubr.bf16.mxu1 %v13200_v53  ;;  %v4578_v11 = vadd.f32 %v4577_v49, %v4515_v48  ;;  %v3510_v13 = vadd.f32 %v3509_v8, %v3447_v7  ;;  %v4519_v43 = vmul.f32 %v14327_v27, %v14327_v27  ;;  %v3451_v51 = vmul.f32 %v2938_v61, %v2938_v61  ;;  %v13207_v49 = vld [vmem:[%s13618_s30 + $0x660] sm:$0xff]  }
 0x200   : > { %v3377_v14 = vadd.f32 %v3376_v42, %v2925_v52  ;;  %v14354_v15 = vpop.f32.mrf.mxu0  ;;  %v4446_v1 = vadd.f32 %v4445_v9, %v3994_v58  ;;  %v14359_v3 = vpop.f32.mrf.mxu1  ;;  %v4520_v53 = vmul.f32 %v4007_v12, %v4007_v12  ;;  %v3453_v42 = vmul.f32 %v14345_v0, %v14345_v0  ;;  %v13208_v9 = vld [vmem:[%s13618_s30 + $0x760] sm:$0xff]  }
 0x201   : > { %v4579_v45 = vadd.f32 %v4578_v11, %v4516_v10  ;;  %v10839_v2 = vpack.c.bf16 %v14354_v15, %v14345_v0  ;;  %v3511_v30 = vadd.f32 %v3510_v13, %v3448_v59  ;;  %v10999_v18 = vpack.c.bf16 %v14359_v3, %v14351_v6 }
 0x202   : > { %v3378_v31 = vadd.f32 %v14313_v24, %v3377_v14  ;;  %v2941_v20 = vpop.f32.mrf.mxu0  ;;  %v4447_v60 = vadd.f32 %v14319_v29, %v4446_v1  ;;  %v4010_v36 = vpop.f32.mrf.mxu1  ;;  %v4522_v10 = vmul.f32 %v14351_v6, %v14351_v6  ;;  %v3454_v14 = vmul.f32 %v14354_v15, %v14354_v15 }
 0x203   : > { %v4580_v34 = vadd.f32 %v4579_v45, %v4517_v21  ;;  %11767 = vst [vmem:[%s13814_s22 + $0x2b8] sm:$0xff] %v10839_v2   ;;  %v10834_v35 = vpack.c.bf16 %v2941_v20, %v2938_v61  ;;  %v3512_v19 = vadd.f32 %v3511_v30, %v3449_v17  ;;  %11799 = vst [vmem:[%s13814_s22 + $0x3b8] sm:$0xff] %v10999_v18  }
 0x204   : > { %v3379_v24 = vadd.f32 %v14322_v38, %v3378_v31  ;;  %v10994_v25 = vpack.c.bf16 %v4010_v36, %v4007_v12  ;;  %v14377_v26 = vpop.f32.mrf.mxu0  ;;  %v4448_v29 = vadd.f32 %v14327_v27, %v4447_v60  ;;  %v14383_v44 = vpop.f32.mrf.mxu1  ;;  %v3452_v39 = vmul.f32 %v2941_v20, %v2941_v20 }
 0x205   : > { %12769 = vmatmul.mubr.bf16.gmra.mxu0 %v13201_v63  ;;  %v4581_v28 = vadd.f32 %v4580_v34, %v4518_v33  ;;  %11766 = vst [vmem:[%s13814_s22 + $0x2b0] sm:$0xff] %v10834_v35   ;;  %v3513_v41 = vadd.f32 %v3512_v19, %v3450_v37  ;;  %v4521_v27 = vmul.f32 %v4010_v36, %v4010_v36  ;;  %v13209_v37 = vld [vmem:[%s13618_s30 + $0x668] sm:$0xff]  }
 0x206   : > { %12849 = vmatmul.mubr.bf16.gmra.mxu1 %v13202_v4  ;;  %12772 = vmatprep.mubr.bf16.mxu0 %v13203_v5  ;;  %v3380_v38 = vadd.f32 %v3379_v24, %v2938_v61  ;;  %11798 = vst [vmem:[%s13814_s22 + $0x3b0] sm:$0xff] %v10994_v25   ;;  %v2954_v40 = vpop.f32.mrf.mxu0  ;;  %v4449_v52 = vadd.f32 %v4448_v29, %v4007_v12  ;;  %v4023_v55 = vpop.f32.mrf.mxu1  ;;  %v13210_v29 = vld [vmem:[%s13618_s30 + $0x768] sm:$0xff]  }
 0x207   : > { %12852 = vmatprep.mubr.bf16.mxu1 %v13204_v32  ;;  %v4582_v54 = vadd.f32 %v4581_v28, %v4519_v43  ;;  %v3514_v56 = vadd.f32 %v3513_v41, %v3451_v51  ;;  %v4523_v2 = vmul.f32 %v14359_v3, %v14359_v3  ;;  %v3455_v17 = vmul.f32 %v2954_v40, %v2954_v40  ;;  %v13211_v28 = vld [vmem:[%s13618_s30 + $0x670] sm:$0xff]  }
 0x208   : > { %v3381_v57 = vadd.f32 %v3380_v38, %v2941_v20  ;;  %v14386_v58 = vpop.f32.mrf.mxu0  ;;  %v4450_v22 = vadd.f32 %v4449_v52, %v4010_v36  ;;  %v14391_v48 = vpop.f32.mrf.mxu1  ;;  %v4524_v32 = vmul.f32 %v4023_v55, %v4023_v55  ;;  %v3457_v38 = vmul.f32 %v14377_v26, %v14377_v26  ;;  %v13212_v52 = vld [vmem:[%s13618_s30 + $0x770] sm:$0xff]  }
 0x209   : > { %v4583_v46 = vadd.f32 %v4582_v54, %v4520_v53  ;;  %v10849_v47 = vpack.c.bf16 %v14386_v58, %v14377_v26  ;;  %v3515_v7 = vadd.f32 %v3514_v56, %v3452_v39  ;;  %v11009_v59 = vpack.c.bf16 %v14391_v48, %v14383_v44 }
 0x20a   : > { %v3382_v8 = vadd.f32 %v14345_v0, %v3381_v57  ;;  %v2957_v61 = vpop.f32.mrf.mxu0  ;;  %v4451_v21 = vadd.f32 %v14351_v6, %v4450_v22  ;;  %v4026_v13 = vpop.f32.mrf.mxu1  ;;  %v4526_v53 = vmul.f32 %v14383_v44, %v14383_v44  ;;  %v3458_v57 = vmul.f32 %v14386_v58, %v14386_v58 }
 0x20b   : > { %v4584_v11 = vadd.f32 %v4583_v46, %v4521_v27  ;;  %11769 = vst [vmem:[%s13814_s22 + $0x2c8] sm:$0xff] %v10849_v47   ;;  %v10844_v12 = vpack.c.bf16 %v2957_v61, %v2954_v40  ;;  %v3516_v63 = vadd.f32 %v3515_v7, %v3453_v42  ;;  %11801 = vst [vmem:[%s13814_s22 + $0x3c8] sm:$0xff] %v11009_v59  }
 0x20c   : > { %v3383_v0 = vadd.f32 %v14354_v15, %v3382_v8  ;;  %v11004_v45 = vpack.c.bf16 %v4026_v13, %v4023_v55  ;;  %v14409_v1 = vpop.f32.mrf.mxu0  ;;  %v4452_v6 = vadd.f32 %v14359_v3, %v4451_v21  ;;  %v14415_v5 = vpop.f32.mrf.mxu1  ;;  %v3456_v31 = vmul.f32 %v2957_v61, %v2957_v61 }
 0x20d   : > { %12773 = vmatmul.mubr.bf16.gmra.mxu0 %v13205_v23  ;;  %v4585_v4 = vadd.f32 %v4584_v11, %v4522_v10  ;;  %11768 = vst [vmem:[%s13814_s22 + $0x2c0] sm:$0xff] %v10844_v12   ;;  %v3517_v30 = vadd.f32 %v3516_v63, %v3454_v14  ;;  %v4525_v3 = vmul.f32 %v4026_v13, %v4026_v13  ;;  %v13213_v14 = vld [vmem:[%s13618_s30 + $0x678] sm:$0xff]  }
 0x20e   : > { %12853 = vmatmul.mubr.bf16.gmra.mxu1 %v13206_v50  ;;  %12776 = vmatprep.mubr.bf16.mxu0 %v13207_v49  ;;  %v3384_v15 = vadd.f32 %v3383_v0, %v2954_v40  ;;  %11800 = vst [vmem:[%s13814_s22 + $0x3c0] sm:$0xff] %v11004_v45   ;;  %v2970_v18 = vpop.f32.mrf.mxu0  ;;  %v4453_v20 = vadd.f32 %v4452_v6, %v4023_v55  ;;  %v4039_v34 = vpop.f32.mrf.mxu1  ;;  %v13214_v6 = vld [vmem:[%s13618_s30 + $0x778] sm:$0xff]  }
 0x20f   : > { %12856 = vmatprep.mubr.bf16.mxu1 %v13208_v9  ;;  %v4586_v33 = vadd.f32 %v4585_v4, %v4523_v2  ;;  %v3518_v60 = vadd.f32 %v3517_v30, %v3455_v17  ;;  %v4527_v47 = vmul.f32 %v14391_v48, %v14391_v48  ;;  %v3459_v42 = vmul.f32 %v2970_v18, %v2970_v18  ;;  %v13215_v4 = vld [vmem:[%s13618_s30 + $0x680] sm:$0xff]  }
 0x210   : > { %v3385_v35 = vadd.f32 %v3384_v15, %v2957_v61  ;;  %v14418_v36 = vpop.f32.mrf.mxu0  ;;  %v4454_v19 = vadd.f32 %v4453_v20, %v4026_v13  ;;  %v14423_v43 = vpop.f32.mrf.mxu1  ;;  %v4528_v9 = vmul.f32 %v4039_v34, %v4039_v34  ;;  %v3461_v15 = vmul.f32 %v14409_v1, %v14409_v1  ;;  %v13216_v20 = vld [vmem:[%s13618_s30 + $0x780] sm:$0xff]  }
 0x211   : > { %v4587_v24 = vadd.f32 %v4586_v33, %v4524_v32  ;;  %v10859_v25 = vpack.c.bf16 %v14418_v36, %v14409_v1  ;;  %v3519_v51 = vadd.f32 %v3518_v60, %v3456_v31  ;;  %v11019_v39 = vpack.c.bf16 %v14423_v43, %v14415_v5 }
 0x212   : > { %v3386_v41 = vadd.f32 %v14377_v26, %v3385_v35  ;;  %v2973_v40 = vpop.f32.mrf.mxu0  ;;  %v4455_v27 = vadd.f32 %v14383_v44, %v4454_v19  ;;  %v4042_v56 = vpop.f32.mrf.mxu1  ;;  %v4530_v32 = vmul.f32 %v14415_v5, %v14415_v5  ;;  %v3462_v35 = vmul.f32 %v14418_v36, %v14418_v36 }
 0x213   : > { %v4588_v54 = vadd.f32 %v4587_v24, %v4525_v3  ;;  %11771 = vst [vmem:[%s13814_s22 + $0x2d8] sm:$0xff] %v10859_v25   ;;  %v10854_v55 = vpack.c.bf16 %v2973_v40, %v2970_v18  ;;  %v3520_v23 = vadd.f32 %v3519_v51, %v3457_v38  ;;  %11803 = vst [vmem:[%s13814_s22 + $0x3d8] sm:$0xff] %v11019_v39  }
 0x214   : > { %v3387_v26 = vadd.f32 %v14386_v58, %v3386_v41  ;;  %v11014_v46 = vpack.c.bf16 %v4042_v56, %v4039_v34  ;;  %v14441_v22 = vpop.f32.mrf.mxu0  ;;  %v4456_v44 = vadd.f32 %v14391_v48, %v4455_v27  ;;  %v14447_v49 = vpop.f32.mrf.mxu1  ;;  %v3460_v8 = vmul.f32 %v2973_v40, %v2973_v40 }
 0x215   : > { %12777 = vmatmul.mubr.bf16.gmra.mxu0 %v13209_v37  ;;  %v4589_v50 = vadd.f32 %v4588_v54, %v4526_v53  ;;  %11770 = vst [vmem:[%s13814_s22 + $0x2d0] sm:$0xff] %v10854_v55   ;;  %v3521_v7 = vadd.f32 %v3520_v23, %v3458_v57  ;;  %v4529_v48 = vmul.f32 %v4042_v56, %v4042_v56  ;;  %v13217_v23 = vld [vmem:[%s13618_s30 + $0x688] sm:$0xff]  }
 0x216   : > { %12857 = vmatmul.mubr.bf16.gmra.mxu1 %v13210_v29  ;;  %12780 = vmatprep.mubr.bf16.mxu0 %v13211_v28  ;;  %v3388_v58 = vadd.f32 %v3387_v26, %v2970_v18  ;;  %11802 = vst [vmem:[%s13814_s22 + $0x3d0] sm:$0xff] %v11014_v46   ;;  %v2986_v59 = vpop.f32.mrf.mxu0  ;;  %v4457_v61 = vadd.f32 %v4456_v44, %v4039_v34  ;;  %v4055_v11 = vpop.f32.mrf.mxu1 }
 0x217   : > { %12860 = vmatprep.mubr.bf16.mxu1 %v13212_v52  ;;  %v4590_v10 = vadd.f32 %v4589_v50, %v4527_v47  ;;  %v3522_v21 = vadd.f32 %v3521_v7, %v3459_v42  ;;  %v4531_v25 = vmul.f32 %v14423_v43, %v14423_v43  ;;  %v4532_v52 = vmul.f32 %v4055_v11, %v4055_v11  ;;  %v13218_v42 = vld [vmem:[%s13618_s30 + $0x788] sm:$0xff]   ;;  %v13219_v7 = vld [vmem:[%s13618_s30 + $0x690] sm:$0xff]  }
 0x218   : > { %v3389_v12 = vadd.f32 %v3388_v58, %v2973_v40  ;;  %v14450_v13 = vpop.f32.mrf.mxu0  ;;  %v4458_v63 = vadd.f32 %v4457_v61, %v4042_v56  ;;  %v14455_v2 = vpop.f32.mrf.mxu1  ;;  %v3465_v27 = vmul.f32 %v14441_v22, %v14441_v22  ;;  %v4534_v55 = vmul.f32 %v14447_v49, %v14447_v49 }
 0x219   : > { %v4591_v0 = vadd.f32 %v4590_v10, %v4528_v9  ;;  %v10869_v45 = vpack.c.bf16 %v14450_v13, %v14441_v22  ;;  %v3523_v17 = vadd.f32 %v3522_v21, %v3460_v8  ;;  %v11029_v31 = vpack.c.bf16 %v14455_v2, %v14447_v49 }
 0x21a   : > { %v3390_v30 = vadd.f32 %v14409_v1, %v3389_v12  ;;  %v2989_v18 = vpop.f32.mrf.mxu0  ;;  %v4459_v3 = vadd.f32 %v14415_v5, %v4458_v63  ;;  %v4058_v60 = vpop.f32.mrf.mxu1  ;;  %v3466_v47 = vmul.f32 %v14450_v13, %v14450_v13  ;;  %v4535_v8 = vmul.f32 %v14455_v2, %v14455_v2 }
 0x21b   : > { %v4592_v33 = vadd.f32 %v4591_v0, %v4529_v48  ;;  %11773 = vst [vmem:[%s13814_s22 + $0x2e8] sm:$0xff] %v10869_v45   ;;  %v10864_v34 = vpack.c.bf16 %v2989_v18, %v2986_v59  ;;  %v3524_v37 = vadd.f32 %v3523_v17, %v3461_v15  ;;  %11805 = vst [vmem:[%s13814_s22 + $0x3e8] sm:$0xff] %v11029_v31   ;;  %v13220_v48 = vld [vmem:[%s13618_s30 + $0x790] sm:$0xff]  }
 0x21c   : > { %v3391_v1 = vadd.f32 %v14418_v36, %v3390_v30  ;;  %v11024_v24 = vpack.c.bf16 %v4058_v60, %v4055_v11  ;;  %v14473_v19 = vpop.f32.mrf.mxu0  ;;  %v4460_v5 = vadd.f32 %v14423_v43, %v4459_v3  ;;  %v14479_v28 = vpop.f32.mrf.mxu1  ;;  %v3463_v36 = vmul.f32 %v2986_v59, %v2986_v59 }
 0x21d   : > { %12781 = vmatmul.mubr.bf16.gmra.mxu0 %v13213_v14  ;;  %v4593_v29 = vadd.f32 %v4592_v33, %v4530_v32  ;;  %11772 = vst [vmem:[%s13814_s22 + $0x2e0] sm:$0xff] %v10864_v34   ;;  %v3525_v51 = vadd.f32 %v3524_v37, %v3462_v35  ;;  %v3464_v41 = vmul.f32 %v2989_v18, %v2989_v18 }
 0x21e   : > { %12861 = vmatmul.mubr.bf16.gmra.mxu1 %v13214_v6  ;;  %12784 = vmatprep.mubr.bf16.mxu0 %v13215_v4  ;;  %v3392_v38 = vadd.f32 %v3391_v1, %v2986_v59  ;;  %11804 = vst [vmem:[%s13814_s22 + $0x3e0] sm:$0xff] %v11024_v24   ;;  %v3002_v39 = vpop.f32.mrf.mxu0  ;;  %v4461_v40 = vadd.f32 %v4460_v5, %v4055_v11  ;;  %v4071_v54 = vpop.f32.mrf.mxu1  ;;  %v13221_v5 = vld [vmem:[%s13618_s30 + $0x698] sm:$0xff]  }
 0x21f   : > { %12864 = vmatprep.mubr.bf16.mxu1 %v13216_v20  ;;  %v4594_v53 = vadd.f32 %v4593_v29, %v4531_v25  ;;  %v4533_v43 = vmul.f32 %v4058_v60, %v4058_v60  ;;  %v3526_v56 = vadd.f32 %v3525_v51, %v3463_v36  ;;  %v3469_v21 = vmul.f32 %v14473_v19, %v14473_v19 }
 0x220   : > { %v3393_v57 = vadd.f32 %v3392_v38, %v2989_v18  ;;  %v14486_v26 = vpop.f32.mrf.mxu0  ;;  %v4462_v44 = vadd.f32 %v4461_v40, %v4058_v60  ;;  %v14493_v58 = vpop.f32.mrf.mxu1  ;;  %v4538_v63 = vmul.f32 %v14479_v28, %v14479_v28  ;;  %v3467_v15 = vmul.f32 %v3002_v39, %v3002_v39 }
 0x221   : > { %v4595_v46 = vadd.f32 %v4594_v53, %v4532_v52  ;;  %v10879_v50 = vpack.c.bf16 %v14486_v26, %v14473_v19  ;;  %v3527_v59 = vadd.f32 %v3526_v56, %v3464_v41  ;;  %v11039_v9 = vpack.c.bf16 %v14493_v58, %v14479_v28 }
 0x222   : > { %v3394_v61 = vadd.f32 %v14441_v22, %v3393_v57  ;;  %v3005_v10 = vpop.f32.mrf.mxu0  ;;  %v4463_v12 = vadd.f32 %v14447_v49, %v4462_v44  ;;  %v4074_v0 = vpop.f32.mrf.mxu1  ;;  %v4539_v1 = vmul.f32 %v14493_v58, %v14493_v58 }
 0x223   : > { %v4596_v11 = vadd.f32 %v4595_v46, %v4533_v43  ;;  %11775 = vst [vmem:[%s13814_s22 + $0x2f8] sm:$0xff] %v10879_v50   ;;  %v10874_v14 = vpack.c.bf16 %v3005_v10, %v3002_v39  ;;  %v3528_v45 = vadd.f32 %v3527_v59, %v3465_v27  ;;  %11807 = vst [vmem:[%s13814_s22 + $0x3f8] sm:$0xff] %v11039_v9   ;;  %v13223_v27 = vld [vmem:[%s13618_s30 + $0x6a0] sm:$0xff]  }
 0x224   : > { %v3395_v22 = vadd.f32 %v14450_v13, %v3394_v61  ;;  %v11034_v6 = vpack.c.bf16 %v4074_v0, %v4071_v54  ;;  %v14511_v4 = vpop.f32.mrf.mxu0  ;;  %v4464_v17 = vadd.f32 %v14455_v2, %v4463_v12  ;;  %v14515_v49 = vpop.f32.mrf.mxu1  ;;  %v4536_v13 = vmul.f32 %v4071_v54, %v4071_v54 }
 0x225   : > { %12785 = vmatmul.mubr.bf16.gmra.mxu0 %v13217_v23  ;;  %v4597_v30 = vadd.f32 %v4596_v11, %v4534_v55  ;;  %11774 = vst [vmem:[%s13814_s22 + $0x2f0] sm:$0xff] %v10874_v14   ;;  %v3529_v18 = vadd.f32 %v3528_v45, %v3466_v47  ;;  %v3468_v20 = vmul.f32 %v3005_v10, %v3005_v10  ;;  %v13224_v55 = vld [vmem:[%s13618_s30 + $0x7a0] sm:$0xff]  }
 0x226   : > { %12865 = vmatmul.mubr.bf16.gmra.mxu1 %v13218_v42  ;;  %12788 = vmatprep.mubr.bf16.mxu0 %v13219_v7  ;;  %v3396_v31 = vadd.f32 %v3395_v22, %v3002_v39  ;;  %11806 = vst [vmem:[%s13814_s22 + $0x3f0] sm:$0xff] %v11034_v6   ;;  %v4900_v32 = vpop.f32.mrf.mxu0  ;;  %v4465_v33 = vadd.f32 %v4464_v17, %v4071_v54  ;;  %v5969_v60 = vpop.f32.mrf.mxu1  ;;  %v13222_v39 = vld [vmem:[%s13618_s30 + $0x798] sm:$0xff]  }
 0x227   : > { %12868 = vmatprep.mubr.bf16.mxu1 %v13220_v48  ;;  %v4598_v3 = vadd.f32 %v4597_v30, %v4535_v8  ;;  %v3470_v2 = vmul.f32 %v14486_v26, %v14486_v26  ;;  %v4537_v34 = vmul.f32 %v4074_v0, %v4074_v0  ;;  %v3530_v35 = vadd.f32 %v3529_v18, %v3467_v15  ;;  %v13225_v30 = vld [vmem:[%s13618_s30 + $0x6a8] sm:$0xff]  }
 0x228   : > { %v3397_v37 = vadd.f32 %v3396_v31, %v3005_v10  ;;  %v5547_v24 = vmul.f32 %v14511_v4, %v14511_v4  ;;  %v14524_v25 = vpop.f32.mrf.mxu0  ;;  %v4466_v38 = vadd.f32 %v4465_v33, %v4074_v0  ;;  %v5545_v36 = vmul.f32 %v4900_v32, %v4900_v32  ;;  %v14529_v41 = vpop.f32.mrf.mxu1  ;;  %v13226_v33 = vld [vmem:[%s13618_s30 + $0x7a8] sm:$0xff]  }
 0x229   : > { %v4599_v29 = vadd.f32 %v4598_v3, %v4536_v13  ;;  %v11049_v51 = vpack.c.bf16 %v14524_v25, %v14511_v4  ;;  %v3531_v52 = vadd.f32 %v3530_v35, %v3468_v20  ;;  %v6614_v53 = vmul.f32 %v5969_v60, %v5969_v60  ;;  %v13227_v3 = vld [vmem:[%s13618_s30 + $0x6b0] sm:$0xff]  }
 0x22a   : > { %v3398_v40 = vadd.f32 %v14473_v19, %v3397_v37  ;;  %v11209_v43 = vpack.c.bf16 %v14529_v41, %v14515_v49  ;;  %v4903_v54 = vpop.f32.mrf.mxu0  ;;  %v4467_v56 = vadd.f32 %v14479_v28, %v4466_v38  ;;  %v5972_v47 = vpop.f32.mrf.mxu1  ;;  %v5548_v14 = vmul.f32 %v14524_v25, %v14524_v25 }
 0x22b   : > { %v4600_v57 = vadd.f32 %v4599_v29, %v4537_v34  ;;  %11809 = vst [vmem:[%s13814_s22 + $0x408] sm:$0xff] %v11049_v51   ;;  %v11044_v23 = vpack.c.bf16 %v4903_v54, %v4900_v32  ;;  %v5475_v46 = vadd.f32 %v4903_v54, %v4900_v32  ;;  %v3532_v50 = vadd.f32 %v3531_v52, %v3469_v21 }
 0x22c   : > { %v3399_v44 = vadd.f32 %v14486_v26, %v3398_v40  ;;  %11841 = vst [vmem:[%s13814_s22 + $0x508] sm:$0xff] %v11209_v43   ;;  %v5546_v19 = vmul.f32 %v4903_v54, %v4903_v54  ;;  %v11204_v42 = vpack.c.bf16 %v5972_v47, %v5969_v60  ;;  %v14541_v7 = vpop.f32.mrf.mxu0  ;;  %v4468_v8 = vadd.f32 %v14493_v58, %v4467_v56 }
 0x22d   : > { %12789 = vmatmul.mubr.bf16.gmra.mxu0 %v13221_v5  ;;  %v4601_v59 = vadd.f32 %v4600_v57, %v4538_v63  ;;  %11808 = vst [vmem:[%s13814_s22 + $0x400] sm:$0xff] %v11044_v23   ;;  %v6544_v28 = vadd.f32 %v5972_v47, %v5969_v60  ;;  %v6615_v61 = vmul.f32 %v5972_v47, %v5972_v47  ;;  %v14545_v9 = vpop.f32.mrf.mxu1 }
 0x22e   : > { %12869 = vmatmul.mubr.bf16.gmra.mxu1 %v13222_v39  ;;  %v3400_v10 = vrot.slane %v3399_v44, 4  ;;  %v3533_v48 = vadd.f32 %v3532_v50, %v3470_v2  ;;  %v6616_v26 = vmul.f32 %v14515_v49, %v14515_v49  ;;  %v5609_v11 = vadd.f32 %v5546_v19, %v5545_v36  ;;  %11840 = vst [vmem:[%s13814_s22 + $0x500] sm:$0xff] %v11204_v42   ;;  %v14550_v21 = vpop.f32.mrf.mxu0 }
 0x22f   : > { %12792 = vmatprep.mubr.bf16.mxu0 %v13223_v27  ;;  %12872 = vmatprep.mubr.bf16.mxu1 %v13224_v55  ;;  %v4469_v58 = vrot.slane %v4468_v8, 4  ;;  %v4602_v12 = vadd.f32 %v4601_v59, %v4539_v1  ;;  %v6678_v0 = vadd.f32 %v6615_v61, %v6614_v53  ;;  %v14554_v63 = vpop.f32.mrf.mxu1  ;;  %v6617_v6 = vmul.f32 %v14529_v41, %v14529_v41  ;;  %v13228_v1 = vld [vmem:[%s13618_s30 + $0x7b0] sm:$0xff]  }
 0x230   : > { %v3401_v22 = vadd.f32 %v3400_v10, %v3399_v44  ;;  %v3534_v45 = vrot.slane %v3533_v48, 4  ;;  %v5476_v15 = vadd.f32 %v14511_v4, %v5475_v46  ;;  %v14559_v17 = vpop.f32.mrf.mxu0  ;;  %v5610_v13 = vadd.f32 %v5609_v11, %v5547_v24 }
 0x231   : > { %v4470_v31 = vadd.f32 %v4469_v58, %v4468_v8  ;;  %v4603_v18 = vrot.slane %v4602_v12, 4  ;;  %v6545_v20 = vadd.f32 %v14515_v49, %v6544_v28  ;;  %v14563_v32 = vpop.f32.mrf.mxu1  ;;  %v5549_v35 = vmul.f32 %v14550_v21, %v14550_v21  ;;  %v13229_v8 = vld [vmem:[%s13618_s30 + $0x6b8] sm:$0xff]  }
 0x232   : > { %v3402_v2 = vrot.slane %v3401_v22, 2  ;;  %v3535_v34 = vadd.f32 %v3534_v45, %v3533_v48  ;;  %v5477_v60 = vadd.f32 %v14524_v25, %v5476_v15  ;;  %v4919_v4 = vpop.f32.mrf.mxu0  ;;  %v5611_v29 = vadd.f32 %v5610_v13, %v5548_v14  ;;  %v13230_v48 = vld [vmem:[%s13618_s30 + $0x7b8] sm:$0xff]  }
 0x233   : > { %v4471_v37 = vrot.slane %v4470_v31, 2  ;;  %v4604_v5 = vadd.f32 %v4603_v18, %v4602_v12  ;;  %v6546_v24 = vadd.f32 %v14529_v41, %v6545_v20  ;;  %v5988_v38 = vpop.f32.mrf.mxu1  ;;  %v6679_v39 = vadd.f32 %v6678_v0, %v6616_v26  ;;  %v13231_v0 = vld [vmem:[%s13618_s30 + $0x6c0] sm:$0xff]  }
 0x234   : > { %v3403_v49 = vadd.f32 %v3402_v2, %v3401_v22  ;;  %v3536_v36 = vrot.slane %v3535_v34, 2  ;;  %v5478_v51 = vadd.f32 %v5477_v60, %v14550_v21  ;;  %v14573_v40 = vpop.f32.mrf.mxu0  ;;  %v5612_v25 = vadd.f32 %v5611_v29, %v5549_v35 }
 0x235   : > { %12793 = vmatmul.mubr.bf16.gmra.mxu0 %v13225_v30  ;;  %v6547_v52 = vadd.f32 %v6546_v24, %v14554_v63  ;;  %v6618_v53 = vmul.f32 %v14554_v63, %v14554_v63  ;;  %v14578_v43 = vpop.f32.mrf.mxu1  ;;  %v6680_v27 = vadd.f32 %v6679_v39, %v6617_v6  ;;  %v11059_v55 = vpack.c.bf16 %v14559_v17, %v14541_v7  ;;  %v13232_v30 = vld [vmem:[%s13618_s30 + $0x7c0] sm:$0xff]  }
 0x236   : > { %12873 = vmatmul.mubr.bf16.gmra.mxu1 %v13226_v33  ;;  %12796 = vmatprep.mubr.bf16.mxu0 %v13227_v3  ;;  %v3404_v41 = vrot.slane %v3403_v49, 1  ;;  %v3537_v54 = vadd.f32 %v3536_v36, %v3535_v34  ;;  %v14582_v56 = vpop.f32.mrf.mxu0  ;;  %v14584_v57 = vadd.f32 %v4471_v37, %v4470_v31  ;;  %v11219_v23 = vpack.c.bf16 %v14563_v32, %v14545_v9  ;;  %v13233_v36 = vld [vmem:[%s13618_s30 + $0x6c8] sm:$0xff]  }
 0x237   : > { %12876 = vmatprep.mubr.bf16.mxu1 %v13228_v1  ;;  %v14588_v46 = vpop.f32.mrf.mxu1  ;;  %v4605_v50 = vrot.slane %v4604_v5, 2  ;;  %v6681_v19 = vadd.f32 %v6680_v27, %v6618_v53  ;;  %11811 = vst [vmem:[%s13814_s22 + $0x418] sm:$0xff] %v11059_v55   ;;  %v5551_v59 = vmul.f32 %v14541_v7, %v14541_v7  ;;  %v11054_v28 = vpack.c.bf16 %v4919_v4, %v14550_v21 }
 0x238   : > { %v3405_v47 = vadd.f32 %v3404_v41, %v3403_v49  ;;  %v3538_v44 = vrot.slane %v3537_v54, 1  ;;  %v14591_v42 = vpop.f32.mrf.mxu0  ;;  %11843 = vst [vmem:[%s13814_s22 + $0x518] sm:$0xff] %v11219_v23   ;;  %v5479_v61 = vadd.f32 %v5478_v51, %v4919_v4  ;;  %v5550_v58 = vmul.f32 %v4919_v4, %v4919_v4  ;;  %v13234_v41 = vld [vmem:[%s13618_s30 + $0x7c8] sm:$0xff]  }
 0x239   : > { %v14598_v10 = vpop.f32.mrf.mxu1  ;;  %v11214_v12 = vpack.c.bf16 %v5988_v38, %v14554_v63  ;;  %v4473_v22 = vrot.slane %v14584_v57, 1  ;;  %v6620_v21 = vmul.f32 %v14545_v9, %v14545_v9  ;;  %11810 = vst [vmem:[%s13814_s22 + $0x410] sm:$0xff] %v11054_v28   ;;  %v6548_v45 = vadd.f32 %v6547_v52, %v5988_v38 }
 0x23a   : > { %v14602_v26 = vadd.f32 %v3405_v47, %v14052_v62  ;;  %v3539_v11 = vadd.f32 %v3538_v44, %v3537_v54  ;;  %v4935_v14 = vpop.f32.mrf.mxu0  ;;  %v6619_v6 = vmul.f32 %v5988_v38, %v5988_v38  ;;  %v14614_v31 = vadd.f32 %v4605_v50, %v4604_v5 }
 0x23b   : > { %v6004_v15 = vpop.f32.mrf.mxu1  ;;  %v5613_v18 = vadd.f32 %v5612_v25, %v5550_v58  ;;  %11842 = vst [vmem:[%s13814_s22 + $0x510] sm:$0xff] %v11214_v12   ;;  %v5480_v63 = vadd.f32 %v14541_v7, %v5479_v61  ;;  %v5552_v20 = vmul.f32 %v14559_v17, %v14559_v17  ;;  %v6621_v33 = vmul.f32 %v14563_v32, %v14563_v32 }
 0x23c   : > { %v14612_v62 = vadd.f32 %v3539_v11, %v14060_v16  ;;  %v14618_v13 = vpop.f32.mrf.mxu0  ;;  %v6682_v3 = vadd.f32 %v6681_v19, %v6619_v6  ;;  %v6549_v2 = vadd.f32 %v14545_v9, %v6548_v45  ;;  %v5553_v7 = vmul.f32 %v14582_v56, %v14582_v56 }
 0x23d   : > { %12797 = vmatmul.mubr.bf16.gmra.mxu0 %v13229_v8  ;;  %v14625_v16 = vpop.f32.mrf.mxu1  ;;  %v5481_v34 = vadd.f32 %v14559_v17, %v5480_v63  ;;  %v5614_v60 = vadd.f32 %v5613_v18, %v5551_v59  ;;  %v11069_v35 = vpack.c.bf16 %v14591_v42, %v14573_v40  ;;  %v6622_v1 = vmul.f32 %v14588_v46, %v14588_v46  ;;  %v13236_v8 = vld [vmem:[%s13618_s30 + $0x7d0] sm:$0xff]  }
 0x23e   : > { %12877 = vmatmul.mubr.bf16.gmra.mxu1 %v13230_v48  ;;  %v14632_v4 = vpop.f32.mrf.mxu0  ;;  %12800 = vmatprep.mubr.bf16.mxu0 %v13231_v0  ;;  %v6550_v9 = vadd.f32 %v14563_v32, %v6549_v2  ;;  %v6683_v37 = vadd.f32 %v6682_v3, %v6620_v21  ;;  %v11229_v17 = vpack.c.bf16 %v14598_v10, %v14578_v43  ;;  %v4607_v47 = vrot.slane %v14614_v31, 1 }
 0x23f   : > { %v14639_v5 = vpop.f32.mrf.mxu1  ;;  %12880 = vmatprep.mubr.bf16.mxu1 %v13232_v30  ;;  %v5482_v29 = vadd.f32 %v5481_v34, %v14582_v56  ;;  %v5615_v24 = vadd.f32 %v5614_v60, %v5552_v20  ;;  %11813 = vst [vmem:[%s13814_s22 + $0x428] sm:$0xff] %v11069_v35   ;;  %v11064_v38 = vpack.c.bf16 %v4935_v14, %v14582_v56  ;;  %v13235_v56 = vld [vmem:[%s13618_s30 + $0x6d0] sm:$0xff]  }
 0x240   : > { %v5554_v32 = vmul.f32 %v4935_v14, %v4935_v14  ;;  %v14644_v49 = vpop.f32.mrf.mxu0  ;;  %v6551_v51 = vadd.f32 %v6550_v9, %v14588_v46  ;;  %v6684_v39 = vadd.f32 %v6683_v37, %v6621_v33  ;;  %11845 = vst [vmem:[%s13814_s22 + $0x528] sm:$0xff] %v11229_v17   ;;  %v11224_v25 = vpack.c.bf16 %v6004_v15, %v14588_v46  ;;  %v13238_v9 = vld [vmem:[%s13618_s30 + $0x7d8] sm:$0xff]  }
 0x241   : > { %v6623_v52 = vmul.f32 %v6004_v15, %v6004_v15  ;;  %v14650_v53 = vpop.f32.mrf.mxu1  ;;  %v5616_v54 = vadd.f32 %v5615_v24, %v5553_v7  ;;  %11812 = vst [vmem:[%s13814_s22 + $0x420] sm:$0xff] %v11064_v38   ;;  %v5483_v27 = vadd.f32 %v5482_v29, %v4935_v14  ;;  %v14656_v23 = vadd.f32 %v4473_v22, %v14584_v57  ;;  %v13239_v24 = vld [vmem:[%s13618_s30 + $0x6e0] sm:$0xff]  }
 0x242   : > { %v4951_v55 = vpop.f32.mrf.mxu0  ;;  %v6685_v44 = vadd.f32 %v6684_v39, %v6622_v1  ;;  %11844 = vst [vmem:[%s13814_s22 + $0x520] sm:$0xff] %v11224_v25   ;;  %v6552_v50 = vadd.f32 %v6551_v51, %v6004_v15  ;;  %v5555_v46 = vmul.f32 %v14573_v40, %v14573_v40  ;;  %v11079_v61 = vpack.c.bf16 %v14644_v49, %v14618_v13  ;;  %v13240_v39 = vld [vmem:[%s13618_s30 + $0x7e0] sm:$0xff]  }
 0x243   : > { %v6020_v19 = vpop.f32.mrf.mxu1  ;;  %v5617_v59 = vadd.f32 %v5616_v54, %v5554_v32  ;;  %v5484_v28 = vadd.f32 %v14573_v40, %v5483_v27  ;;  %v6624_v57 = vmul.f32 %v14578_v43, %v14578_v43  ;;  %v11239_v12 = vpack.c.bf16 %v14650_v53, %v14625_v16 }
 0x244   : > { %v6686_v11 = vadd.f32 %v6685_v44, %v6623_v52  ;;  %v6553_v58 = vadd.f32 %v14578_v43, %v6552_v50  ;;  %v5556_v40 = vmul.f32 %v14591_v42, %v14591_v42  ;;  %11815 = vst [vmem:[%s13814_s22 + $0x438] sm:$0xff] %v11079_v61   ;;  %v11074_v21 = vpack.c.bf16 %v4951_v55, %v14632_v4 }
 0x245   : > { %v14666_v48 = vpop.f32.mrf.mxu0  ;;  %12801 = vmatmul.mubr.bf16.gmra.mxu0 %v13233_v36  ;;  %v5485_v0 = vadd.f32 %v14591_v42, %v5484_v28  ;;  %v5618_v22 = vadd.f32 %v5617_v59, %v5555_v46  ;;  %v6625_v43 = vmul.f32 %v14598_v10, %v14598_v10  ;;  %11847 = vst [vmem:[%s13814_s22 + $0x538] sm:$0xff] %v11239_v12  }
 0x246   : > { %v14673_v14 = vpop.f32.mrf.mxu1  ;;  %12881 = vmatmul.mubr.bf16.gmra.mxu1 %v13234_v41  ;;  %12804 = vmatprep.mubr.bf16.mxu0 %v13235_v56  ;;  %v6554_v6 = vadd.f32 %v14598_v10, %v6553_v58  ;;  %v6687_v15 = vadd.f32 %v6686_v11, %v6624_v57  ;;  %v11234_v30 = vpack.c.bf16 %v6020_v19, %v14639_v5  ;;  %v13237_v10 = vld [vmem:[%s13618_s30 + $0x6d8] sm:$0xff]  }
 0x247   : > { %v14680_v45 = vpop.f32.mrf.mxu0  ;;  %12884 = vmatprep.mubr.bf16.mxu1 %v13236_v8  ;;  %v5486_v18 = vadd.f32 %v5485_v0, %v14632_v4  ;;  %v5557_v63 = vmul.f32 %v14632_v4, %v14632_v4  ;;  %v5619_v20 = vadd.f32 %v5618_v22, %v5556_v40  ;;  %11814 = vst [vmem:[%s13814_s22 + $0x430] sm:$0xff] %v11074_v21   ;;  %v13241_v40 = vld [vmem:[%s13618_s30 + $0x6e8] sm:$0xff]  }
 0x248   : > { %v6033_v42 = vpop.f32.mrf.mxu1  ;;  %v5558_v33 = vmul.f32 %v4951_v55, %v4951_v55  ;;  %v6555_v2 = vadd.f32 %v6554_v6, %v14639_v5  ;;  %v6626_v34 = vmul.f32 %v14639_v5, %v14639_v5  ;;  %v6688_v7 = vadd.f32 %v6687_v15, %v6625_v43  ;;  %11846 = vst [vmem:[%s13814_s22 + $0x530] sm:$0xff] %v11234_v30  }
 0x249   : > { %v14691_v3 = vpop.f32.mrf.mxu0  ;;  %v6627_v60 = vmul.f32 %v6020_v19, %v6020_v19  ;;  %v4608_v4 = vadd.f32 %v4607_v47, %v14614_v31  ;;  %v5620_v1 = vadd.f32 %v5619_v20, %v5557_v63  ;;  %v5487_v37 = vadd.f32 %v5486_v18, %v4951_v55  ;;  %v13244_v63 = vld [vmem:[%s13618_s30 + $0x7f0] sm:$0xff]  }
 0x24a   : > { %v14698_v35 = vpop.f32.mrf.mxu1  ;;  %v11089_v17 = vpack.c.bf16 %v14691_v3, %v14666_v48  ;;  %v5559_v5 = vmul.f32 %v14618_v13, %v14618_v13  ;;  %v6689_v38 = vadd.f32 %v6688_v7, %v6626_v34  ;;  %v6556_v32 = vadd.f32 %v6555_v2, %v6020_v19 }
 0x24b   : > { %v4967_v29 = vpop.f32.mrf.mxu0  ;;  %v11249_v36 = vpack.c.bf16 %v14698_v35, %v14673_v14  ;;  %v6628_v31 = vmul.f32 %v14625_v16, %v14625_v16  ;;  %v5621_v25 = vadd.f32 %v5620_v1, %v5558_v33  ;;  %v5488_v52 = vadd.f32 %v14618_v13, %v5487_v37 }
 0x24c   : > { %v6036_v51 = vpop.f32.mrf.mxu1  ;;  %11817 = vst [vmem:[%s13814_s22 + $0x448] sm:$0xff] %v11089_v17   ;;  %v11084_v41 = vpack.c.bf16 %v4967_v29, %v14680_v45  ;;  %v5560_v27 = vmul.f32 %v14644_v49, %v14644_v49  ;;  %v6690_v55 = vadd.f32 %v6689_v38, %v6627_v60  ;;  %v6557_v56 = vadd.f32 %v14625_v16, %v6556_v32 }
 0x24d   : > { %v14715_v54 = vpop.f32.mrf.mxu0  ;;  %12805 = vmatmul.mubr.bf16.gmra.mxu0 %v13237_v10  ;;  %11849 = vst [vmem:[%s13814_s22 + $0x548] sm:$0xff] %v11249_v36   ;;  %v11244_v47 = vpack.c.bf16 %v6036_v51, %v6033_v42  ;;  %v6629_v13 = vmul.f32 %v14650_v53, %v14650_v53  ;;  %v5489_v50 = vadd.f32 %v14644_v49, %v5488_v52 }
 0x24e   : > { %v14721_v44 = vpop.f32.mrf.mxu1  ;;  %12885 = vmatmul.mubr.bf16.gmra.mxu1 %v13238_v9  ;;  %v5561_v19 = vmul.f32 %v14680_v45, %v14680_v45  ;;  %v5622_v8 = vadd.f32 %v5621_v25, %v5559_v5  ;;  %11816 = vst [vmem:[%s13814_s22 + $0x440] sm:$0xff] %v11084_v41   ;;  %12808 = vmatprep.mubr.bf16.mxu0 %v13239_v24 }
 0x24f   : > { %v4980_v46 = vpop.f32.mrf.mxu0  ;;  %v6558_v16 = vadd.f32 %v14650_v53, %v6557_v56  ;;  %v6630_v59 = vmul.f32 %v6033_v42, %v6033_v42  ;;  %v6691_v28 = vadd.f32 %v6690_v55, %v6628_v31  ;;  %11848 = vst [vmem:[%s13814_s22 + $0x540] sm:$0xff] %v11244_v47   ;;  %12888 = vmatprep.mubr.bf16.mxu1 %v13240_v39 }
 0x250   : > { %v6049_v61 = vpop.f32.mrf.mxu1  ;;  %v14733_v49 = vadd.f32 %v14656_v23, %v14602_v26  ;;  %v5490_v57 = vadd.f32 %v5489_v50, %v14680_v45  ;;  %v5623_v11 = vadd.f32 %v5622_v8, %v5560_v27  ;;  %v5562_v58 = vmul.f32 %v4967_v29, %v4967_v29  ;;  %v13242_v23 = vld [vmem:[%s13618_s30 + $0x7e8] sm:$0xff]   ;;  %v13243_v45 = vld [vmem:[%s13618_s30 + $0x6f0] sm:$0xff]  }
 0x251   : > { %v14736_v12 = vpop.f32.mrf.mxu0  ;;  %v14740_v53 = vadd.f32 %v4608_v4, %v14612_v62  ;;  %v6559_v0 = vadd.f32 %v6558_v16, %v6033_v42  ;;  %v6692_v22 = vadd.f32 %v6691_v28, %v6629_v13  ;;  %v6631_v21 = vmul.f32 %v6036_v51, %v6036_v51  ;;  %v13246_v13 = vld [vmem:[%s13618_s30 + $0x7f8] sm:$0xff]  }
 0x252   : > { %v11099_v43 = vpack.c.bf16 %v14736_v12, %v14715_v54  ;;  %v14744_v26 = vpop.f32.mrf.mxu1  ;;  %v5624_v6 = vadd.f32 %v5623_v11, %v5561_v19  ;;  %v5491_v15 = vadd.f32 %v5490_v57, %v4967_v29  ;;  %v5563_v10 = vmul.f32 %v14666_v48, %v14666_v48 }
 0x253   : > { %v11259_v30 = vpack.c.bf16 %v14744_v26, %v14721_v44  ;;  %v4983_v18 = vpop.f32.mrf.mxu0  ;;  %v6693_v62 = vadd.f32 %v6692_v22, %v6630_v59  ;;  %v6560_v42 = vadd.f32 %v6559_v0, %v6036_v51  ;;  %v6632_v9 = vmul.f32 %v14673_v14, %v14673_v14 }
 0x254   : > { %11819 = vst [vmem:[%s13814_s22 + $0x458] sm:$0xff] %v11099_v43   ;;  %v11094_v20 = vpack.c.bf16 %v4983_v18, %v4980_v46  ;;  %v6052_v33 = vpop.f32.mrf.mxu1  ;;  %v5492_v2 = vadd.f32 %v14666_v48, %v5491_v15  ;;  %v5625_v34 = vadd.f32 %v5624_v6, %v5562_v58  ;;  %v5564_v48 = vmul.f32 %v14691_v3, %v14691_v3 }
 0x255   : > { %11851 = vst [vmem:[%s13814_s22 + $0x558] sm:$0xff] %v11259_v30   ;;  %v11254_v7 = vpack.c.bf16 %v6052_v33, %v6049_v61  ;;  %v14756_v60 = vpop.f32.mrf.mxu0  ;;  %12809 = vmatmul.mubr.bf16.gmra.mxu0 %v13241_v40  ;;  %v6561_v4 = vadd.f32 %v14673_v14, %v6560_v42  ;;  %v6694_v1 = vadd.f32 %v6693_v62, %v6631_v21 }
 0x256   : > { %11818 = vst [vmem:[%s13814_s22 + $0x450] sm:$0xff] %v11094_v20   ;;  %v14762_v37 = vpop.f32.mrf.mxu1  ;;  %12889 = vmatmul.mubr.bf16.gmra.mxu1 %v13242_v23  ;;  %12812 = vmatprep.mubr.bf16.mxu0 %v13243_v45  ;;  %v5626_v17 = vadd.f32 %v5625_v34, %v5563_v10  ;;  %v5493_v29 = vadd.f32 %v14691_v3, %v5492_v2  ;;  %v13245_v3 = vld [vmem:[%s13618_s30 + $0x6f8] sm:$0xff]  }
 0x257   : > { %11850 = vst [vmem:[%s13814_s22 + $0x550] sm:$0xff] %v11254_v7   ;;  %v4996_v24 = vpop.f32.mrf.mxu0  ;;  %12892 = vmatprep.mubr.bf16.mxu1 %v13244_v63  ;;  %v6633_v5 = vmul.f32 %v14698_v35, %v14698_v35  ;;  %v6695_v14 = vadd.f32 %v6694_v1, %v6632_v9  ;;  %v5565_v38 = vmul.f32 %v4980_v46, %v4980_v46 }
 0x258   : > { %v6562_v32 = vadd.f32 %v14698_v35, %v6561_v4  ;;  %v6065_v36 = vpop.f32.mrf.mxu1  ;;  %v5494_v51 = vadd.f32 %v5493_v29, %v4980_v46  ;;  %v5627_v39 = vadd.f32 %v5626_v17, %v5564_v48  ;;  %v6634_v31 = vmul.f32 %v6049_v61, %v6049_v61 }
 0x259   : > { %v5566_v25 = vmul.f32 %v4983_v18, %v4983_v18  ;;  %v14771_v52 = vpop.f32.mrf.mxu0  ;;  %v6696_v27 = vadd.f32 %v6695_v14, %v6633_v5  ;;  %v6635_v55 = vmul.f32 %v6052_v33, %v6052_v33  ;;  %v6636_v0 = vmul.f32 %v14721_v44, %v14721_v44 }
 0x25a   : > { %v6563_v41 = vadd.f32 %v6562_v32, %v6049_v61  ;;  %v11109_v56 = vpack.c.bf16 %v14771_v52, %v14756_v60  ;;  %v14776_v47 = vpop.f32.mrf.mxu1  ;;  %v5628_v35 = vadd.f32 %v5627_v39, %v5565_v38  ;;  %v5495_v50 = vadd.f32 %v5494_v51, %v4983_v18 }
 0x25b   : > { %v11269_v19 = vpack.c.bf16 %v14776_v47, %v14762_v37  ;;  %v4999_v8 = vpop.f32.mrf.mxu0  ;;  %v6697_v46 = vadd.f32 %v6696_v27, %v6634_v31  ;;  %v5567_v61 = vmul.f32 %v14715_v54, %v14715_v54  ;;  %v5568_v23 = vmul.f32 %v14736_v12, %v14736_v12 }
 0x25c   : > { %v6564_v16 = vadd.f32 %v6563_v41, %v6052_v33  ;;  %11821 = vst [vmem:[%s13814_s22 + $0x468] sm:$0xff] %v11109_v56   ;;  %v11104_v59 = vpack.c.bf16 %v4999_v8, %v4996_v24  ;;  %v6068_v28 = vpop.f32.mrf.mxu1  ;;  %v5496_v57 = vadd.f32 %v14715_v54, %v5495_v50  ;;  %v5629_v11 = vadd.f32 %v5628_v35, %v5566_v25 }
 0x25d   : > { %11853 = vst [vmem:[%s13814_s22 + $0x568] sm:$0xff] %v11269_v19   ;;  %v11264_v58 = vpack.c.bf16 %v6068_v28, %v6065_v36  ;;  %v14786_v40 = vpop.f32.mrf.mxu0  ;;  %12813 = vmatmul.mubr.bf16.gmra.mxu0 %v13245_v3  ;;  %v6698_v21 = vadd.f32 %v6697_v46, %v6635_v55  ;;  %v6637_v15 = vmul.f32 %v14744_v26, %v14744_v26 }
 0x25e   : > { %v6565_v22 = vadd.f32 %v14721_v44, %v6564_v16  ;;  %11820 = vst [vmem:[%s13814_s22 + $0x460] sm:$0xff] %v11104_v59   ;;  %v14792_v43 = vpop.f32.mrf.mxu1  ;;  %12893 = vmatmul.mubr.bf16.gmra.mxu1 %v13246_v13  ;;  %v5630_v54 = vadd.f32 %v5629_v11, %v5567_v61  ;;  %v5497_v45 = vadd.f32 %v14736_v12, %v5496_v57 }
 0x25f   : > { %11852 = vst [vmem:[%s13814_s22 + $0x560] sm:$0xff] %v11264_v58   ;;  %v5012_v6 = vpop.f32.mrf.mxu0  ;;  %v6699_v30 = vadd.f32 %v6698_v21, %v6636_v0  ;;  %v5569_v18 = vmul.f32 %v4996_v24, %v4996_v24  ;;  %v6638_v20 = vmul.f32 %v6065_v36, %v6065_v36  ;;  %v5570_v33 = vmul.f32 %v4999_v8, %v4999_v8 }
 0x260   : > { %v6566_v44 = vadd.f32 %v14744_v26, %v6565_v22  ;;  %v6081_v63 = vpop.f32.mrf.mxu1  ;;  %v5498_v62 = vadd.f32 %v5497_v45, %v4996_v24  ;;  %v5631_v42 = vadd.f32 %v5630_v54, %v5568_v23  ;;  %v6639_v12 = vmul.f32 %v6068_v28, %v6068_v28 }
 0x261   : > { %v14801_v10 = vpop.f32.mrf.mxu0  ;;  %v6700_v34 = vadd.f32 %v6699_v30, %v6637_v15  ;;  %v5571_v14 = vmul.f32 %v14756_v60, %v14756_v60  ;;  %v6640_v39 = vmul.f32 %v14762_v37, %v14762_v37  ;;  %v5572_v41 = vmul.f32 %v14771_v52, %v14771_v52 }
 0x262   : > { %v6567_v2 = vadd.f32 %v6566_v44, %v6065_v36  ;;  %v11119_v7 = vpack.c.bf16 %v14801_v10, %v14786_v40  ;;  %v14805_v9 = vpop.f32.mrf.mxu1  ;;  %v5632_v4 = vadd.f32 %v5631_v42, %v5569_v18  ;;  %v5499_v1 = vadd.f32 %v5498_v62, %v4999_v8 }
 0x263   : > { %v11279_v26 = vpack.c.bf16 %v14805_v9, %v14792_v43  ;;  %v5015_v48 = vpop.f32.mrf.mxu0  ;;  %v6701_v17 = vadd.f32 %v6700_v34, %v6638_v20  ;;  %v6641_v56 = vmul.f32 %v14776_v47, %v14776_v47  ;;  %v5573_v35 = vmul.f32 %v5012_v6, %v5012_v6 }
 0x264   : > { %v6568_v29 = vadd.f32 %v6567_v2, %v6068_v28  ;;  %11823 = vst [vmem:[%s13814_s22 + $0x478] sm:$0xff] %v11119_v7   ;;  %v11114_v24 = vpack.c.bf16 %v5015_v48, %v5012_v6  ;;  %v6084_v5 = vpop.f32.mrf.mxu1  ;;  %v5500_v38 = vadd.f32 %v14756_v60, %v5499_v1  ;;  %v5633_v32 = vadd.f32 %v5632_v4, %v5570_v33 }
 0x265   : > { %11855 = vst [vmem:[%s13814_s22 + $0x578] sm:$0xff] %v11279_v26   ;;  %v11274_v36 = vpack.c.bf16 %v6084_v5, %v6081_v63  ;;  %v14814_v51 = vpop.f32.mrf.mxu0  ;;  %v6702_v25 = vadd.f32 %v6701_v17, %v6639_v12  ;;  %v6642_v46 = vmul.f32 %v6081_v63, %v6081_v63  ;;  %v5574_v16 = vmul.f32 %v5015_v48, %v5015_v48 }
 0x266   : > { %v6569_v31 = vadd.f32 %v14762_v37, %v6568_v29  ;;  %11822 = vst [vmem:[%s13814_s22 + $0x470] sm:$0xff] %v11114_v24   ;;  %v14820_v3 = vpop.f32.mrf.mxu1  ;;  %v5634_v27 = vadd.f32 %v5633_v32, %v5571_v14  ;;  %v5501_v60 = vadd.f32 %v14771_v52, %v5500_v38  ;;  %v6643_v52 = vmul.f32 %v6084_v5, %v6084_v5 }
 0x267   : > { %11854 = vst [vmem:[%s13814_s22 + $0x570] sm:$0xff] %v11274_v36   ;;  %v5028_v55 = vpop.f32.mrf.mxu0  ;;  %v6703_v13 = vadd.f32 %v6702_v25, %v6640_v39  ;;  %v5576_v33 = vmul.f32 %v14801_v10, %v14801_v10  ;;  %v6645_v12 = vmul.f32 %v14805_v9, %v14805_v9 }
 0x268   : > { %v6570_v50 = vadd.f32 %v14776_v47, %v6569_v31  ;;  %v6097_v37 = vpop.f32.mrf.mxu1  ;;  %v5502_v19 = vadd.f32 %v5501_v60, %v5012_v6  ;;  %v5635_v8 = vadd.f32 %v5634_v27, %v5572_v41  ;;  %v5575_v6 = vmul.f32 %v14786_v40, %v14786_v40 }
 0x269   : > { %v14829_v59 = vpop.f32.mrf.mxu0  ;;  %v6704_v61 = vadd.f32 %v6703_v13, %v6641_v56  ;;  %v5577_v4 = vmul.f32 %v5028_v55, %v5028_v55  ;;  %v6646_v17 = vmul.f32 %v6097_v37, %v6097_v37 }
 0x26a   : > { %v6571_v28 = vadd.f32 %v6570_v50, %v6081_v63  ;;  %v11129_v57 = vpack.c.bf16 %v14829_v59, %v14814_v51  ;;  %v14833_v11 = vpop.f32.mrf.mxu1  ;;  %v5636_v58 = vadd.f32 %v5635_v8, %v5573_v35  ;;  %v5503_v0 = vadd.f32 %v5502_v19, %v5015_v48 }
 0x26b   : > { %v11289_v47 = vpack.c.bf16 %v14833_v11, %v14820_v3  ;;  %v5031_v22 = vpop.f32.mrf.mxu0  ;;  %v6705_v21 = vadd.f32 %v6704_v61, %v6642_v46  ;;  %v6644_v63 = vmul.f32 %v14792_v43, %v14792_v43 }
 0x26c   : > { %v6572_v23 = vadd.f32 %v6571_v28, %v6084_v5  ;;  %11825 = vst [vmem:[%s13814_s22 + $0x488] sm:$0xff] %v11129_v57   ;;  %v11124_v54 = vpack.c.bf16 %v5031_v22, %v5028_v55  ;;  %v6100_v45 = vpop.f32.mrf.mxu1  ;;  %v5504_v15 = vadd.f32 %v14786_v40, %v5503_v0  ;;  %v5637_v30 = vadd.f32 %v5636_v58, %v5574_v16 }
 0x26d   : > { %11857 = vst [vmem:[%s13814_s22 + $0x588] sm:$0xff] %v11289_v47   ;;  %v11284_v18 = vpack.c.bf16 %v6100_v45, %v6097_v37  ;;  %v14842_v44 = vpop.f32.mrf.mxu0  ;;  %v6706_v42 = vadd.f32 %v6705_v21, %v6643_v52  ;;  %v5578_v29 = vmul.f32 %v5031_v22, %v5031_v22  ;;  %v5580_v16 = vmul.f32 %v14829_v59, %v14829_v59 }
 0x26e   : > { %v6573_v62 = vadd.f32 %v14792_v43, %v6572_v23  ;;  %11824 = vst [vmem:[%s13814_s22 + $0x480] sm:$0xff] %v11124_v54   ;;  %v14848_v20 = vpop.f32.mrf.mxu1  ;;  %v5638_v2 = vadd.f32 %v5637_v30, %v5575_v6  ;;  %v5505_v40 = vadd.f32 %v14801_v10, %v5504_v15  ;;  %v6647_v10 = vmul.f32 %v6100_v45, %v6100_v45 }
 0x26f   : > { %11856 = vst [vmem:[%s13814_s22 + $0x580] sm:$0xff] %v11284_v18   ;;  %v5044_v34 = vpop.f32.mrf.mxu0  ;;  %v6707_v7 = vadd.f32 %v6706_v42, %v6644_v63  ;;  %v6649_v52 = vmul.f32 %v14833_v11, %v14833_v11 }
 0x270   : > { %v6574_v1 = vadd.f32 %v14805_v9, %v6573_v62  ;;  %v6113_v43 = vpop.f32.mrf.mxu1  ;;  %v5506_v26 = vadd.f32 %v5505_v40, %v5028_v55  ;;  %v5639_v48 = vadd.f32 %v5638_v2, %v5576_v33  ;;  %v5579_v55 = vmul.f32 %v14814_v51, %v14814_v51 }
 0x271   : > { %v14857_v24 = vpop.f32.mrf.mxu0  ;;  %v6708_v14 = vadd.f32 %v6707_v7, %v6645_v12  ;;  %v5581_v58 = vmul.f32 %v5044_v34, %v5044_v34  ;;  %v6650_v21 = vmul.f32 %v6113_v43, %v6113_v43 }
 0x272   : > { %v6575_v5 = vadd.f32 %v6574_v1, %v6097_v37  ;;  %v11139_v38 = vpack.c.bf16 %v14857_v24, %v14842_v44  ;;  %v14861_v32 = vpop.f32.mrf.mxu1  ;;  %v5640_v36 = vadd.f32 %v5639_v48, %v5577_v4  ;;  %v5507_v39 = vadd.f32 %v5506_v26, %v5031_v22 }
 0x273   : > { %v11299_v9 = vpack.c.bf16 %v14861_v32, %v14848_v20  ;;  %v5047_v31 = vpop.f32.mrf.mxu0  ;;  %v6709_v25 = vadd.f32 %v6708_v14, %v6646_v17  ;;  %v6648_v37 = vmul.f32 %v14820_v3, %v14820_v3 }
 0x274   : > { %v6576_v41 = vadd.f32 %v6575_v5, %v6100_v45  ;;  %11827 = vst [vmem:[%s13814_s22 + $0x498] sm:$0xff] %v11139_v38   ;;  %v11134_v27 = vpack.c.bf16 %v5047_v31, %v5044_v34  ;;  %v6116_v60 = vpop.f32.mrf.mxu1  ;;  %v5508_v56 = vadd.f32 %v14814_v51, %v5507_v39  ;;  %v5641_v13 = vadd.f32 %v5640_v36, %v5578_v29 }
 0x275   : > { %11859 = vst [vmem:[%s13814_s22 + $0x598] sm:$0xff] %v11299_v9   ;;  %v11294_v35 = vpack.c.bf16 %v6116_v60, %v6113_v43  ;;  %v14870_v50 = vpop.f32.mrf.mxu0  ;;  %v6710_v8 = vadd.f32 %v6709_v25, %v6647_v10  ;;  %v5582_v23 = vmul.f32 %v5047_v31, %v5047_v31  ;;  %v5584_v29 = vmul.f32 %v14857_v24, %v14857_v24 }
 0x276   : > { %v6577_v19 = vadd.f32 %v14820_v3, %v6576_v41  ;;  %11826 = vst [vmem:[%s13814_s22 + $0x490] sm:$0xff] %v11134_v27   ;;  %v14876_v46 = vpop.f32.mrf.mxu1  ;;  %v5642_v28 = vadd.f32 %v5641_v13, %v5579_v55  ;;  %v5509_v51 = vadd.f32 %v14829_v59, %v5508_v56  ;;  %v6651_v59 = vmul.f32 %v6116_v60, %v6116_v60 }
 0x277   : > { %11858 = vst [vmem:[%s13814_s22 + $0x590] sm:$0xff] %v11294_v35   ;;  %v5060_v61 = vpop.f32.mrf.mxu0  ;;  %v6711_v57 = vadd.f32 %v6710_v8, %v6648_v37  ;;  %v6653_v10 = vmul.f32 %v14861_v32, %v14861_v32 }
 0x278   : > { %v6578_v0 = vadd.f32 %v14833_v11, %v6577_v19  ;;  %v6129_v3 = vpop.f32.mrf.mxu1  ;;  %v5510_v47 = vadd.f32 %v5509_v51, %v5044_v34  ;;  %v5643_v22 = vadd.f32 %v5642_v28, %v5580_v16  ;;  %v5583_v34 = vmul.f32 %v14842_v44, %v14842_v44 }
 0x279   : > { %v14885_v54 = vpop.f32.mrf.mxu0  ;;  %v6712_v6 = vadd.f32 %v6711_v57, %v6649_v52  ;;  %v5585_v36 = vmul.f32 %v5060_v61, %v5060_v61  ;;  %v6654_v25 = vmul.f32 %v6129_v3, %v6129_v3 }
 0x27a   : > { %v6579_v45 = vadd.f32 %v6578_v0, %v6113_v43  ;;  %v11149_v15 = vpack.c.bf16 %v14885_v54, %v14870_v50  ;;  %v14889_v30 = vpop.f32.mrf.mxu1  ;;  %v5644_v18 = vadd.f32 %v5643_v22, %v5581_v58  ;;  %v5511_v63 = vadd.f32 %v5510_v47, %v5047_v31 }
 0x27b   : > { %v11309_v11 = vpack.c.bf16 %v14889_v30, %v14876_v46  ;;  %v5063_v62 = vpop.f32.mrf.mxu0  ;;  %v6713_v42 = vadd.f32 %v6712_v6, %v6650_v21  ;;  %v6652_v43 = vmul.f32 %v14848_v20, %v14848_v20 }
 0x27c   : > { %v6580_v33 = vadd.f32 %v6579_v45, %v6116_v60  ;;  %11829 = vst [vmem:[%s13814_s22 + $0x4a8] sm:$0xff] %v11149_v15   ;;  %v11144_v2 = vpack.c.bf16 %v5063_v62, %v5060_v61  ;;  %v6132_v40 = vpop.f32.mrf.mxu1  ;;  %v5512_v12 = vadd.f32 %v14842_v44, %v5511_v63  ;;  %v5645_v7 = vadd.f32 %v5644_v18, %v5582_v23 }
 0x27d   : > { %11861 = vst [vmem:[%s13814_s22 + $0x5a8] sm:$0xff] %v11309_v11   ;;  %v11304_v4 = vpack.c.bf16 %v6132_v40, %v6129_v3  ;;  %v14898_v1 = vpop.f32.mrf.mxu0  ;;  %v6714_v48 = vadd.f32 %v6713_v42, %v6651_v59  ;;  %v5586_v41 = vmul.f32 %v5063_v62, %v5063_v62  ;;  %v5588_v23 = vmul.f32 %v14885_v54, %v14885_v54 }
 0x27e   : > { %v6581_v26 = vadd.f32 %v14848_v20, %v6580_v33  ;;  %11828 = vst [vmem:[%s13814_s22 + $0x4a0] sm:$0xff] %v11144_v2   ;;  %v14904_v17 = vpop.f32.mrf.mxu1  ;;  %v5646_v5 = vadd.f32 %v5645_v7, %v5583_v34  ;;  %v5513_v44 = vadd.f32 %v14857_v24, %v5512_v12  ;;  %v6655_v24 = vmul.f32 %v6132_v40, %v6132_v40 }
 0x27f   : > { %11860 = vst [vmem:[%s13814_s22 + $0x5a0] sm:$0xff] %v11304_v4   ;;  %v5076_v14 = vpop.f32.mrf.mxu0  ;;  %v6715_v38 = vadd.f32 %v6714_v48, %v6652_v43  ;;  %v6657_v59 = vmul.f32 %v14889_v30, %v14889_v30 }
 0x280   : > { %v6582_v39 = vadd.f32 %v14861_v32, %v6581_v26  ;;  %v6145_v20 = vpop.f32.mrf.mxu1  ;;  %v5514_v9 = vadd.f32 %v5513_v44, %v5060_v61  ;;  %v5647_v31 = vadd.f32 %v5646_v5, %v5584_v29  ;;  %v5587_v61 = vmul.f32 %v14870_v50, %v14870_v50 }
 0x281   : > { %v14913_v27 = vpop.f32.mrf.mxu0  ;;  %v6716_v55 = vadd.f32 %v6715_v38, %v6653_v10  ;;  %v5589_v18 = vmul.f32 %v5076_v14, %v5076_v14  ;;  %v6658_v42 = vmul.f32 %v6145_v20, %v6145_v20 }
 0x282   : > { %v6583_v60 = vadd.f32 %v6582_v39, %v6129_v3  ;;  %v11159_v56 = vpack.c.bf16 %v14913_v27, %v14898_v1  ;;  %v14917_v13 = vpop.f32.mrf.mxu1  ;;  %v5648_v35 = vadd.f32 %v5647_v31, %v5585_v36  ;;  %v5515_v37 = vadd.f32 %v5514_v9, %v5063_v62 }
 0x283   : > { %v11319_v32 = vpack.c.bf16 %v14917_v13, %v14904_v17  ;;  %v5079_v19 = vpop.f32.mrf.mxu0  ;;  %v6717_v8 = vadd.f32 %v6716_v55, %v6654_v25  ;;  %v6656_v3 = vmul.f32 %v14876_v46, %v14876_v46 }
 0x284   : > { %v6584_v16 = vadd.f32 %v6583_v60, %v6132_v40  ;;  %11831 = vst [vmem:[%s13814_s22 + $0x4b8] sm:$0xff] %v11159_v56   ;;  %v11154_v28 = vpack.c.bf16 %v5079_v19, %v5076_v14  ;;  %v6148_v51 = vpop.f32.mrf.mxu1  ;;  %v5516_v52 = vadd.f32 %v14870_v50, %v5515_v37  ;;  %v5649_v57 = vadd.f32 %v5648_v35, %v5586_v41 }
 0x285   : > { %11863 = vst [vmem:[%s13814_s22 + $0x5b8] sm:$0xff] %v11319_v32   ;;  %v11314_v58 = vpack.c.bf16 %v6148_v51, %v6145_v20  ;;  %v14926_v0 = vpop.f32.mrf.mxu0  ;;  %v6718_v22 = vadd.f32 %v6717_v8, %v6655_v24  ;;  %v5590_v33 = vmul.f32 %v5079_v19, %v5079_v19  ;;  %v5592_v41 = vmul.f32 %v14913_v27, %v14913_v27 }
 0x286   : > { %v6585_v47 = vadd.f32 %v14876_v46, %v6584_v16  ;;  %11830 = vst [vmem:[%s13814_s22 + $0x4b0] sm:$0xff] %v11154_v28   ;;  %v14932_v21 = vpop.f32.mrf.mxu1  ;;  %v5650_v45 = vadd.f32 %v5649_v57, %v5587_v61  ;;  %v5517_v50 = vadd.f32 %v14885_v54, %v5516_v52  ;;  %v6659_v54 = vmul.f32 %v6148_v51, %v6148_v51 }
 0x287   : > { %11862 = vst [vmem:[%s13814_s22 + $0x5b0] sm:$0xff] %v11314_v58   ;;  %v5092_v6 = vpop.f32.mrf.mxu0  ;;  %v6719_v15 = vadd.f32 %v6718_v22, %v6656_v3  ;;  %v6661_v24 = vmul.f32 %v14917_v13, %v14917_v13 }
 0x288   : > { %v6586_v63 = vadd.f32 %v14889_v30, %v6585_v47  ;;  %v6161_v46 = vpop.f32.mrf.mxu1  ;;  %v5518_v11 = vadd.f32 %v5517_v50, %v5076_v14  ;;  %v5651_v62 = vadd.f32 %v5650_v45, %v5588_v23  ;;  %v5591_v14 = vmul.f32 %v14898_v1, %v14898_v1 }
 0x289   : > { %v14941_v2 = vpop.f32.mrf.mxu0  ;;  %v6720_v34 = vadd.f32 %v6719_v15, %v6657_v59  ;;  %v5593_v35 = vmul.f32 %v5092_v6, %v5092_v6  ;;  %v6662_v8 = vmul.f32 %v6161_v46, %v6161_v46 }
 0x28a   : > { %v6587_v40 = vadd.f32 %v6586_v63, %v6145_v20  ;;  %v11169_v12 = vpack.c.bf16 %v14941_v2, %v14926_v0  ;;  %v14945_v7 = vpop.f32.mrf.mxu1  ;;  %v5652_v4 = vadd.f32 %v5651_v62, %v5589_v18  ;;  %v5519_v43 = vadd.f32 %v5518_v11, %v5079_v19 }
 0x28b   : > { %v11329_v30 = vpack.c.bf16 %v14945_v7, %v14932_v21  ;;  %v5095_v26 = vpop.f32.mrf.mxu0  ;;  %v6721_v48 = vadd.f32 %v6720_v34, %v6658_v42  ;;  %v6660_v20 = vmul.f32 %v14904_v17, %v14904_v17 }
 0x28c   : > { %v6588_v29 = vadd.f32 %v6587_v40, %v6148_v51  ;;  %11833 = vst [vmem:[%s13814_s22 + $0x4c8] sm:$0xff] %v11169_v12   ;;  %v11164_v5 = vpack.c.bf16 %v5095_v26, %v5092_v6  ;;  %v6164_v44 = vpop.f32.mrf.mxu1  ;;  %v5520_v10 = vadd.f32 %v14898_v1, %v5519_v43  ;;  %v5653_v38 = vadd.f32 %v5652_v4, %v5590_v33 }
 0x28d   : > { %11865 = vst [vmem:[%s13814_s22 + $0x5c8] sm:$0xff] %v11329_v30   ;;  %v11324_v36 = vpack.c.bf16 %v6164_v44, %v6161_v46  ;;  %v14954_v39 = vpop.f32.mrf.mxu0  ;;  %v6722_v31 = vadd.f32 %v6721_v48, %v6659_v54  ;;  %v5594_v16 = vmul.f32 %v5095_v26, %v5095_v26  ;;  %v5596_v33 = vmul.f32 %v14941_v2, %v14941_v2 }
 0x28e   : > { %v6589_v9 = vadd.f32 %v14904_v17, %v6588_v29  ;;  %11832 = vst [vmem:[%s13814_s22 + $0x4c0] sm:$0xff] %v11164_v5   ;;  %v14960_v25 = vpop.f32.mrf.mxu1  ;;  %v5654_v60 = vadd.f32 %v5653_v38, %v5591_v14  ;;  %v5521_v1 = vadd.f32 %v14913_v27, %v5520_v10  ;;  %v6663_v27 = vmul.f32 %v6164_v44, %v6164_v44 }
 0x28f   : > { %11864 = vst [vmem:[%s13814_s22 + $0x5c0] sm:$0xff] %v11324_v36   ;;  %v5108_v55 = vpop.f32.mrf.mxu0  ;;  %v6723_v56 = vadd.f32 %v6722_v31, %v6660_v20  ;;  %v6665_v54 = vmul.f32 %v14945_v7, %v14945_v7 }
 0x290   : > { %v6590_v37 = vadd.f32 %v14917_v13, %v6589_v9  ;;  %v6177_v17 = vpop.f32.mrf.mxu1  ;;  %v5522_v32 = vadd.f32 %v5521_v1, %v5092_v6  ;;  %v5655_v19 = vadd.f32 %v5654_v60, %v5592_v41  ;;  %v5595_v6 = vmul.f32 %v14926_v0, %v14926_v0 }
 0x291   : > { %v14969_v28 = vpop.f32.mrf.mxu0  ;;  %v6724_v61 = vadd.f32 %v6723_v56, %v6661_v24  ;;  %v5597_v4 = vmul.f32 %v5108_v55, %v5108_v55  ;;  %v6666_v48 = vmul.f32 %v6177_v17, %v6177_v17 }
 0x292   : > { %v6591_v51 = vadd.f32 %v6590_v37, %v6161_v46  ;;  %v11179_v52 = vpack.c.bf16 %v14969_v28, %v14954_v39  ;;  %v14973_v57 = vpop.f32.mrf.mxu1  ;;  %v5656_v58 = vadd.f32 %v5655_v19, %v5593_v35  ;;  %v5523_v3 = vadd.f32 %v5522_v32, %v5095_v26 }
 0x293   : > { %v11339_v13 = vpack.c.bf16 %v14973_v57, %v14960_v25  ;;  %v5111_v47 = vpop.f32.mrf.mxu0  ;;  %v6725_v22 = vadd.f32 %v6724_v61, %v6662_v8  ;;  %v6664_v46 = vmul.f32 %v14932_v21, %v14932_v21  ;;  %v5600_v32 = vmul.f32 %v14969_v28, %v14969_v28 }
 0x294   : > { %v6592_v23 = vadd.f32 %v6591_v51, %v6164_v44  ;;  %11835 = vst [vmem:[%s13814_s22 + $0x4d8] sm:$0xff] %v11179_v52   ;;  %v11174_v45 = vpack.c.bf16 %v5111_v47, %v5108_v55  ;;  %v6180_v50 = vpop.f32.mrf.mxu1  ;;  %v5524_v59 = vadd.f32 %v14926_v0, %v5523_v3  ;;  %v5657_v15 = vadd.f32 %v5656_v58, %v5594_v16 }
 0x295   : > { %11867 = vst [vmem:[%s13814_s22 + $0x5d8] sm:$0xff] %v11339_v13   ;;  %v11334_v18 = vpack.c.bf16 %v6180_v50, %v6177_v17  ;;  %v14982_v63 = vpop.f32.mrf.mxu0  ;;  %v6726_v62 = vadd.f32 %v6725_v22, %v6663_v27  ;;  %v5598_v29 = vmul.f32 %v5111_v47, %v5111_v47 }
 0x296   : > { %v6593_v11 = vadd.f32 %v14932_v21, %v6592_v23  ;;  %11834 = vst [vmem:[%s13814_s22 + $0x4d0] sm:$0xff] %v11174_v45   ;;  %v14988_v42 = vpop.f32.mrf.mxu1  ;;  %v5658_v40 = vadd.f32 %v5657_v15, %v5595_v6  ;;  %v5525_v0 = vadd.f32 %v14941_v2, %v5524_v59  ;;  %v6667_v2 = vmul.f32 %v6180_v50, %v6180_v50 }
 0x297   : > { %11866 = vst [vmem:[%s13814_s22 + $0x5d0] sm:$0xff] %v11334_v18   ;;  %v5124_v34 = vpop.f32.mrf.mxu0  ;;  %v6727_v12 = vadd.f32 %v6726_v62, %v6664_v46  ;;  %v5603_v61 = vmul.f32 %v14982_v63, %v14982_v63  ;;  %v6672_v3 = vmul.f32 %v14988_v42, %v14988_v42 }
 0x298   : > { %v6594_v43 = vadd.f32 %v14945_v7, %v6593_v11  ;;  %v6193_v21 = vpop.f32.mrf.mxu1  ;;  %v5526_v30 = vadd.f32 %v5525_v0, %v5108_v55  ;;  %v5659_v26 = vadd.f32 %v5658_v40, %v5596_v33  ;;  %v5599_v55 = vmul.f32 %v14954_v39, %v14954_v39 }
 0x299   : > { %v14997_v5 = vpop.f32.mrf.mxu0  ;;  %v6728_v14 = vadd.f32 %v6727_v12, %v6665_v54  ;;  %v6670_v45 = vmul.f32 %v6193_v21, %v6193_v21 }
 0x29a   : > { %v6595_v44 = vadd.f32 %v6594_v43, %v6177_v17  ;;  %v11189_v10 = vpack.c.bf16 %v14997_v5, %v14982_v63  ;;  %v15001_v38 = vpop.f32.mrf.mxu1  ;;  %v5660_v36 = vadd.f32 %v5659_v26, %v5597_v4  ;;  %v5527_v20 = vadd.f32 %v5526_v30, %v5111_v47 }
 0x29b   : > { %v11349_v7 = vpack.c.bf16 %v15001_v38, %v14988_v42  ;;  %v5127_v9 = vpop.f32.mrf.mxu0  ;;  %v6729_v31 = vadd.f32 %v6728_v14, %v6666_v48  ;;  %v6668_v17 = vmul.f32 %v14960_v25, %v14960_v25 }
 0x29c   : > { %v6596_v41 = vadd.f32 %v6595_v44, %v6180_v50  ;;  %11837 = vst [vmem:[%s13814_s22 + $0x4e8] sm:$0xff] %v11189_v10   ;;  %v11184_v60 = vpack.c.bf16 %v5127_v9, %v5124_v34  ;;  %v6196_v1 = vpop.f32.mrf.mxu1  ;;  %v5528_v24 = vadd.f32 %v14954_v39, %v5527_v20  ;;  %v5661_v56 = vadd.f32 %v5660_v36, %v5598_v29 }
 0x29d   : > { %11869 = vst [vmem:[%s13814_s22 + $0x5e8] sm:$0xff] %v11349_v7   ;;  %v11344_v35 = vpack.c.bf16 %v6196_v1, %v6193_v21  ;;  %v15010_v37 = vpop.f32.mrf.mxu0  ;;  %v6730_v8 = vadd.f32 %v6729_v31, %v6667_v2  ;;  %v6669_v39 = vmul.f32 %v14973_v57, %v14973_v57  ;;  %v5602_v50 = vmul.f32 %v5127_v9, %v5127_v9 }
 0x29e   : > { %v6597_v19 = vadd.f32 %v14960_v25, %v6596_v41  ;;  %11836 = vst [vmem:[%s13814_s22 + $0x4e0] sm:$0xff] %v11184_v60   ;;  %v15018_v16 = vpop.f32.mrf.mxu1  ;;  %v5662_v51 = vadd.f32 %v5661_v56, %v5599_v55  ;;  %v5529_v27 = vadd.f32 %v14969_v28, %v5528_v24  ;;  %v5601_v25 = vmul.f32 %v5124_v34, %v5124_v34 }
 0x29f   : > { %11868 = vst [vmem:[%s13814_s22 + $0x5e0] sm:$0xff] %v11344_v35   ;;  %v5140_v52 = vpop.f32.mrf.mxu0  ;;  %v6731_v58 = vadd.f32 %v6730_v8, %v6668_v17  ;;  %v6671_v28 = vmul.f32 %v6196_v1, %v6196_v1  ;;  %v5607_v30 = vmul.f32 %v15010_v37, %v15010_v37  ;;  %v6676_v14 = vmul.f32 %v15018_v16, %v15018_v16 }
 0x2a0   : > { %v6598_v13 = vadd.f32 %v14973_v57, %v6597_v19  ;;  %v6209_v47 = vpop.f32.mrf.mxu1  ;;  %v5530_v22 = vadd.f32 %v5529_v27, %v5124_v34  ;;  %v5663_v23 = vadd.f32 %v5662_v51, %v5600_v32  ;;  %v5604_v57 = vmul.f32 %v14997_v5, %v14997_v5 }
 0x2a1   : > { %v15029_v6 = vpop.f32.mrf.mxu0  ;;  %v6732_v15 = vadd.f32 %v6731_v58, %v6669_v39  ;;  %v6673_v34 = vmul.f32 %v15001_v38, %v15001_v38  ;;  %v5605_v2 = vmul.f32 %v5140_v52, %v5140_v52  ;;  %v6674_v20 = vmul.f32 %v6209_v47, %v6209_v47 }
 0x2a2   : > { %v6599_v59 = vadd.f32 %v6598_v13, %v6193_v21  ;;  %v11199_v18 = vpack.c.bf16 %v15029_v6, %v15010_v37  ;;  %v15033_v46 = vpop.f32.mrf.mxu1  ;;  %v5664_v11 = vadd.f32 %v5663_v23, %v5601_v25  ;;  %v5531_v62 = vadd.f32 %v5530_v22, %v5127_v9 }
 0x2a3   : > { %v11359_v33 = vpack.c.bf16 %v15033_v46, %v15018_v16  ;;  %v5143_v40 = vpop.f32.mrf.mxu0  ;;  %v6733_v0 = vadd.f32 %v6732_v15, %v6670_v45  ;;  %v5608_v7 = vmul.f32 %v15029_v6, %v15029_v6 }
 0x2a4   : > { %v6600_v54 = vadd.f32 %v6599_v59, %v6196_v1  ;;  %11839 = vst [vmem:[%s13814_s22 + $0x4f8] sm:$0xff] %v11199_v18   ;;  %v11194_v12 = vpack.c.bf16 %v5143_v40, %v5140_v52  ;;  %v6212_v4 = vpop.f32.mrf.mxu1  ;;  %v5532_v43 = vadd.f32 %v14982_v63, %v5531_v62  ;;  %v5665_v21 = vadd.f32 %v5664_v11, %v5602_v50 }
 0x2a5   : > { %11871 = vst [vmem:[%s13814_s22 + $0x5f8] sm:$0xff] %v11359_v33   ;;  %v11354_v26 = vpack.c.bf16 %v6212_v4, %v6209_v47  ;;  %v12754_v48 = vpop.f32.mrf.mxu0  ;;  %v6734_v44 = vadd.f32 %v6733_v0, %v6671_v28  ;;  %v5606_v60 = vmul.f32 %v5143_v40, %v5143_v40  ;;  %v6675_v56 = vmul.f32 %v6212_v4, %v6212_v4 }
 0x2a6   : > { %v6601_v29 = vadd.f32 %v14988_v42, %v6600_v54  ;;  %11838 = vst [vmem:[%s13814_s22 + $0x4f0] sm:$0xff] %v11194_v12   ;;  %v12834_v10 = vpop.f32.mrf.mxu1  ;;  %v5666_v36 = vadd.f32 %v5665_v21, %v5603_v61  ;;  %v5533_v63 = vadd.f32 %v14997_v5, %v5532_v43  ;;  %v6677_v42 = vmul.f32 %v15033_v46, %v15033_v46 }
 0x2a7   : > { %11870 = vst [vmem:[%s13814_s22 + $0x5f0] sm:$0xff] %v11354_v26   ;;  %v7038_v9 = vpop.f32.mrf.mxu0  ;;  %v6735_v31 = vadd.f32 %v6734_v44, %v6672_v3  ;;  %v7685_v35 = vmul.f32 %v12754_v48, %v12754_v48  ;;  %v8754_v12 = vmul.f32 %v12834_v10, %v12834_v10 }
 0x2a8   : > { %v6602_v41 = vadd.f32 %v15001_v38, %v6601_v29  ;;  %v8107_v1 = vpop.f32.mrf.mxu1  ;;  %v5534_v55 = vadd.f32 %v5533_v63, %v5140_v52  ;;  %v5667_v24 = vadd.f32 %v5666_v36, %v5604_v57  ;;  %v7683_v19 = vmul.f32 %v7038_v9, %v7038_v9 }
 0x2a9   : > { %v12755_v5 = vpop.f32.mrf.mxu0  ;;  %v6736_v32 = vadd.f32 %v6735_v31, %v6673_v34  ;;  %v8752_v38 = vmul.f32 %v8107_v1, %v8107_v1 }
 0x2aa   : > { %v6603_v17 = vadd.f32 %v6602_v41, %v6209_v47  ;;  %v11369_v8 = vpack.c.bf16 %v12755_v5, %v12754_v48  ;;  %v12835_v39 = vpop.f32.mrf.mxu1  ;;  %v5668_v51 = vadd.f32 %v5667_v24, %v5605_v2  ;;  %v5535_v61 = vadd.f32 %v5534_v55, %v5143_v40 }
 0x2ab   : > { %v11529_v27 = vpack.c.bf16 %v12835_v39, %v12834_v10  ;;  %v7041_v58 = vpop.f32.mrf.mxu0  ;;  %v6737_v3 = vadd.f32 %v6736_v32, %v6674_v20  ;;  %v7686_v20 = vmul.f32 %v12755_v5, %v12755_v5 }
 0x2ac   : > { %v6604_v25 = vadd.f32 %v6603_v17, %v6212_v4  ;;  %11873 = vst [vmem:[%s13814_s22 + $0x608] sm:$0xff] %v11369_v8   ;;  %v11364_v52 = vpack.c.bf16 %v7041_v58, %v7038_v9  ;;  %v7613_v13 = vadd.f32 %v7041_v58, %v7038_v9  ;;  %v8110_v22 = vpop.f32.mrf.mxu1  ;;  %v5536_v47 = vadd.f32 %v15010_v37, %v5535_v61 }
 0x2ad   : > { %v5669_v23 = vadd.f32 %v5668_v51, %v5606_v60  ;;  %11905 = vst [vmem:[%s13814_s22 + $0x708] sm:$0xff] %v11529_v27   ;;  %v7684_v45 = vmul.f32 %v7041_v58, %v7041_v58  ;;  %v11524_v50 = vpack.c.bf16 %v8110_v22, %v8107_v1  ;;  %v15060_v59 = vpop.f32.mrf.mxu0  ;;  %v6738_v28 = vadd.f32 %v6737_v3, %v6675_v56 }
 0x2ae   : > { %v6605_v15 = vadd.f32 %v15018_v16, %v6604_v25  ;;  %11872 = vst [vmem:[%s13814_s22 + $0x600] sm:$0xff] %v11364_v52   ;;  %v7614_v18 = vadd.f32 %v12754_v48, %v7613_v13  ;;  %v8682_v11 = vadd.f32 %v8110_v22, %v8107_v1  ;;  %v15064_v57 = vpop.f32.mrf.mxu1  ;;  %v5537_v62 = vadd.f32 %v15029_v6, %v5536_v47 }
 0x2af   : > { %v5670_v33 = vadd.f32 %v5669_v23, %v5607_v30  ;;  %v7747_v40 = vadd.f32 %v7684_v45, %v7683_v19  ;;  %11904 = vst [vmem:[%s13814_s22 + $0x700] sm:$0xff] %v11524_v50   ;;  %v8753_v37 = vmul.f32 %v8110_v22, %v8110_v22  ;;  %v7054_v0 = vpop.f32.mrf.mxu0  ;;  %v6739_v54 = vadd.f32 %v6738_v28, %v6676_v14 }
 0x2b0   : > { %v6606_v34 = vadd.f32 %v15033_v46, %v6605_v15  ;;  %v8683_v4 = vadd.f32 %v12834_v10, %v8682_v11  ;;  %v8123_v43 = vpop.f32.mrf.mxu1  ;;  %v5538_v16 = vrot.slane %v5537_v62, 4  ;;  %v7615_v6 = vadd.f32 %v12755_v5, %v7614_v18 }
 0x2b1   : > { %v5671_v21 = vadd.f32 %v5670_v33, %v5608_v7  ;;  %v7748_v26 = vadd.f32 %v7747_v40, %v7685_v35  ;;  %v8816_v48 = vadd.f32 %v8753_v37, %v8752_v38  ;;  %v15069_v29 = vpop.f32.mrf.mxu0  ;;  %v6740_v2 = vadd.f32 %v6739_v54, %v6677_v42 }
 0x2b2   : > { %v6607_v44 = vrot.slane %v6606_v34, 4  ;;  %v15071_v30 = vpop.f32.mrf.mxu1  ;;  %v5539_v36 = vadd.f32 %v5538_v16, %v5537_v62  ;;  %v8755_v14 = vmul.f32 %v12835_v39, %v12835_v39  ;;  %v8684_v7 = vadd.f32 %v12835_v39, %v8683_v4 }
 0x2b3   : > { %v5672_v63 = vrot.slane %v5671_v21, 4  ;;  %v8817_v9 = vadd.f32 %v8816_v48, %v8754_v12  ;;  %v7057_v46 = vpop.f32.mrf.mxu0  ;;  %v7749_v60 = vadd.f32 %v7748_v26, %v7686_v20  ;;  %v7616_v24 = vadd.f32 %v7615_v6, %v7054_v0 }
 0x2b4   : > { %v8126_v31 = vpop.f32.mrf.mxu1  ;;  %v5540_v10 = vrot.slane %v5539_v36, 2  ;;  %v6608_v55 = vadd.f32 %v6607_v44, %v6606_v34  ;;  %v7687_v32 = vmul.f32 %v7054_v0, %v7054_v0  ;;  %v11379_v5 = vpack.c.bf16 %v15069_v29, %v15060_v59 }
 0x2b5   : > { %v5673_v41 = vadd.f32 %v5672_v63, %v5671_v21  ;;  %v15073_v1 = vpop.f32.mrf.mxu0  ;;  %v8818_v42 = vadd.f32 %v8817_v9, %v8755_v14  ;;  %v6741_v8 = vrot.slane %v6740_v2, 4  ;;  %v8685_v51 = vadd.f32 %v8684_v7, %v8123_v43 }
 0x2b6   : > { %v15075_v56 = vpop.f32.mrf.mxu1  ;;  %v5541_v35 = vadd.f32 %v5540_v10, %v5539_v36  ;;  %v8756_v39 = vmul.f32 %v8123_v43, %v8123_v43  ;;  %v7750_v58 = vadd.f32 %v7749_v60, %v7687_v32  ;;  %11875 = vst [vmem:[%s13814_s22 + $0x618] sm:$0xff] %v11379_v5   ;;  %v11539_v3 = vpack.c.bf16 %v15071_v30, %v15064_v57 }
 0x2b7   : > { %v5674_v17 = vrot.slane %v5673_v41, 2  ;;  %v15079_v19 = vpop.f32.mrf.mxu0  ;;  %v6609_v52 = vrot.slane %v6608_v55, 2  ;;  %v11374_v22 = vpack.c.bf16 %v7057_v46, %v7054_v0  ;;  %v7617_v47 = vadd.f32 %v7616_v24, %v7057_v46 }
 0x2b8   : > { %v15081_v61 = vpop.f32.mrf.mxu1  ;;  %v5542_v38 = vrot.slane %v5541_v35, 1  ;;  %v8819_v13 = vadd.f32 %v8818_v42, %v8756_v39  ;;  %11907 = vst [vmem:[%s13814_s22 + $0x718] sm:$0xff] %v11539_v3   ;;  %v7688_v15 = vmul.f32 %v7057_v46, %v7057_v46  ;;  %v11534_v28 = vpack.c.bf16 %v8126_v31, %v8123_v43 }
 0x2b9   : > { %v5675_v27 = vadd.f32 %v5674_v17, %v5673_v41  ;;  %v15086_v25 = vpop.f32.mrf.mxu0  ;;  %v6742_v11 = vadd.f32 %v6741_v8, %v6740_v2  ;;  %v7689_v62 = vmul.f32 %v15060_v59, %v15060_v59  ;;  %11874 = vst [vmem:[%s13814_s22 + $0x610] sm:$0xff] %v11374_v22   ;;  %v7618_v33 = vadd.f32 %v15060_v59, %v7617_v47 }
 0x2ba   : > { %v15088_v23 = vpop.f32.mrf.mxu1  ;;  %v5543_v45 = vadd.f32 %v5542_v38, %v5541_v35  ;;  %v8686_v40 = vadd.f32 %v8685_v51, %v8126_v31  ;;  %v7751_v54 = vadd.f32 %v7750_v58, %v7688_v15  ;;  %11906 = vst [vmem:[%s13814_s22 + $0x710] sm:$0xff] %v11534_v28   ;;  %v8757_v12 = vmul.f32 %v8126_v31, %v8126_v31 }
 0x2bb   : > { %v5676_v50 = vrot.slane %v5675_v27, 1  ;;  %v7073_v18 = vpop.f32.mrf.mxu0  ;;  %v15101_v43 = vadd.f32 %v6609_v52, %v6608_v55  ;;  %v8758_v16 = vmul.f32 %v15064_v57, %v15064_v57  ;;  %v7690_v21 = vmul.f32 %v15069_v29, %v15069_v29 }
 0x2bc   : > { %v8142_v37 = vpop.f32.mrf.mxu1  ;;  %v15096_v0 = vadd.f32 %v5543_v45, %v14733_v49  ;;  %v8687_v59 = vadd.f32 %v15064_v57, %v8686_v40  ;;  %v7752_v48 = vadd.f32 %v7751_v54, %v7689_v62  ;;  %v8820_v44 = vadd.f32 %v8819_v13, %v8757_v12 }
 0x2bd   : > { %v5677_v34 = vadd.f32 %v5676_v50, %v5675_v27  ;;  %v15099_v4 = vpop.f32.mrf.mxu0  ;;  %v7619_v2 = vadd.f32 %v15069_v29, %v7618_v33  ;;  %v6743_v36 = vrot.slane %v6742_v11, 2  ;;  %v8759_v63 = vmul.f32 %v15071_v30, %v15071_v30 }
 0x2be   : > { %v15108_v26 = vpop.f32.mrf.mxu1  ;;  %v8688_v20 = vadd.f32 %v15071_v30, %v8687_v59  ;;  %v11389_v57 = vpack.c.bf16 %v15086_v25, %v15073_v1  ;;  %v8821_v46 = vadd.f32 %v8820_v44, %v8758_v16  ;;  %v7691_v14 = vmul.f32 %v15079_v19, %v15079_v19 }
 0x2bf   : > { %v15111_v49 = vadd.f32 %v5677_v34, %v14740_v53  ;;  %v7086_v6 = vpop.f32.mrf.mxu0  ;;  %v7620_v53 = vadd.f32 %v7619_v2, %v15079_v19  ;;  %v7753_v29 = vadd.f32 %v7752_v48, %v7690_v21  ;;  %v8760_v30 = vmul.f32 %v15081_v61, %v15081_v61 }
 0x2c0   : > { %v15119_v9 = vpop.f32.mrf.mxu1  ;;  %v8689_v10 = vadd.f32 %v8688_v20, %v15081_v61  ;;  %11877 = vst [vmem:[%s13814_s22 + $0x628] sm:$0xff] %v11389_v57   ;;  %v11549_v41 = vpack.c.bf16 %v15088_v23, %v15075_v56  ;;  %v11384_v60 = vpack.c.bf16 %v7073_v18, %v15079_v19  ;;  %v8822_v24 = vadd.f32 %v8821_v46, %v8759_v63 }
 0x2c1   : > { %v15124_v31 = vpop.f32.mrf.mxu0  ;;  %v7754_v55 = vadd.f32 %v7753_v29, %v7691_v14  ;;  %v7621_v42 = vadd.f32 %v7620_v53, %v7073_v18  ;;  %v7692_v35 = vmul.f32 %v7073_v18, %v7073_v18  ;;  %v15135_v32 = vadd.f32 %v6743_v36, %v6742_v11 }
 0x2c2   : > { %v15133_v7 = vpop.f32.mrf.mxu1  ;;  %11909 = vst [vmem:[%s13814_s22 + $0x728] sm:$0xff] %v11549_v41   ;;  %11876 = vst [vmem:[%s13814_s22 + $0x620] sm:$0xff] %v11384_v60   ;;  %v11544_v5 = vpack.c.bf16 %v8142_v37, %v15081_v61  ;;  %v8690_v8 = vadd.f32 %v8689_v10, %v8142_v37  ;;  %v8761_v51 = vmul.f32 %v8142_v37, %v8142_v37  ;;  %v6611_v36 = vrot.slane %v15101_v43, 1 }
 0x2c3   : > { %v7089_v17 = vpop.f32.mrf.mxu0  ;;  %v7693_v19 = vmul.f32 %v15073_v1, %v15073_v1  ;;  %v8823_v38 = vadd.f32 %v8822_v24, %v8760_v30  ;;  %v7622_v27 = vadd.f32 %v15073_v1, %v7621_v42  ;;  %v7755_v58 = vadd.f32 %v7754_v55, %v7692_v35 }
 0x2c4   : > { %v8158_v39 = vpop.f32.mrf.mxu1  ;;  %v8762_v52 = vmul.f32 %v15075_v56, %v15075_v56  ;;  %v7694_v13 = vmul.f32 %v15086_v25, %v15086_v25  ;;  %11908 = vst [vmem:[%s13814_s22 + $0x720] sm:$0xff] %v11544_v5   ;;  %v8691_v61 = vadd.f32 %v15075_v56, %v8690_v8  ;;  %v11399_v22 = vpack.c.bf16 %v15124_v31, %v15099_v4 }
 0x2c5   : > { %v15143_v3 = vpop.f32.mrf.mxu0  ;;  %v8763_v1 = vmul.f32 %v15088_v23, %v15088_v23  ;;  %v7756_v45 = vadd.f32 %v7755_v58, %v7693_v19  ;;  %v8824_v50 = vadd.f32 %v8823_v38, %v8761_v51  ;;  %v7623_v15 = vadd.f32 %v15086_v25, %v7622_v27 }
 0x2c6   : > { %v15153_v47 = vpop.f32.mrf.mxu1  ;;  %v7695_v18 = vmul.f32 %v7086_v6, %v7086_v6  ;;  %v8692_v11 = vadd.f32 %v15088_v23, %v8691_v61  ;;  %11879 = vst [vmem:[%s13814_s22 + $0x638] sm:$0xff] %v11399_v22   ;;  %v11559_v56 = vpack.c.bf16 %v15133_v7, %v15108_v26  ;;  %v11394_v62 = vpack.c.bf16 %v7089_v17, %v7086_v6 }
 0x2c7   : > { %v7102_v28 = vpop.f32.mrf.mxu0  ;;  %v8825_v40 = vadd.f32 %v8824_v50, %v8762_v52  ;;  %v7624_v37 = vadd.f32 %v7623_v15, %v7086_v6  ;;  %v7757_v34 = vadd.f32 %v7756_v45, %v7694_v13  ;;  %v7696_v54 = vmul.f32 %v7089_v17, %v7089_v17 }
 0x2c8   : > { %v8171_v33 = vpop.f32.mrf.mxu1  ;;  %v8693_v25 = vadd.f32 %v8692_v11, %v15119_v9  ;;  %v8764_v16 = vmul.f32 %v15119_v9, %v15119_v9  ;;  %11911 = vst [vmem:[%s13814_s22 + $0x738] sm:$0xff] %v11559_v56   ;;  %11878 = vst [vmem:[%s13814_s22 + $0x630] sm:$0xff] %v11394_v62   ;;  %v11554_v23 = vpack.c.bf16 %v8158_v39, %v15119_v9  ;;  %v6745_v63 = vrot.slane %v15135_v32, 1 }
 0x2c9   : > { %v15162_v12 = vpop.f32.mrf.mxu0  ;;  %v7758_v59 = vadd.f32 %v7757_v34, %v7695_v18  ;;  %v8826_v48 = vadd.f32 %v8825_v40, %v8763_v1  ;;  %v7625_v44 = vadd.f32 %v7624_v37, %v7089_v17  ;;  %v8765_v2 = vmul.f32 %v8158_v39, %v8158_v39 }
 0x2ca   : > { %v15170_v21 = vpop.f32.mrf.mxu1  ;;  %11910 = vst [vmem:[%s13814_s22 + $0x730] sm:$0xff] %v11554_v23   ;;  %v8694_v20 = vadd.f32 %v8693_v25, %v8158_v39  ;;  %v11409_v57 = vpack.c.bf16 %v15162_v12, %v15143_v3  ;;  %v7697_v9 = vmul.f32 %v15099_v4, %v15099_v4  ;;  %v8766_v30 = vmul.f32 %v15108_v26, %v15108_v26 }
 0x2cb   : > { %v7105_v6 = vpop.f32.mrf.mxu0  ;;  %v8827_v53 = vadd.f32 %v8826_v48, %v8764_v16  ;;  %v7626_v14 = vadd.f32 %v15099_v4, %v7625_v44  ;;  %v7759_v29 = vadd.f32 %v7758_v59, %v7696_v54  ;;  %v11569_v60 = vpack.c.bf16 %v15170_v21, %v15153_v47 }
 0x2cc   : > { %v8174_v46 = vpop.f32.mrf.mxu1  ;;  %v8695_v41 = vadd.f32 %v15108_v26, %v8694_v20  ;;  %11881 = vst [vmem:[%s13814_s22 + $0x648] sm:$0xff] %v11409_v57   ;;  %v11404_v55 = vpack.c.bf16 %v7105_v6, %v7102_v28  ;;  %v7698_v4 = vmul.f32 %v15124_v31, %v15124_v31  ;;  %v8767_v8 = vmul.f32 %v15133_v7, %v15133_v7 }
 0x2cd   : > { %v15180_v10 = vpop.f32.mrf.mxu0  ;;  %v7760_v42 = vadd.f32 %v7759_v29, %v7697_v9  ;;  %v8828_v35 = vadd.f32 %v8827_v53, %v8765_v2  ;;  %v7627_v17 = vadd.f32 %v15124_v31, %v7626_v14  ;;  %v7699_v26 = vmul.f32 %v7102_v28, %v7102_v28  ;;  %11913 = vst [vmem:[%s13814_s22 + $0x748] sm:$0xff] %v11569_v60  }
 0x2ce   : > { %v15188_v24 = vpop.f32.mrf.mxu1  ;;  %v8696_v51 = vadd.f32 %v15133_v7, %v8695_v41  ;;  %11880 = vst [vmem:[%s13814_s22 + $0x640] sm:$0xff] %v11404_v55   ;;  %v11564_v39 = vpack.c.bf16 %v8174_v46, %v8171_v33  ;;  %v7700_v52 = vmul.f32 %v7105_v6, %v7105_v6  ;;  %v6612_v31 = vadd.f32 %v6611_v36, %v15101_v43 }
 0x2cf   : > { %v7118_v5 = vpop.f32.mrf.mxu0  ;;  %v8829_v38 = vadd.f32 %v8828_v35, %v8766_v30  ;;  %v7628_v27 = vadd.f32 %v7627_v17, %v7102_v28  ;;  %v7761_v58 = vadd.f32 %v7760_v42, %v7698_v4  ;;  %v8768_v22 = vmul.f32 %v8171_v33, %v8171_v33 }
 0x2d0   : > { %v8187_v19 = vpop.f32.mrf.mxu1  ;;  %v8697_v61 = vadd.f32 %v8696_v51, %v8171_v33  ;;  %11912 = vst [vmem:[%s13814_s22 + $0x740] sm:$0xff] %v11564_v39   ;;  %v8769_v18 = vmul.f32 %v8174_v46, %v8174_v46  ;;  %v6746_v11 = vadd.f32 %v6745_v63, %v15135_v32  ;;  %v7701_v40 = vmul.f32 %v15143_v3, %v15143_v3 }
 0x2d1   : > { %v15198_v13 = vpop.f32.mrf.mxu0  ;;  %v7762_v45 = vadd.f32 %v7761_v58, %v7699_v26  ;;  %v8830_v50 = vadd.f32 %v8829_v38, %v8767_v8  ;;  %v7629_v15 = vadd.f32 %v7628_v27, %v7105_v6  ;;  %v8770_v32 = vmul.f32 %v15153_v47, %v15153_v47 }
 0x2d2   : > { %v11419_v1 = vpack.c.bf16 %v15198_v13, %v15180_v10  ;;  %v15204_v7 = vpop.f32.mrf.mxu1  ;;  %v8698_v56 = vadd.f32 %v8697_v61, %v8174_v46  ;;  %v7702_v16 = vmul.f32 %v15162_v12, %v15162_v12  ;;  %v7703_v63 = vmul.f32 %v7118_v5, %v7118_v5 }
 0x2d3   : > { %v7121_v28 = vpop.f32.mrf.mxu0  ;;  %v11579_v43 = vpack.c.bf16 %v15204_v7, %v15188_v24  ;;  %v8831_v37 = vadd.f32 %v8830_v50, %v8768_v22  ;;  %v7630_v34 = vadd.f32 %v15143_v3, %v7629_v15  ;;  %v7763_v54 = vadd.f32 %v7762_v45, %v7700_v52 }
 0x2d4   : > { %11883 = vst [vmem:[%s13814_s22 + $0x658] sm:$0xff] %v11419_v1   ;;  %v11414_v62 = vpack.c.bf16 %v7121_v28, %v7118_v5  ;;  %v8190_v33 = vpop.f32.mrf.mxu1  ;;  %v8699_v23 = vadd.f32 %v15153_v47, %v8698_v56  ;;  %v8771_v3 = vmul.f32 %v15170_v21, %v15170_v21  ;;  %v15230_v47 = vadd.f32 %v6612_v31, %v15096_v0 }
 0x2d5   : > { %v15213_v25 = vpop.f32.mrf.mxu0  ;;  %11915 = vst [vmem:[%s13814_s22 + $0x758] sm:$0xff] %v11579_v43   ;;  %v11574_v59 = vpack.c.bf16 %v8190_v33, %v8187_v19  ;;  %v7764_v44 = vadd.f32 %v7763_v54, %v7701_v40  ;;  %v8832_v2 = vadd.f32 %v8831_v37, %v8769_v18  ;;  %v7631_v6 = vadd.f32 %v15162_v12, %v7630_v34 }
 0x2d6   : > { %11882 = vst [vmem:[%s13814_s22 + $0x650] sm:$0xff] %v11414_v62   ;;  %v15222_v48 = vpop.f32.mrf.mxu1  ;;  %v8700_v20 = vadd.f32 %v15170_v21, %v8699_v23  ;;  %v15233_v46 = vadd.f32 %v6746_v11, %v15111_v49  ;;  %v7704_v29 = vmul.f32 %v7121_v28, %v7121_v28  ;;  %v8772_v41 = vmul.f32 %v8187_v19, %v8187_v19 }
 0x2d7   : > { %v7134_v36 = vpop.f32.mrf.mxu0  ;;  %11914 = vst [vmem:[%s13814_s22 + $0x750] sm:$0xff] %v11574_v59   ;;  %v8833_v9 = vadd.f32 %v8832_v2, %v8770_v32  ;;  %v7632_v53 = vadd.f32 %v7631_v6, %v7118_v5  ;;  %v7765_v14 = vadd.f32 %v7764_v44, %v7702_v16  ;;  %v8773_v60 = vmul.f32 %v8190_v33, %v8190_v33 }
 0x2d8   : > { %v8203_v57 = vpop.f32.mrf.mxu1  ;;  %v8701_v12 = vadd.f32 %v8700_v20, %v8187_v19  ;;  %v7705_v17 = vmul.f32 %v15180_v10, %v15180_v10  ;;  %v8774_v58 = vmul.f32 %v15188_v24, %v15188_v24  ;;  %v7706_v61 = vmul.f32 %v15198_v13, %v15198_v13 }
 0x2d9   : > { %v15235_v30 = vpop.f32.mrf.mxu0  ;;  %v7766_v0 = vadd.f32 %v7765_v14, %v7703_v63  ;;  %v8834_v4 = vadd.f32 %v8833_v9, %v8771_v3  ;;  %v7633_v49 = vadd.f32 %v7632_v53, %v7121_v28  ;;  %v8775_v50 = vmul.f32 %v15204_v7, %v15204_v7 }
 0x2da   : > { %v11429_v21 = vpack.c.bf16 %v15235_v30, %v15213_v25  ;;  %v15239_v55 = vpop.f32.mrf.mxu1  ;;  %v8702_v5 = vadd.f32 %v8701_v12, %v8190_v33  ;;  %v7707_v15 = vmul.f32 %v7134_v36, %v7134_v36  ;;  %v8776_v40 = vmul.f32 %v8203_v57, %v8203_v57 }
 0x2db   : > { %v11589_v42 = vpack.c.bf16 %v15239_v55, %v15222_v48  ;;  %v7137_v35 = vpop.f32.mrf.mxu0  ;;  %v8835_v51 = vadd.f32 %v8834_v4, %v8772_v41  ;;  %v7634_v39 = vadd.f32 %v15180_v10, %v7633_v49  ;;  %v7767_v19 = vadd.f32 %v7766_v0, %v7704_v29 }
 0x2dc   : > { %11885 = vst [vmem:[%s13814_s22 + $0x668] sm:$0xff] %v11429_v21   ;;  %v11424_v8 = vpack.c.bf16 %v7137_v35, %v7134_v36  ;;  %v8206_v26 = vpop.f32.mrf.mxu1  ;;  %v8703_v52 = vadd.f32 %v15188_v24, %v8702_v5  ;;  %v7708_v43 = vmul.f32 %v7137_v35, %v7137_v35  ;;  %v7709_v59 = vmul.f32 %v15213_v25, %v15213_v25 }
 0x2dd   : > { %11917 = vst [vmem:[%s13814_s22 + $0x768] sm:$0xff] %v11589_v42   ;;  %v11584_v38 = vpack.c.bf16 %v8206_v26, %v8203_v57  ;;  %v15248_v27 = vpop.f32.mrf.mxu0  ;;  %v7768_v22 = vadd.f32 %v7767_v19, %v7705_v17  ;;  %v8836_v1 = vadd.f32 %v8835_v51, %v8773_v60  ;;  %v7635_v10 = vadd.f32 %v15198_v13, %v7634_v39 }
 0x2de   : > { %11884 = vst [vmem:[%s13814_s22 + $0x660] sm:$0xff] %v11424_v8   ;;  %v15254_v31 = vpop.f32.mrf.mxu1  ;;  %v8704_v18 = vadd.f32 %v15204_v7, %v8703_v52  ;;  %v8777_v37 = vmul.f32 %v8206_v26, %v8206_v26  ;;  %v8778_v9 = vmul.f32 %v15222_v48, %v15222_v48  ;;  %v7710_v29 = vmul.f32 %v15235_v30, %v15235_v30 }
 0x2df   : > { %11916 = vst [vmem:[%s13814_s22 + $0x760] sm:$0xff] %v11584_v38   ;;  %v7150_v45 = vpop.f32.mrf.mxu0  ;;  %v8837_v24 = vadd.f32 %v8836_v1, %v8774_v58  ;;  %v7636_v11 = vadd.f32 %v7635_v10, %v7134_v36  ;;  %v7769_v56 = vadd.f32 %v7768_v22, %v7706_v61  ;;  %v8779_v21 = vmul.f32 %v15239_v55, %v15239_v55 }
 0x2e0   : > { %v8219_v28 = vpop.f32.mrf.mxu1  ;;  %v8705_v33 = vadd.f32 %v8704_v18, %v8203_v57  ;;  %v7711_v0 = vmul.f32 %v7150_v45, %v7150_v45  ;;  %v7713_v61 = vmul.f32 %v15248_v27, %v15248_v27 }
 0x2e1   : > { %v15263_v62 = vpop.f32.mrf.mxu0  ;;  %v7770_v54 = vadd.f32 %v7769_v56, %v7707_v15  ;;  %v8838_v32 = vadd.f32 %v8837_v24, %v8775_v50  ;;  %v7637_v7 = vadd.f32 %v7636_v11, %v7137_v35  ;;  %v8782_v24 = vmul.f32 %v15254_v31, %v15254_v31 }
 0x2e2   : > { %v11439_v13 = vpack.c.bf16 %v15263_v62, %v15248_v27  ;;  %v15267_v34 = vpop.f32.mrf.mxu1  ;;  %v8706_v3 = vadd.f32 %v8705_v33, %v8206_v26  ;;  %v8780_v26 = vmul.f32 %v8219_v28, %v8219_v28 }
 0x2e3   : > { %v11599_v16 = vpack.c.bf16 %v15267_v34, %v15254_v31  ;;  %v7153_v23 = vpop.f32.mrf.mxu0  ;;  %v8839_v6 = vadd.f32 %v8838_v32, %v8776_v40  ;;  %v7638_v36 = vadd.f32 %v15213_v25, %v7637_v7  ;;  %v7771_v63 = vadd.f32 %v7770_v54, %v7708_v43 }
 0x2e4   : > { %11887 = vst [vmem:[%s13814_s22 + $0x678] sm:$0xff] %v11439_v13   ;;  %v11434_v44 = vpack.c.bf16 %v7153_v23, %v7150_v45  ;;  %v8222_v2 = vpop.f32.mrf.mxu1  ;;  %v8707_v53 = vadd.f32 %v15222_v48, %v8706_v3  ;;  %v7712_v17 = vmul.f32 %v7153_v23, %v7153_v23  ;;  %v7714_v43 = vmul.f32 %v15263_v62, %v15263_v62 }
 0x2e5   : > { %11919 = vst [vmem:[%s13814_s22 + $0x778] sm:$0xff] %v11599_v16   ;;  %v11594_v20 = vpack.c.bf16 %v8222_v2, %v8219_v28  ;;  %v15276_v57 = vpop.f32.mrf.mxu0  ;;  %v7772_v12 = vadd.f32 %v7771_v63, %v7709_v59  ;;  %v8840_v41 = vadd.f32 %v8839_v6, %v8777_v37  ;;  %v7639_v25 = vadd.f32 %v15235_v30, %v7638_v36 }
 0x2e6   : > { %11886 = vst [vmem:[%s13814_s22 + $0x670] sm:$0xff] %v11434_v44   ;;  %v15282_v14 = vpop.f32.mrf.mxu1  ;;  %v8708_v4 = vadd.f32 %v15239_v55, %v8707_v53  ;;  %v8781_v51 = vmul.f32 %v8222_v2, %v8222_v2  ;;  %v8783_v13 = vmul.f32 %v15267_v34, %v15267_v34 }
 0x2e7   : > { %11918 = vst [vmem:[%s13814_s22 + $0x770] sm:$0xff] %v11594_v20   ;;  %v7166_v60 = vpop.f32.mrf.mxu0  ;;  %v8841_v48 = vadd.f32 %v8840_v41, %v8778_v9  ;;  %v7640_v42 = vadd.f32 %v7639_v25, %v7150_v45  ;;  %v7773_v35 = vadd.f32 %v7772_v12, %v7710_v29  ;;  %v7717_v29 = vmul.f32 %v15276_v57, %v15276_v57 }
 0x2e8   : > { %v8235_v49 = vpop.f32.mrf.mxu1  ;;  %v8709_v8 = vadd.f32 %v8708_v4, %v8219_v28  ;;  %v7715_v54 = vmul.f32 %v7166_v60, %v7166_v60 }
 0x2e9   : > { %v15291_v5 = vpop.f32.mrf.mxu0  ;;  %v7774_v19 = vadd.f32 %v7773_v35, %v7711_v0  ;;  %v8842_v38 = vadd.f32 %v8841_v48, %v8779_v21  ;;  %v7641_v55 = vadd.f32 %v7640_v42, %v7153_v23  ;;  %v8786_v48 = vmul.f32 %v15282_v14, %v15282_v14 }
 0x2ea   : > { %v11449_v30 = vpack.c.bf16 %v15291_v5, %v15276_v57  ;;  %v15295_v39 = vpop.f32.mrf.mxu1  ;;  %v8710_v22 = vadd.f32 %v8709_v8, %v8222_v2  ;;  %v8784_v2 = vmul.f32 %v8235_v49, %v8235_v49 }
 0x2eb   : > { %v11609_v58 = vpack.c.bf16 %v15295_v39, %v15282_v14  ;;  %v7169_v52 = vpop.f32.mrf.mxu0  ;;  %v8843_v45 = vadd.f32 %v8842_v38, %v8780_v26  ;;  %v7642_v50 = vadd.f32 %v15248_v27, %v7641_v55  ;;  %v7775_v15 = vadd.f32 %v7774_v19, %v7712_v17 }
 0x2ec   : > { %11889 = vst [vmem:[%s13814_s22 + $0x688] sm:$0xff] %v11449_v30   ;;  %v11444_v1 = vpack.c.bf16 %v7169_v52, %v7166_v60  ;;  %v8238_v10 = vpop.f32.mrf.mxu1  ;;  %v8711_v11 = vadd.f32 %v15254_v31, %v8710_v22  ;;  %v7716_v59 = vmul.f32 %v7169_v52, %v7169_v52  ;;  %v7718_v17 = vmul.f32 %v15291_v5, %v15291_v5 }
 0x2ed   : > { %11921 = vst [vmem:[%s13814_s22 + $0x788] sm:$0xff] %v11609_v58   ;;  %v11604_v18 = vpack.c.bf16 %v8238_v10, %v8235_v49  ;;  %v15304_v28 = vpop.f32.mrf.mxu0  ;;  %v7776_v33 = vadd.f32 %v7775_v15, %v7713_v61  ;;  %v8844_v40 = vadd.f32 %v8843_v45, %v8781_v51  ;;  %v7643_v27 = vadd.f32 %v15263_v62, %v7642_v50 }
 0x2ee   : > { %11888 = vst [vmem:[%s13814_s22 + $0x680] sm:$0xff] %v11444_v1   ;;  %v15310_v56 = vpop.f32.mrf.mxu1  ;;  %v8712_v32 = vadd.f32 %v15267_v34, %v8711_v11  ;;  %v8785_v6 = vmul.f32 %v8238_v10, %v8238_v10  ;;  %v8787_v30 = vmul.f32 %v15295_v39, %v15295_v39 }
 0x2ef   : > { %11920 = vst [vmem:[%s13814_s22 + $0x780] sm:$0xff] %v11604_v18   ;;  %v7182_v37 = vpop.f32.mrf.mxu0  ;;  %v8845_v31 = vadd.f32 %v8844_v40, %v8782_v24  ;;  %v7644_v16 = vadd.f32 %v7643_v27, %v7166_v60  ;;  %v7777_v23 = vadd.f32 %v7776_v33, %v7714_v43  ;;  %v7721_v43 = vmul.f32 %v15304_v28, %v15304_v28 }
 0x2f0   : > { %v8251_v7 = vpop.f32.mrf.mxu1  ;;  %v8713_v44 = vadd.f32 %v8712_v32, %v8235_v49  ;;  %v7719_v19 = vmul.f32 %v7182_v37, %v7182_v37 }
 0x2f1   : > { %v15319_v3 = vpop.f32.mrf.mxu0  ;;  %v7778_v63 = vadd.f32 %v7777_v23, %v7715_v54  ;;  %v8846_v20 = vadd.f32 %v8845_v31, %v8783_v13  ;;  %v7645_v34 = vadd.f32 %v7644_v16, %v7169_v52  ;;  %v8790_v31 = vmul.f32 %v15310_v56, %v15310_v56 }
 0x2f2   : > { %v11459_v62 = vpack.c.bf16 %v15319_v3, %v15304_v28  ;;  %v15323_v36 = vpop.f32.mrf.mxu1  ;;  %v8714_v12 = vadd.f32 %v8713_v44, %v8238_v10  ;;  %v8788_v10 = vmul.f32 %v8251_v7, %v8251_v7 }
 0x2f3   : > { %v11619_v9 = vpack.c.bf16 %v15323_v36, %v15310_v56  ;;  %v7185_v53 = vpop.f32.mrf.mxu0  ;;  %v8847_v60 = vadd.f32 %v8846_v20, %v8784_v2  ;;  %v7646_v21 = vadd.f32 %v15276_v57, %v7645_v34  ;;  %v7779_v0 = vadd.f32 %v7778_v63, %v7716_v59 }
 0x2f4   : > { %11891 = vst [vmem:[%s13814_s22 + $0x698] sm:$0xff] %v11459_v62   ;;  %v11454_v41 = vpack.c.bf16 %v7185_v53, %v7182_v37  ;;  %v8254_v25 = vpop.f32.mrf.mxu1  ;;  %v8715_v42 = vadd.f32 %v15282_v14, %v8714_v12  ;;  %v7720_v61 = vmul.f32 %v7185_v53, %v7185_v53  ;;  %v7722_v59 = vmul.f32 %v15319_v3, %v15319_v3 }
 0x2f5   : > { %11923 = vst [vmem:[%s13814_s22 + $0x798] sm:$0xff] %v11619_v9   ;;  %v11614_v4 = vpack.c.bf16 %v8254_v25, %v8251_v7  ;;  %v15332_v49 = vpop.f32.mrf.mxu0  ;;  %v7780_v8 = vadd.f32 %v7779_v0, %v7717_v29  ;;  %v8848_v26 = vadd.f32 %v8847_v60, %v8785_v6  ;;  %v7647_v57 = vadd.f32 %v15291_v5, %v7646_v21 }
 0x2f6   : > { %11890 = vst [vmem:[%s13814_s22 + $0x690] sm:$0xff] %v11454_v41   ;;  %v15338_v35 = vpop.f32.mrf.mxu1  ;;  %v8716_v38 = vadd.f32 %v15295_v39, %v8715_v42  ;;  %v8789_v45 = vmul.f32 %v8254_v25, %v8254_v25  ;;  %v8791_v62 = vmul.f32 %v15323_v36, %v15323_v36 }
 0x2f7   : > { %11922 = vst [vmem:[%s13814_s22 + $0x790] sm:$0xff] %v11614_v4   ;;  %v7198_v51 = vpop.f32.mrf.mxu0  ;;  %v8849_v14 = vadd.f32 %v8848_v26, %v8786_v48  ;;  %v7648_v58 = vadd.f32 %v7647_v57, %v7182_v37  ;;  %v7781_v52 = vadd.f32 %v7780_v8, %v7718_v17  ;;  %v7725_v17 = vmul.f32 %v15332_v49, %v15332_v49 }
 0x2f8   : > { %v8267_v55 = vpop.f32.mrf.mxu1  ;;  %v8717_v1 = vadd.f32 %v8716_v38, %v8251_v7  ;;  %v7723_v63 = vmul.f32 %v7198_v51, %v7198_v51 }
 0x2f9   : > { %v15347_v22 = vpop.f32.mrf.mxu0  ;;  %v7782_v15 = vadd.f32 %v7781_v52, %v7719_v19  ;;  %v8850_v18 = vadd.f32 %v8849_v14, %v8787_v30  ;;  %v7649_v39 = vadd.f32 %v7648_v58, %v7185_v53  ;;  %v8794_v14 = vmul.f32 %v15338_v35, %v15338_v35 }
 0x2fa   : > { %v11469_v5 = vpack.c.bf16 %v15347_v22, %v15332_v49  ;;  %v15351_v50 = vpop.f32.mrf.mxu1  ;;  %v8718_v33 = vadd.f32 %v8717_v1, %v8254_v25  ;;  %v8792_v25 = vmul.f32 %v8267_v55, %v8267_v55 }
 0x2fb   : > { %v11629_v24 = vpack.c.bf16 %v15351_v50, %v15338_v35  ;;  %v7201_v11 = vpop.f32.mrf.mxu0  ;;  %v8851_v37 = vadd.f32 %v8850_v18, %v8788_v10  ;;  %v7650_v13 = vadd.f32 %v15304_v28, %v7649_v39  ;;  %v7783_v54 = vadd.f32 %v7782_v15, %v7720_v61 }
 0x2fc   : > { %11893 = vst [vmem:[%s13814_s22 + $0x6a8] sm:$0xff] %v11469_v5   ;;  %v11464_v40 = vpack.c.bf16 %v7201_v11, %v7198_v51  ;;  %v8270_v27 = vpop.f32.mrf.mxu1  ;;  %v8719_v16 = vadd.f32 %v15310_v56, %v8718_v33  ;;  %v7724_v29 = vmul.f32 %v7201_v11, %v7201_v11  ;;  %v7726_v61 = vmul.f32 %v15347_v22, %v15347_v22 }
 0x2fd   : > { %11925 = vst [vmem:[%s13814_s22 + $0x7a8] sm:$0xff] %v11629_v24   ;;  %v11624_v32 = vpack.c.bf16 %v8270_v27, %v8267_v55  ;;  %v15360_v7 = vpop.f32.mrf.mxu0  ;;  %v7784_v44 = vadd.f32 %v7783_v54, %v7721_v43  ;;  %v8852_v2 = vadd.f32 %v8851_v37, %v8789_v45  ;;  %v7651_v28 = vadd.f32 %v15319_v3, %v7650_v13 }
 0x2fe   : > { %11892 = vst [vmem:[%s13814_s22 + $0x6a0] sm:$0xff] %v11464_v40   ;;  %v15366_v23 = vpop.f32.mrf.mxu1  ;;  %v8720_v20 = vadd.f32 %v15323_v36, %v8719_v16  ;;  %v8793_v60 = vmul.f32 %v8270_v27, %v8270_v27  ;;  %v8795_v5 = vmul.f32 %v15351_v50, %v15351_v50 }
 0x2ff   : > { %11924 = vst [vmem:[%s13814_s22 + $0x7a0] sm:$0xff] %v11624_v32   ;;  %v7214_v6 = vpop.f32.mrf.mxu0  ;;  %v8853_v56 = vadd.f32 %v8852_v2, %v8790_v31  ;;  %v7652_v9 = vadd.f32 %v7651_v28, %v7198_v51  ;;  %v7785_v53 = vadd.f32 %v7784_v44, %v7722_v59  ;;  %v7729_v59 = vmul.f32 %v15360_v7, %v15360_v7 }
 0x300   : > { %v8283_v34 = vpop.f32.mrf.mxu1  ;;  %v8721_v41 = vadd.f32 %v8720_v20, %v8267_v55  ;;  %v7727_v15 = vmul.f32 %v7214_v6, %v7214_v6 }
 0x301   : > { %v15375_v12 = vpop.f32.mrf.mxu0  ;;  %v7786_v0 = vadd.f32 %v7785_v53, %v7723_v63  ;;  %v8854_v4 = vadd.f32 %v8853_v56, %v8791_v62  ;;  %v7653_v36 = vadd.f32 %v7652_v9, %v7201_v11  ;;  %v8798_v56 = vmul.f32 %v15366_v23, %v15366_v23 }
 0x302   : > { %v11479_v3 = vpack.c.bf16 %v15375_v12, %v15360_v7  ;;  %v15379_v21 = vpop.f32.mrf.mxu1  ;;  %v8722_v8 = vadd.f32 %v8721_v41, %v8270_v27  ;;  %v8796_v27 = vmul.f32 %v8283_v34, %v8283_v34 }
 0x303   : > { %v11639_v48 = vpack.c.bf16 %v15379_v21, %v15366_v23  ;;  %v7217_v42 = vpop.f32.mrf.mxu0  ;;  %v8855_v51 = vadd.f32 %v8854_v4, %v8792_v25  ;;  %v7654_v30 = vadd.f32 %v15332_v49, %v7653_v36  ;;  %v7787_v19 = vadd.f32 %v7786_v0, %v7724_v29 }
 0x304   : > { %11895 = vst [vmem:[%s13814_s22 + $0x6b8] sm:$0xff] %v11479_v3   ;;  %v11474_v26 = vpack.c.bf16 %v7217_v42, %v7214_v6  ;;  %v8286_v57 = vpop.f32.mrf.mxu1  ;;  %v8723_v58 = vadd.f32 %v15338_v35, %v8722_v8  ;;  %v7728_v43 = vmul.f32 %v7217_v42, %v7217_v42  ;;  %v7730_v29 = vmul.f32 %v15375_v12, %v15375_v12 }
 0x305   : > { %11927 = vst [vmem:[%s13814_s22 + $0x7b8] sm:$0xff] %v11639_v48   ;;  %v11634_v38 = vpack.c.bf16 %v8286_v57, %v8283_v34  ;;  %v15388_v55 = vpop.f32.mrf.mxu0  ;;  %v7788_v1 = vadd.f32 %v7787_v19, %v7725_v17  ;;  %v8856_v10 = vadd.f32 %v8855_v51, %v8793_v60  ;;  %v7655_v49 = vadd.f32 %v15347_v22, %v7654_v30 }
 0x306   : > { %11894 = vst [vmem:[%s13814_s22 + $0x6b0] sm:$0xff] %v11474_v26   ;;  %v15394_v52 = vpop.f32.mrf.mxu1  ;;  %v8724_v18 = vadd.f32 %v15351_v50, %v8723_v58  ;;  %v8797_v37 = vmul.f32 %v8286_v57, %v8286_v57  ;;  %v8799_v3 = vmul.f32 %v15379_v21, %v15379_v21 }
 0x307   : > { %11926 = vst [vmem:[%s13814_s22 + $0x7b0] sm:$0xff] %v11634_v38   ;;  %v7230_v45 = vpop.f32.mrf.mxu0  ;;  %v8857_v35 = vadd.f32 %v8856_v10, %v8794_v14  ;;  %v7656_v24 = vadd.f32 %v7655_v49, %v7214_v6  ;;  %v7789_v11 = vadd.f32 %v7788_v1, %v7726_v61  ;;  %v7733_v61 = vmul.f32 %v15388_v55, %v15388_v55 }
 0x308   : > { %v8299_v39 = vpop.f32.mrf.mxu1  ;;  %v8725_v40 = vadd.f32 %v8724_v18, %v8283_v34  ;;  %v7731_v0 = vmul.f32 %v7230_v45, %v7230_v45 }
 0x309   : > { %v15403_v33 = vpop.f32.mrf.mxu0  ;;  %v7790_v54 = vadd.f32 %v7789_v11, %v7727_v15  ;;  %v8858_v32 = vadd.f32 %v8857_v35, %v8795_v5  ;;  %v7657_v50 = vadd.f32 %v7656_v24, %v7217_v42  ;;  %v8802_v35 = vmul.f32 %v15394_v52, %v15394_v52 }
 0x30a   : > { %v11489_v22 = vpack.c.bf16 %v15403_v33, %v15388_v55  ;;  %v15407_v13 = vpop.f32.mrf.mxu1  ;;  %v8726_v44 = vadd.f32 %v8725_v40, %v8286_v57  ;;  %v8800_v57 = vmul.f32 %v8299_v39, %v8299_v39 }
 0x30b   : > { %v11649_v31 = vpack.c.bf16 %v15407_v13, %v15394_v52  ;;  %v7233_v16 = vpop.f32.mrf.mxu0  ;;  %v8859_v6 = vadd.f32 %v8858_v32, %v8796_v27  ;;  %v7658_v62 = vadd.f32 %v15360_v7, %v7657_v50  ;;  %v7791_v63 = vadd.f32 %v7790_v54, %v7728_v43 }
 0x30c   : > { %11897 = vst [vmem:[%s13814_s22 + $0x6c8] sm:$0xff] %v11489_v22   ;;  %v11484_v2 = vpack.c.bf16 %v7233_v16, %v7230_v45  ;;  %v8302_v28 = vpop.f32.mrf.mxu1  ;;  %v8727_v9 = vadd.f32 %v15366_v23, %v8726_v44  ;;  %v7732_v17 = vmul.f32 %v7233_v16, %v7233_v16  ;;  %v7734_v43 = vmul.f32 %v15403_v33, %v15403_v33 }
 0x30d   : > { %11929 = vst [vmem:[%s13814_s22 + $0x7c8] sm:$0xff] %v11649_v31   ;;  %v11644_v20 = vpack.c.bf16 %v8302_v28, %v8299_v39  ;;  %v15416_v34 = vpop.f32.mrf.mxu0  ;;  %v7792_v41 = vadd.f32 %v7791_v63, %v7729_v59  ;;  %v8860_v25 = vadd.f32 %v8859_v6, %v8797_v37  ;;  %v7659_v7 = vadd.f32 %v15375_v12, %v7658_v62 }
 0x30e   : > { %11896 = vst [vmem:[%s13814_s22 + $0x6c0] sm:$0xff] %v11484_v2   ;;  %v15422_v53 = vpop.f32.mrf.mxu1  ;;  %v8728_v4 = vadd.f32 %v15379_v21, %v8727_v9  ;;  %v8801_v51 = vmul.f32 %v8302_v28, %v8302_v28  ;;  %v8803_v22 = vmul.f32 %v15407_v13, %v15407_v13 }
 0x30f   : > { %11928 = vst [vmem:[%s13814_s22 + $0x7c0] sm:$0xff] %v11644_v20   ;;  %v7246_v60 = vpop.f32.mrf.mxu0  ;;  %v8861_v23 = vadd.f32 %v8860_v25, %v8798_v56  ;;  %v7660_v48 = vadd.f32 %v7659_v7, %v7230_v45  ;;  %v7793_v42 = vadd.f32 %v7792_v41, %v7730_v29  ;;  %v7737_v29 = vmul.f32 %v15416_v34, %v15416_v34 }
 0x310   : > { %v8315_v36 = vpop.f32.mrf.mxu1  ;;  %v8729_v26 = vadd.f32 %v8728_v4, %v8299_v39  ;;  %v7735_v54 = vmul.f32 %v7246_v60, %v7246_v60 }
 0x311   : > { %v15431_v8 = vpop.f32.mrf.mxu0  ;;  %v7794_v19 = vadd.f32 %v7793_v42, %v7731_v0  ;;  %v8862_v38 = vadd.f32 %v8861_v23, %v8799_v3  ;;  %v7661_v21 = vadd.f32 %v7660_v48, %v7233_v16  ;;  %v8806_v23 = vmul.f32 %v15422_v53, %v15422_v53 }
 0x312   : > { %v11499_v12 = vpack.c.bf16 %v15431_v8, %v15416_v34  ;;  %v15435_v30 = vpop.f32.mrf.mxu1  ;;  %v8730_v1 = vadd.f32 %v8729_v26, %v8302_v28  ;;  %v8804_v28 = vmul.f32 %v8315_v36, %v8315_v36 }
 0x313   : > { %v11659_v14 = vpack.c.bf16 %v15435_v30, %v15422_v53  ;;  %v7249_v58 = vpop.f32.mrf.mxu0  ;;  %v8863_v45 = vadd.f32 %v8862_v38, %v8800_v57  ;;  %v7662_v5 = vadd.f32 %v15388_v55, %v7661_v21  ;;  %v7795_v15 = vadd.f32 %v7794_v19, %v7732_v17 }
 0x314   : > { %11899 = vst [vmem:[%s13814_s22 + $0x6d8] sm:$0xff] %v11499_v12   ;;  %v11494_v10 = vpack.c.bf16 %v7249_v58, %v7246_v60  ;;  %v8318_v49 = vpop.f32.mrf.mxu1  ;;  %v8731_v24 = vadd.f32 %v15394_v52, %v8730_v1  ;;  %v7736_v59 = vmul.f32 %v7249_v58, %v7249_v58  ;;  %v7738_v17 = vmul.f32 %v15431_v8, %v15431_v8 }
 0x315   : > { %11931 = vst [vmem:[%s13814_s22 + $0x7d8] sm:$0xff] %v11659_v14   ;;  %v11654_v18 = vpack.c.bf16 %v8318_v49, %v8315_v36  ;;  %v15444_v39 = vpop.f32.mrf.mxu0  ;;  %v7796_v40 = vadd.f32 %v7795_v15, %v7733_v61  ;;  %v8864_v27 = vadd.f32 %v8863_v45, %v8801_v51  ;;  %v7663_v55 = vadd.f32 %v15403_v33, %v7662_v5 }
 0x316   : > { %11898 = vst [vmem:[%s13814_s22 + $0x6d0] sm:$0xff] %v11494_v10   ;;  %v15450_v11 = vpop.f32.mrf.mxu1  ;;  %v8732_v32 = vadd.f32 %v15407_v13, %v8731_v24  ;;  %v8805_v6 = vmul.f32 %v8318_v49, %v8318_v49  ;;  %v8807_v12 = vmul.f32 %v15435_v30, %v15435_v30 }
 0x317   : > { %11930 = vst [vmem:[%s13814_s22 + $0x7d0] sm:$0xff] %v11654_v18   ;;  %v7262_v37 = vpop.f32.mrf.mxu0  ;;  %v8865_v52 = vadd.f32 %v8864_v27, %v8802_v35  ;;  %v7664_v31 = vadd.f32 %v7663_v55, %v7246_v60  ;;  %v7797_v16 = vadd.f32 %v7796_v40, %v7734_v43  ;;  %v7741_v43 = vmul.f32 %v15444_v39, %v15444_v39 }
 0x318   : > { %v8331_v50 = vpop.f32.mrf.mxu1  ;;  %v8733_v2 = vadd.f32 %v8732_v32, %v8315_v36  ;;  %v7739_v19 = vmul.f32 %v7262_v37, %v7262_v37 }
 0x319   : > { %v15459_v44 = vpop.f32.mrf.mxu0  ;;  %v7798_v63 = vadd.f32 %v7797_v16, %v7735_v54  ;;  %v8866_v20 = vadd.f32 %v8865_v52, %v8803_v22  ;;  %v7665_v13 = vadd.f32 %v7664_v31, %v7249_v58  ;;  %v8808_v10 = vmul.f32 %v8331_v50, %v8331_v50 }
 0x31a   : > { %v11509_v33 = vpack.c.bf16 %v15459_v44, %v15444_v39  ;;  %v15463_v62 = vpop.f32.mrf.mxu1  ;;  %v8734_v41 = vadd.f32 %v8733_v2, %v8318_v49  ;;  %v7742_v31 = vmul.f32 %v15459_v44, %v15459_v44 }
 0x31b   : > { %v11669_v56 = vpack.c.bf16 %v15463_v62, %v15450_v11  ;;  %v7265_v9 = vpop.f32.mrf.mxu0  ;;  %v8867_v60 = vadd.f32 %v8866_v20, %v8804_v28  ;;  %v7666_v3 = vadd.f32 %v15416_v34, %v7665_v13  ;;  %v7799_v0 = vadd.f32 %v7798_v63, %v7736_v59 }
 0x31c   : > { %11901 = vst [vmem:[%s13814_s22 + $0x6e8] sm:$0xff] %v11509_v33   ;;  %v11504_v25 = vpack.c.bf16 %v7265_v9, %v7262_v37  ;;  %v8334_v7 = vpop.f32.mrf.mxu1  ;;  %v8735_v48 = vadd.f32 %v15422_v53, %v8734_v41  ;;  %v7740_v61 = vmul.f32 %v7265_v9, %v7265_v9  ;;  %v8811_v2 = vmul.f32 %v15463_v62, %v15463_v62 }
 0x31d   : > { %11933 = vst [vmem:[%s13814_s22 + $0x7e8] sm:$0xff] %v11669_v56   ;;  %v11664_v4 = vpack.c.bf16 %v8334_v7, %v8331_v50  ;;  %v15472_v36 = vpop.f32.mrf.mxu0  ;;  %v7800_v26 = vadd.f32 %v7799_v0, %v7737_v29  ;;  %v8868_v34 = vadd.f32 %v8867_v60, %v8805_v6  ;;  %v7667_v57 = vadd.f32 %v15431_v8, %v7666_v3 }
 0x31e   : > { %11900 = vst [vmem:[%s13814_s22 + $0x6e0] sm:$0xff] %v11504_v25   ;;  %v15478_v42 = vpop.f32.mrf.mxu1  ;;  %v8736_v53 = vadd.f32 %v15435_v30, %v8735_v48  ;;  %v8809_v49 = vmul.f32 %v8334_v7, %v8334_v7 }
 0x31f   : > { %11932 = vst [vmem:[%s13814_s22 + $0x7e0] sm:$0xff] %v11664_v4   ;;  %v15484_v51 = vpop.f32.mrf.mxu0  ;;  %v8869_v21 = vadd.f32 %v8868_v34, %v8806_v23  ;;  %v7668_v14 = vadd.f32 %v7667_v57, %v7262_v37  ;;  %v7801_v58 = vadd.f32 %v7800_v26, %v7738_v17 }
 0x320   : > { %v15489_v38 = vpop.f32.mrf.mxu1  ;;  %v8737_v8 = vadd.f32 %v8736_v53, %v8331_v50  ;;  %v8810_v50 = vmul.f32 %v15450_v11, %v15450_v11  ;;  %v7743_v28 = vmul.f32 %v15484_v51, %v15484_v51 }
 0x321   : > { %v15491_v1 = vpop.f32.mrf.mxu0  ;;  %v7802_v30 = vadd.f32 %v7801_v58, %v7739_v19  ;;  %v8870_v15 = vadd.f32 %v8869_v21, %v8807_v12  ;;  %v7669_v18 = vadd.f32 %v7668_v14, %v7265_v9 }
 0x322   : > { %v11519_v45 = vpack.c.bf16 %v15491_v1, %v15472_v36  ;;  %v15497_v5 = vpop.f32.mrf.mxu1  ;;  %v8738_v40 = vadd.f32 %v8737_v8, %v8334_v7 }
 0x323   : > { %v11679_v35 = vpack.c.bf16 %v15497_v5, %v15478_v42  ;;  %v7281_v24 = vpop.f32.mrf.mxu0  ;;  %v8871_v37 = vadd.f32 %v8870_v15, %v8808_v10  ;;  %v7670_v22 = vadd.f32 %v15444_v39, %v7669_v18  ;;  %v7803_v54 = vadd.f32 %v7802_v30, %v7740_v61 }
 0x324   : > { %11903 = vst [vmem:[%s13814_s22 + $0x6f8] sm:$0xff] %v11519_v45   ;;  %v11514_v27 = vpack.c.bf16 %v7281_v24, %v15484_v51  ;;  %v8350_v55 = vpop.f32.mrf.mxu1  ;;  %v8739_v52 = vadd.f32 %v15450_v11, %v8738_v40 }
 0x325   : > { %11935 = vst [vmem:[%s13814_s22 + $0x7f8] sm:$0xff] %v11679_v35   ;;  %v11674_v32 = vpack.c.bf16 %v8350_v55, %v15489_v38  ;;  %v7804_v16 = vadd.f32 %v7803_v54, %v7741_v43  ;;  %v8872_v59 = vadd.f32 %v8871_v37, %v8809_v49  ;;  %v7671_v39 = vadd.f32 %v15459_v44, %v7670_v22 }
 0x326   : > { %11902 = vst [vmem:[%s13814_s22 + $0x6f0] sm:$0xff] %v11514_v27   ;;  %v8740_v6 = vadd.f32 %v15463_v62, %v8739_v52 }
 0x327   : > { %11934 = vst [vmem:[%s13814_s22 + $0x7f0] sm:$0xff] %v11674_v32  }
 0x328   : > { %13330 = shalt.err (!%p13327_p2)
}
 0x329   : > { %s13331_s14 = scalar_lea.hbm %s15508_s7, 32768  ;;  %s13335_s30 = scalar_lea.hbm %s15662_s2, 65536 }
 0x32a   : > { %p13332_p6 = scmp.ne.s32.totalorder %s15508_s7, %s13331_s14  ;;  %p13336_p11 = scmp.lt.s32.totalorder %s15508_s7, %s15662_s2 }
 0x32b   : > { %p13337_p1 = scmp.lt.s32.totalorder %s13335_s30, %s13331_s14 }
 0x32c   : > { %p13333_p9 = pnand %p13332_p6, %p13581_p0 }
 0x32d   : > { %p13338_p8 = por %p13337_p1, %p13336_p11 }
 0x32e   : > { %p13334_p13 = pneg %p13333_p9 }
 0x330   : > { %p13339_p4 = pnand %p13338_p8, %p13334_p13 }
 0x332   : > { %13342 = shalt.err (!%p13339_p4)
}
 0x333   : > { %s13464_s5 = smov 64   ;;  %s13465_s6 = smov 4   ;;  %v8873_v11 = vadd.f32 %v8872_v59, %v8810_v50  ;;  %v7672_v44 = vadd.f32 %v7671_v39, %v15484_v51  ;;  %v7805_v33 = vadd.f32 %v7804_v16, %v7742_v31  ;;  %v7744_v62 = vmul.f32 %v7281_v24, %v7281_v24 }
 0x334   : > { %12902 = dma.vmem_to_hbm [thread:$0]  (%p13581_p0), %s15510_s25, 32768, %s15508_s7, %s8889_s8, %s13464_s5, %s13464_s5, %s13465_s6   ;;  %v8741_v63 = vadd.f32 %v8740_v6, %v15489_v38  ;;  %v8812_v20 = vmul.f32 %v15489_v38, %v15489_v38  ;;  %v8813_v29 = vmul.f32 %v8350_v55, %v8350_v55  ;;  %v7745_v25 = vmul.f32 %v15472_v36, %v15472_v36 }
 0x335   : > { %v7806_v13 = vadd.f32 %v7805_v33, %v7743_v28  ;;  %v8874_v56 = vadd.f32 %v8873_v11, %v8811_v2  ;;  %v7673_v9 = vadd.f32 %v7672_v44, %v7281_v24  ;;  %v8814_v0 = vmul.f32 %v15478_v42, %v15478_v42  ;;  %s8893_s25 = sand.u32 1, %s13524_s21   ;;  %s9883_s7 = sshll.u32 %s13449_s18, 4 }
 0x336   : > { %v8742_v41 = vadd.f32 %v8741_v63, %v8350_v55  ;;  %v7746_v23 = vmul.f32 %v15491_v1, %v15491_v1  ;;  %v8815_v57 = vmul.f32 %v15497_v5, %v15497_v5  ;;  %s262_s8 = scalar_lea.vmem [#allocation8], %s13612_s13  ;;  %s268_s9 = scalar_lea.vmem [#allocation10], %s13612_s13 }
 0x337   : > { %v8875_v7 = vadd.f32 %v8874_v56, %v8812_v20  ;;  %v7674_v60 = vadd.f32 %v15472_v36, %v7673_v9  ;;  %v7807_v3 = vadd.f32 %v7806_v13, %v7744_v62  ;;  %s8929_s12 = sshll.u32 %s262_s8, 4  ;;  %s8943_s27 = sshll.u32 %s268_s9, 4  ;;  %s15579_s12 = int_to_ptr.vmem [resolvable:$true] %s8929_s12  ;;  %s15587_s27 = int_to_ptr.vmem [resolvable:$true] %s8943_s27 }
 0x338   : > { %v8743_v4 = vadd.f32 %v15478_v42, %v8742_v41  ;;  %s15577_s1 = scalar_lea.hbm %s15663_s3, %s9883_s7  ;;  %s15585_s28 = scalar_lea.hbm %s15664_s4, %s9883_s7 }
 0x339   : > { %v7675_v48 = vadd.f32 %v15491_v1, %v7674_v60  ;;  %v7808_v17 = vadd.f32 %v7807_v3, %v7745_v25  ;;  %v8876_v26 = vadd.f32 %v8875_v7, %v8813_v29  ;;  %s15589_s30 = scalar_lea.sflag [#allocation9], %s8893_s25  ;;  %s13343_s22 = scalar_lea.vmem %s15579_s12, 16 }
 0x33a   : > { %v8744_v34 = vadd.f32 %v15497_v5, %v8743_v4  ;;  %p13344_p10 = scmp.ne.s32.totalorder %s15579_s12, %s13343_s22  ;;  %s13466_s23 = smov [#allocation8]  }
 0x33b   : > { %v7676_v51 = vrot.slane %v7675_v48, 4  ;;  %v7809_v36 = vadd.f32 %v7808_v17, %v7746_v23  ;;  %v8877_v12 = vadd.f32 %v8876_v26, %v8814_v0  ;;  %s13347_s5 = sshll.u32 %s13466_s23, 4  ;;  %s13348_s5 = int_to_ptr.vmem [resolvable:$false] %s13347_s5 }
 0x33c   : > { %v8745_v19 = vrot.slane %v8744_v34, 4  ;;  %p13345_p12 = pnand %p13344_p10, %p13581_p0  ;;  %s13349_s6 = scalar_lea.vmem %s13348_s5, 32 }
 0x33d   : > { %v7677_v53 = vadd.f32 %v7676_v51, %v7675_v48  ;;  %v7810_v38 = vrot.slane %v7809_v36, 4  ;;  %v8878_v21 = vadd.f32 %v8877_v12, %v8815_v57  ;;  %p13350_p5 = scmp.lt.s32.totalorder %s15579_s12, %s13348_s5  ;;  %p13351_p7 = scmp.lt.s32.totalorder %s13349_s6, %s13343_s22 }
 0x33e   : > { %v8746_v42 = vadd.f32 %v8745_v19, %v8744_v34  ;;  %p13346_p3 = pneg %p13345_p12 }
 0x33f   : > { %v7678_v14 = vrot.slane %v7677_v53, 2  ;;  %v7811_v58 = vadd.f32 %v7810_v38, %v7809_v36  ;;  %v8879_v61 = vrot.slane %v8878_v21, 4  ;;  %p13352_p2 = por %p13351_p7, %p13350_p5 }
 0x340   : > { %v8747_v1 = vrot.slane %v8746_v42, 2 }
 0x341   : > { %v7679_v8 = vadd.f32 %v7678_v14, %v7677_v53  ;;  %v7812_v10 = vrot.slane %v7811_v58, 2  ;;  %v8880_v49 = vadd.f32 %v8879_v61, %v8878_v21  ;;  %p13353_p6 = pnand %p13352_p2, %p13346_p3 }
 0x342   : > { %v8748_v45 = vadd.f32 %v8747_v1, %v8746_v42 }
 0x343   : > { %v7680_v5 = vrot.slane %v7679_v8, 1  ;;  %v7813_v30 = vadd.f32 %v7812_v10, %v7811_v58  ;;  %v8881_v15 = vrot.slane %v8880_v49, 2 }
 0x344   : > { %v8749_v18 = vrot.slane %v8748_v45, 1 }
 0x345   : > { %v7681_v35 = vadd.f32 %v7680_v5, %v7679_v8  ;;  %v7814_v24 = vrot.slane %v7813_v30, 1  ;;  %v8882_v43 = vadd.f32 %v8881_v15, %v8880_v49 }
 0x346   : > { %v8750_v27 = vadd.f32 %v8749_v18, %v8748_v45 }
 0x347   : > { %v7815_v40 = vadd.f32 %v7814_v24, %v7813_v30  ;;  %v8883_v55 = vrot.slane %v8882_v43, 1  ;;  %v7682_v37 = vadd.f32 %v7681_v35, %v15230_v47 }
 0x349   : > { %v8884_v22 = vadd.f32 %v8883_v55, %v8882_v43  ;;  %v8751_v54 = vadd.f32 %v8750_v27, %v7682_v37  ;;  %v7816_v32 = vadd.f32 %v7815_v40, %v15233_v46 }
 0x34b   : > { %8886 = vst [vmem:[%s262_s8] sm:$0x1] %v8751_v54  ;;  %v8885_v47 = vadd.f32 %v8884_v22, %v7816_v32 }
 0x34c   : > { %13356 = shalt.err (!%p13353_p6)
}
 0x34d   : > { %s13357_s25 = scalar_lea.hbm %s15577_s1, 16  ;;  %s13361_s10 = scalar_lea.hbm %s15663_s3, 32 }
 0x34e   : > { %p13358_p9 = scmp.ne.s32.totalorder %s15577_s1, %s13357_s25  ;;  %p13362_p1 = scmp.lt.s32.totalorder %s15577_s1, %s15663_s3 }
 0x34f   : > { %p13363_p8 = scmp.lt.s32.totalorder %s13361_s10, %s13357_s25 }
 0x350   : > { %p13359_p13 = pnand %p13358_p9, %p13581_p0 }
 0x351   : > { %p13364_p4 = por %p13363_p8, %p13362_p1 }
 0x352   : > { %p13360_p11 = pneg %p13359_p13 }
 0x354   : > { %p13365_p10 = pnand %p13364_p4, %p13360_p11 }
 0x356   : > { %13368 = shalt.err (!%p13365_p10)
}
 0x357   : > { %12903 = dma.vmem_to_hbm [thread:$0]  (%p13581_p0), %s15579_s12, 16, %s15577_s1, %s15589_s30   ;;  %8887 = vst [vmem:[%s268_s9] sm:$0x1] %v8885_v47 }
 0x358   : > { %s13369_s21 = scalar_lea.vmem %s15587_s27, 16  ;;  %s13467_s22 = smov [#allocation10]  }
 0x359   : > { %p13370_p12 = scmp.ne.s32.totalorder %s15587_s27, %s13369_s21  ;;  %s13373_s23 = sshll.u32 %s13467_s22, 4  ;;  %s13374_s23 = int_to_ptr.vmem [resolvable:$false] %s13373_s23 }
 0x35a   : > { %s13375_s5 = scalar_lea.vmem %s13374_s23, 32  ;;  %p13376_p7 = scmp.lt.s32.totalorder %s15587_s27, %s13374_s23 }
 0x35b   : > { %p13371_p3 = pnand %p13370_p12, %p13581_p0  ;;  %p13377_p2 = scmp.lt.s32.totalorder %s13375_s5, %s13369_s21 }
 0x35d   : > { %p13372_p5 = pneg %p13371_p3  ;;  %p13378_p6 = por %p13377_p2, %p13376_p7 }
 0x35f   : > { %p13379_p9 = pnand %p13378_p6, %p13372_p5 }
 0x361   : > { %13382 = shalt.err (!%p13379_p9)
}
 0x362   : > { %s13383_s13 = scalar_lea.hbm %s15585_s28, 16  ;;  %s13387_s1 = scalar_lea.hbm %s15664_s4, 32 }
 0x363   : > { %p13384_p13 = scmp.ne.s32.totalorder %s15585_s28, %s13383_s13  ;;  %p13388_p8 = scmp.lt.s32.totalorder %s15585_s28, %s15664_s4 }
 0x364   : > { %p13389_p4 = scmp.lt.s32.totalorder %s13387_s1, %s13383_s13 }
 0x365   : > { %p13385_p11 = pnand %p13384_p13, %p13581_p0 }
 0x366   : > { %p13390_p10 = por %p13389_p4, %p13388_p8 }
 0x367   : > { %p13386_p1 = pneg %p13385_p11 }
 0x369   : > { %p13391_p12 = pnand %p13390_p10, %p13386_p1 }
 0x36b   : > { %13394 = shalt.err (!%p13391_p12)
}
 0x36c   : > { %12904 = dma.vmem_to_hbm [thread:$0]  (%p13581_p0), %s15587_s27, 16, %s15585_s28, %s15589_s30  }
 0x36d PF: > { %s8955_s7 = sand.u32 1, %s13437_s15   ;;  %p15683_p3 = scmp.ne.s32.totalorder %s15671_s24, 0 }
 0x36e   : > { %p15684_p5 = scmp.ge.s32.totalorder %s13457_s20, 2  ;;  %s8956_s8 = scalar_lea.sflag [#allocation4], %s8955_s7 }
 0x370   : > { %p12917_p7 = pnand %p15684_p5, %p15683_p3 }
 0x372   : > { %p12918_p2 = pneg %p12917_p7 }
 0x374   : > { %13428 = dma.done.wait (%p12918_p2), %s8956_s8, 32768  }
 0x375   : > { %13430 = vsyncadd (%p12918_p2), %s8956_s8, 4294934528  ;;  %s15685_s10 = sadd.s32 4294967294, %s13457_s20  }
 0x376   : > { %s8964_s14 = sand.u32 1, %s15685_s10  }
 0x377   : > { %s8965_s11 = scalar_lea.sflag [#allocation9], %s8964_s14 }
 0x378   : > { %13432 = dma.done.wait (%p12918_p2), %s8965_s11, 32  }
 0x379   : > { %13434 = vsyncadd (%p12918_p2), %s8965_s11, 4294967264  ;;  %s25_s20 = sadd.s32 1, %s13457_s20   ;;  %s15686_s15 = smov %s13441_s16 }
 0x37a   : > { %p22_p0 = scmp.ge.s32.totalorder %s25_s20, 4   ;;  %s15687_s16 = smov %s13445_s17 }
 0x37b   : > { %s15688_s17 = smov %s13590_s26  ;;  %s15689_s18 = smov %s13453_s19 }
 0x37c   : > { %s15690_s19 = smov %s15692_s29  ;;  %24 = sbr.rel (!%p22_p0) target bundleno = 11 (0xb), region = 109 }
 0x381   :  { %8977 = vsyncpa [#allocation3], 1 }
 0x382   :  { %8979 = vsyncpa [#allocation3 + $0x1], 1 }
 0x383   :  { %8980 = vsyncpa [#allocation6], 1 }
 0x384   :  { %8981 = vsyncpa [#allocation4], 1 }
 0x385   :  { %8983 = vsyncpa [#allocation4 + $0x1], 1 }
 0x386   :  { %8984 = vsyncpa [#allocation9], 1 }
 0x387   :  { %8986 = vsyncpa [#allocation9 + $0x1], 1 }

</bundles_post_ra>
